<compile_context>
chip_gen: v5e
topology: v5e:2x2
jax: 0.10.0
libtpu: 0.0.40
codegen_flags: <defaults>
</compile_context>

<pallas_src>
import jax
import jax.numpy as jnp
from jax.experimental import pallas as pl
from jax.experimental.pallas import tpu as pltpu

EPS = 1e-5         # nn.BatchNorm1d default eps
NEG_SLOPE = 0.01   # nn.LeakyReLU default negative_slope
OUT_PAD = 128      # lane-dense output width (logits in lanes 0:2, probs in 2:4)


def _round_up(n, m):
    return ((n + m - 1) // m) * m


def _leaky(h):
    return jnp.where(h > 0, h, NEG_SLOPE * h)


# --------------------------------- kernel ----------------------------------

def mlp_head_kernel(x_ref,
                    w1_ref, b1_ref,
                    w2_ref, b2_ref,
                    w3_ref, b3_ref,
                    wo_ref, bo_ref,
                    out_ref):
    # x tile: (TILE_B, 3000) f32 straight from the backbone.  Cast to bf16 here
    # (keeps the wrapper free of a separate HBM pad/convert round trip).
    x = x_ref[...].astype(jnp.bfloat16)

    # fc1 + folded bn1 -> LeakyReLU   (bf16 x bf16 on MXU, f32 accumulate)
    h = jnp.dot(x, w1_ref[...], preferred_element_type=jnp.float32) + b1_ref[...]
    h = _leaky(h)

    # fc2 + folded bn2 -> LeakyReLU
    h = jnp.dot(h.astype(jnp.bfloat16), w2_ref[...],
                preferred_element_type=jnp.float32) + b2_ref[...]
    h = _leaky(h)

    # fc3 + folded bn3 -> LeakyReLU
    h = jnp.dot(h.astype(jnp.bfloat16), w3_ref[...],
                preferred_element_type=jnp.float32) + b3_ref[...]
    h = _leaky(h)

    # output layer; out dim zero-padded 2 -> 128 so the final store is an
    # unmasked lane-dense vst.  Lanes 2..127 of z are exactly zero.
    z = jnp.dot(h.astype(jnp.bfloat16), wo_ref[...],
                preferred_element_type=jnp.float32) + bo_ref[...]

    # exact 2-class softmax in closed form (no 128-lane exp / max reduce):
    #   p0 = sigmoid(z0 - z1), p1 = 1 - p0
    lane = jax.lax.broadcasted_iota(jnp.int32, z.shape, 1)
    z0 = jnp.sum(jnp.where(lane == 0, z, 0.0), axis=1, keepdims=True)
    z1 = jnp.sum(jnp.where(lane == 1, z, 0.0), axis=1, keepdims=True)
    p0 = 1.0 / (1.0 + jnp.exp(z1 - z0))
    p1 = 1.0 - p0

    # lane-dense packed output slab: lanes 0:2 = logits, lanes 2:4 = probs.
    out_ref[...] = jnp.where(
        lane < 2, z,
        jnp.where(lane == 2, p0, jnp.where(lane == 3, p1, 0.0)))


# --------------------------------- wrapper ---------------------------------

def mymodel_head(x, folded_params, *, tile_b=512):
    """x: (B, 3000) float32 bert logits. Returns (softmax_probs, logits), both (B, 2)."""
    (w1, b1, w2, b2, w3, b3, wo, bo) = folded_params
    B, F = x.shape

    # Batch tile must be a multiple of 8 (sublane rule).  Only pad the (rare,
    # tiny) non-multiple-of-8 remainder; no feature padding, no dtype pre-pass.
    B_pad = B if B % 8 == 0 else _round_up(B, 8)
    if B_pad != B:
        x = jnp.pad(x, ((0, B_pad - B), (0, 0)))

    tile_b = max(8, min(tile_b, B_pad))
    tile_b -= tile_b % 8
    grid = pl.cdiv(B_pad, tile_b)

    const = lambda i: (0, 0)

    weight_bytes = sum(int(a.size) * a.dtype.itemsize
                       for a in (w1, b1, w2, b2, w3, b3, wo, bo))
    cost = pl.CostEstimate(
        flops=int(2 * B_pad * (F * w1.shape[1]
                               + w2.shape[0] * w2.shape[1]
                               + w3.shape[0] * w3.shape[1]
                               + wo.shape[0] * 2)),
        transcendentals=int(B_pad),
        bytes_accessed=int(x.size) * x.dtype.itemsize
                       + int(B_pad) * OUT_PAD * 4 + weight_bytes)

    out = pl.pallas_call(
        mlp_head_kernel,
        out_shape=jax.ShapeDtypeStruct((B_pad, OUT_PAD), jnp.float32),
        grid=(grid,),
        in_specs=[
            pl.BlockSpec((tile_b, F), lambda i: (i, 0)),   # pipelined x tiles
            pl.BlockSpec(w1.shape, const),                 # resident weights
            pl.BlockSpec(b1.shape, const),
            pl.BlockSpec(w2.shape, const),
            pl.BlockSpec(b2.shape, const),
            pl.BlockSpec(w3.shape, const),
            pl.BlockSpec(b3.shape, const),
            pl.BlockSpec(wo.shape, const),
            pl.BlockSpec(bo.shape, const),
        ],
        out_specs=pl.BlockSpec((tile_b, OUT_PAD), lambda i: (i, 0)),
        compiler_params=pltpu.CompilerParams(
            dimension_semantics=("parallel",),
            vmem_limit_bytes=48 * 1024 * 1024),
        cost_estimate=cost,
    )(x, w1, b1, w2, b2, w3, b3, wo, bo)

    logits = out[:B, 0:2]
    probs = out[:B, 2:4]
    return probs, logits


# --------------------------- parameter construction ---------------------------

def _make_linear(key, fin, fout):
    kw, kb = jax.random.split(key)
    scale = 1.0 / jnp.sqrt(jnp.float32(fin))
    w = jax.random.uniform(kw, (fin, fout), jnp.float32, -scale, scale)   # (in, out)
    b = jax.random.uniform(kb, (1, fout), jnp.float32, -scale, scale)
    return w, b


def _make_bn(key, n):
    kg, kb, km, kv = jax.random.split(key, 4)
    gamma = 1.0 + 0.1 * jax.random.normal(kg, (1, n), jnp.float32)
    beta = 0.1 * jax.random.normal(kb, (1, n), jnp.float32)
    mean = 0.1 * jax.random.normal(km, (1, n), jnp.float32)
    var = jnp.abs(1.0 + 0.1 * jax.random.normal(kv, (1, n), jnp.float32))
    return gamma, beta, mean, var


def make_raw_params(key):
    keys = jax.random.split(key, 7)
    w1, b1 = _make_linear(keys[0], 3000, 256)
    g1, be1, m1, v1 = _make_bn(keys[1], 256)
    w2, b2 = _make_linear(keys[2], 256, 128)
    g2, be2, m2, v2 = _make_bn(keys[3], 128)
    w3, b3 = _make_linear(keys[4], 128, 64)
    g3, be3, m3, v3 = _make_bn(keys[5], 64)
    wo, bo = _make_linear(keys[6], 64, 2)
    return (w1, b1, g1, be1, m1, v1,
            w2, b2, g2, be2, m2, v2,
            w3, b3, g3, be3, m3, v3,
            wo, bo)


def _fold_bn(w, b, gamma, beta, mean, var):
    scale = gamma * jax.lax.rsqrt(var + EPS)          # (1, out)
    return w * scale, (b - mean) * scale + beta


def fold_params(raw):
    """Fold inference-mode BN into the linears; cast weights to bf16 for the MXU."""
    (w1, b1, g1, be1, m1, v1,
     w2, b2, g2, be2, m2, v2,
     w3, b3, g3, be3, m3, v3,
     wo, bo) = raw
    w1f, b1f = _fold_bn(w1, b1, g1, be1, m1, v1)
    w2f, b2f = _fold_bn(w2, b2, g2, be2, m2, v2)
    w3f, b3f = _fold_bn(w3, b3, g3, be3, m3, v3)

    # pad output layer N dim 2 -> 128 (zero columns) for a lane-dense output slab
    wop = jnp.pad(wo, ((0, 0), (0, OUT_PAD - wo.shape[1])))
    bop = jnp.pad(bo, ((0, 0), (0, OUT_PAD - bo.shape[1])))

    return (w1f.astype(jnp.bfloat16), b1f,
            w2f.astype(jnp.bfloat16), b2f,
            w3f.astype(jnp.bfloat16), b3f,
            wop.astype(jnp.bfloat16), bop)


# ------------------------------ pure-JAX reference -----------------------------

def reference_head(x, raw):
    (w1, b1, g1, be1, m1, v1,
     w2, b2, g2, be2, m2, v2,
     w3, b3, g3, be3, m3, v3,
     wo, bo) = raw

    def bn(h, g, be, m, v):
        return (h - m) * (g * jax.lax.rsqrt(v + EPS)) + be

    h = _leaky(bn(x @ w1 + b1, g1, be1, m1, v1))
    h = _leaky(bn(h @ w2 + b2, g2, be2, m2, v2))
    h = _leaky(bn(h @ w3 + b3, g3, be3, m3, v3))
    z = h @ wo + bo
    return jax.nn.softmax(z, axis=1), z


if __name__ == "__main__":
    key = jax.random.PRNGKey(0)
    kx, kp = jax.random.split(key)

    B, FEAT = 16, 3000
    # Synthetic stand-in for bert_output['logits'] (frozen ESM2 backbone output).
    x = jax.random.normal(kx, (B, FEAT), jnp.float32)
    raw_params = make_raw_params(kp)
    folded = fold_params(raw_params)

    # tile_b=8 -> grid of 2 steps, exercising the pipelined/gridded path.
    probs, logits = mymodel_head(x, folded, tile_b=8)
    jax.block_until_ready((probs, logits))

    ref_probs, ref_logits = reference_head(x, raw_params)
    assert probs.shape == (B, 2) and logits.shape == (B, 2)
    # bf16 weights/activations loosen the tolerance vs the f32 reference.
    assert jnp.allclose(logits, ref_logits, atol=3e-2, rtol=3e-2), "logits mismatch"
    assert jnp.allclose(probs, ref_probs, atol=2e-2, rtol=2e-2), "probs mismatch"
    assert bool(jnp.all(jnp.isfinite(probs))) and bool(jnp.all(jnp.isfinite(logits)))

    print("KERNEL_OK")
</pallas_src>

<mosaic_0001>
module attributes {stable_mosaic.version = 11 : i64} {
  func.func @mlp_head_kernel(%arg0: i32, %arg1: memref<8x3000xf32, #tpu.memory_space<vmem>>, %arg2: memref<3000x256xbf16, #tpu.memory_space<vmem>>, %arg3: memref<1x256xf32, #tpu.memory_space<vmem>>, %arg4: memref<256x128xbf16, #tpu.memory_space<vmem>>, %arg5: memref<1x128xf32, #tpu.memory_space<vmem>>, %arg6: memref<128x64xbf16, #tpu.memory_space<vmem>>, %arg7: memref<1x64xf32, #tpu.memory_space<vmem>>, %arg8: memref<64x128xbf16, #tpu.memory_space<vmem>>, %arg9: memref<1x128xf32, #tpu.memory_space<vmem>>, %arg10: memref<8x128xf32, #tpu.memory_space<vmem>>) attributes {dimension_semantics = [#tpu.dimension_semantics<parallel>], iteration_bounds = array<i64: 2>, scalar_prefetch = 0 : i64, scratch_operands = 0 : i64, tpu.core_type = #tpu.core_type<tc>, window_params = [{transform_indices = @transform_0, window_bounds = array<i64: 8, 3000>}, {pipeline_mode = #tpu.pipeline_mode<synchronous>, transform_indices = @transform_1, window_bounds = array<i64: 3000, 256>}, {pipeline_mode = #tpu.pipeline_mode<synchronous>, transform_indices = @transform_2, window_bounds = array<i64: 1, 256>}, {pipeline_mode = #tpu.pipeline_mode<synchronous>, transform_indices = @transform_3, window_bounds = array<i64: 256, 128>}, {pipeline_mode = #tpu.pipeline_mode<synchronous>, transform_indices = @transform_4, window_bounds = array<i64: 1, 128>}, {pipeline_mode = #tpu.pipeline_mode<synchronous>, transform_indices = @transform_5, window_bounds = array<i64: 128, 64>}, {pipeline_mode = #tpu.pipeline_mode<synchronous>, transform_indices = @transform_6, window_bounds = array<i64: 1, 64>}, {pipeline_mode = #tpu.pipeline_mode<synchronous>, transform_indices = @transform_7, window_bounds = array<i64: 64, 128>}, {pipeline_mode = #tpu.pipeline_mode<synchronous>, transform_indices = @transform_8, window_bounds = array<i64: 1, 128>}, {transform_indices = @transform_9, window_bounds = array<i64: 8, 128>}]} {
    %c0 = arith.constant 0 : index
    %c0_0 = arith.constant 0 : index
    %0 = vector.load %arg1[%c0, %c0_0] : memref<8x3000xf32, #tpu.memory_space<vmem>>, vector<8x3000xf32>
    %1 = arith.truncf %0 : vector<8x3000xf32> to vector<8x3000xbf16>
    %c0_1 = arith.constant 0 : index
    %c0_2 = arith.constant 0 : index
    %2 = vector.load %arg2[%c0_1, %c0_2] : memref<3000x256xbf16, #tpu.memory_space<vmem>>, vector<3000x256xbf16>
    %cst = arith.constant dense<0.000000e+00> : vector<8x256xf32>
    %3 = tpu.matmul %1, %2, %cst {dimension_numbers = #tpu.dot_dimension_numbers<[1], [0], [0], [1], [0, 0, 1, 1], [], []>} : vector<8x3000xbf16>, vector<3000x256xbf16>, vector<8x256xf32> -> vector<8x256xf32>
    %c0_3 = arith.constant 0 : index
    %c0_4 = arith.constant 0 : index
    %4 = vector.load %arg3[%c0_3, %c0_4] : memref<1x256xf32, #tpu.memory_space<vmem>>, vector<1x256xf32>
    %5 = vector.broadcast %4 : vector<1x256xf32> to vector<8x256xf32>
    %6 = arith.addf %3, %5 : vector<8x256xf32>
    %cst_5 = arith.constant 0.000000e+00 : f32
    %7 = vector.broadcast %cst_5 : f32 to vector<8x256xf32>
    %8 = arith.cmpf ogt, %6, %7 : vector<8x256xf32>
    %cst_6 = arith.constant 0.00999999977 : f32
    %9 = vector.broadcast %cst_6 : f32 to vector<8x256xf32>
    %10 = arith.mulf %9, %6 : vector<8x256xf32>
    %11 = arith.select %8, %6, %10 : vector<8x256xi1>, vector<8x256xf32>
    %12 = arith.truncf %11 : vector<8x256xf32> to vector<8x256xbf16>
    %c0_7 = arith.constant 0 : index
    %c0_8 = arith.constant 0 : index
    %13 = vector.load %arg4[%c0_7, %c0_8] : memref<256x128xbf16, #tpu.memory_space<vmem>>, vector<256x128xbf16>
    %cst_9 = arith.constant dense<0.000000e+00> : vector<8x128xf32>
    %14 = tpu.matmul %12, %13, %cst_9 {dimension_numbers = #tpu.dot_dimension_numbers<[1], [0], [0], [1], [0, 0, 1, 1], [], []>} : vector<8x256xbf16>, vector<256x128xbf16>, vector<8x128xf32> -> vector<8x128xf32>
    %c0_10 = arith.constant 0 : index
    %c0_11 = arith.constant 0 : index
    %15 = vector.load %arg5[%c0_10, %c0_11] : memref<1x128xf32, #tpu.memory_space<vmem>>, vector<1x128xf32>
    %16 = vector.broadcast %15 : vector<1x128xf32> to vector<8x128xf32>
    %17 = arith.addf %14, %16 : vector<8x128xf32>
    %cst_12 = arith.constant 0.000000e+00 : f32
    %18 = vector.broadcast %cst_12 : f32 to vector<8x128xf32>
    %19 = arith.cmpf ogt, %17, %18 : vector<8x128xf32>
    %cst_13 = arith.constant 0.00999999977 : f32
    %20 = vector.broadcast %cst_13 : f32 to vector<8x128xf32>
    %21 = arith.mulf %20, %17 : vector<8x128xf32>
    %22 = arith.select %19, %17, %21 : vector<8x128xi1>, vector<8x128xf32>
    %23 = arith.truncf %22 : vector<8x128xf32> to vector<8x128xbf16>
    %c0_14 = arith.constant 0 : index
    %c0_15 = arith.constant 0 : index
    %24 = vector.load %arg6[%c0_14, %c0_15] : memref<128x64xbf16, #tpu.memory_space<vmem>>, vector<128x64xbf16>
    %cst_16 = arith.constant dense<0.000000e+00> : vector<8x64xf32>
    %25 = tpu.matmul %23, %24, %cst_16 {dimension_numbers = #tpu.dot_dimension_numbers<[1], [0], [0], [1], [0, 0, 1, 1], [], []>} : vector<8x128xbf16>, vector<128x64xbf16>, vector<8x64xf32> -> vector<8x64xf32>
    %c0_17 = arith.constant 0 : index
    %c0_18 = arith.constant 0 : index
    %26 = vector.load %arg7[%c0_17, %c0_18] : memref<1x64xf32, #tpu.memory_space<vmem>>, vector<1x64xf32>
    %27 = vector.broadcast %26 : vector<1x64xf32> to vector<8x64xf32>
    %28 = arith.addf %25, %27 : vector<8x64xf32>
    %cst_19 = arith.constant 0.000000e+00 : f32
    %29 = vector.broadcast %cst_19 : f32 to vector<8x64xf32>
    %30 = arith.cmpf ogt, %28, %29 : vector<8x64xf32>
    %cst_20 = arith.constant 0.00999999977 : f32
    %31 = vector.broadcast %cst_20 : f32 to vector<8x64xf32>
    %32 = arith.mulf %31, %28 : vector<8x64xf32>
    %33 = arith.select %30, %28, %32 : vector<8x64xi1>, vector<8x64xf32>
    %34 = arith.truncf %33 : vector<8x64xf32> to vector<8x64xbf16>
    %c0_21 = arith.constant 0 : index
    %c0_22 = arith.constant 0 : index
    %35 = vector.load %arg8[%c0_21, %c0_22] : memref<64x128xbf16, #tpu.memory_space<vmem>>, vector<64x128xbf16>
    %cst_23 = arith.constant dense<0.000000e+00> : vector<8x128xf32>
    %36 = tpu.matmul %34, %35, %cst_23 {dimension_numbers = #tpu.dot_dimension_numbers<[1], [0], [0], [1], [0, 0, 1, 1], [], []>} : vector<8x64xbf16>, vector<64x128xbf16>, vector<8x128xf32> -> vector<8x128xf32>
    %c0_24 = arith.constant 0 : index
    %c0_25 = arith.constant 0 : index
    %37 = vector.load %arg9[%c0_24, %c0_25] : memref<1x128xf32, #tpu.memory_space<vmem>>, vector<1x128xf32>
    %38 = vector.broadcast %37 : vector<1x128xf32> to vector<8x128xf32>
    %39 = arith.addf %36, %38 : vector<8x128xf32>
    %40 = tpu.iota {dimensions = array<i32: 1>} : vector<8x128xi32>
    %c0_i32 = arith.constant 0 : i32
    %41 = vector.broadcast %c0_i32 : i32 to vector<8x128xi32>
    %42 = arith.cmpi eq, %40, %41 : vector<8x128xi32>
    %cst_26 = arith.constant 0.000000e+00 : f32
    %43 = vector.broadcast %cst_26 : f32 to vector<8x128xf32>
    %44 = arith.select %42, %39, %43 : vector<8x128xi1>, vector<8x128xf32>
    %cst_27 = arith.constant dense<0.000000e+00> : vector<8xf32>
    %45 = vector.multi_reduction <add>, %44, %cst_27 [1] : vector<8x128xf32> to vector<8xf32>
    %46 = vector.shape_cast %45 : vector<8xf32> to vector<8x1xf32>
    %c1_i32 = arith.constant 1 : i32
    %47 = vector.broadcast %c1_i32 : i32 to vector<8x128xi32>
    %48 = arith.cmpi eq, %40, %47 : vector<8x128xi32>
    %cst_28 = arith.constant 0.000000e+00 : f32
    %49 = vector.broadcast %cst_28 : f32 to vector<8x128xf32>
    %50 = arith.select %48, %39, %49 : vector<8x128xi1>, vector<8x128xf32>
    %cst_29 = arith.constant dense<0.000000e+00> : vector<8xf32>
    %51 = vector.multi_reduction <add>, %50, %cst_29 [1] : vector<8x128xf32> to vector<8xf32>
    %52 = vector.shape_cast %51 : vector<8xf32> to vector<8x1xf32>
    %53 = arith.subf %52, %46 : vector<8x1xf32>
    %54 = math.exp %53 : vector<8x1xf32>
    %cst_30 = arith.constant 1.000000e+00 : f32
    %55 = vector.broadcast %cst_30 : f32 to vector<8x1xf32>
    %56 = arith.addf %55, %54 : vector<8x1xf32>
    %cst_31 = arith.constant 1.000000e+00 : f32
    %57 = vector.broadcast %cst_31 : f32 to vector<8x1xf32>
    %58 = arith.divf %57, %56 : vector<8x1xf32>
    %cst_32 = arith.constant 1.000000e+00 : f32
    %59 = vector.broadcast %cst_32 : f32 to vector<8x1xf32>
    %60 = arith.subf %59, %58 : vector<8x1xf32>
    %c2_i32 = arith.constant 2 : i32
    %61 = vector.broadcast %c2_i32 : i32 to vector<8x128xi32>
    %62 = arith.cmpi slt, %40, %61 : vector<8x128xi32>
    %c2_i32_33 = arith.constant 2 : i32
    %63 = vector.broadcast %c2_i32_33 : i32 to vector<8x128xi32>
    %64 = arith.cmpi eq, %40, %63 : vector<8x128xi32>
    %c3_i32 = arith.constant 3 : i32
    %65 = vector.broadcast %c3_i32 : i32 to vector<8x128xi32>
    %66 = arith.cmpi eq, %40, %65 : vector<8x128xi32>
    %cst_34 = arith.constant 0.000000e+00 : f32
    %67 = vector.shape_cast %60 : vector<8x1xf32> to vector<8x1xf32>
    %68 = vector.broadcast %67 : vector<8x1xf32> to vector<8x128xf32>
    %69 = vector.broadcast %cst_34 : f32 to vector<8x128xf32>
    %70 = arith.select %66, %68, %69 : vector<8x128xi1>, vector<8x128xf32>
    %71 = vector.shape_cast %58 : vector<8x1xf32> to vector<8x1xf32>
    %72 = vector.broadcast %71 : vector<8x1xf32> to vector<8x128xf32>
    %73 = arith.select %64, %72, %70 : vector<8x128xi1>, vector<8x128xf32>
    %74 = arith.select %62, %39, %73 : vector<8x128xi1>, vector<8x128xf32>
    %c0_35 = arith.constant 0 : index
    %c0_36 = arith.constant 0 : index
    %75 = vector.load %arg10[%c0_35, %c0_36] : memref<8x128xf32, #tpu.memory_space<vmem>>, vector<8x128xf32>
    tpu.vector_store %arg10[%c0_35, %c0_36], %74 {strides = array<i32>} : memref<8x128xf32, #tpu.memory_space<vmem>>, vector<8x128xf32>,
    return
  }
  func.func @transform_0(%arg0: i32) -> (i32, i32) {
    %c0_i32 = arith.constant 0 : i32
    %c0_i32_0 = arith.constant 0 : i32
    return %arg0, %c0_i32 : i32, i32
  }
  func.func @transform_1(%arg0: i32) -> (i32, i32) {
    %c0_i32 = arith.constant 0 : i32
    %c0_i32_0 = arith.constant 0 : i32
    %c0_i32_1 = arith.constant 0 : i32
    return %c0_i32, %c0_i32_0 : i32, i32
  }
  func.func @transform_2(%arg0: i32) -> (i32, i32) {
    %c0_i32 = arith.constant 0 : i32
    %c0_i32_0 = arith.constant 0 : i32
    %c0_i32_1 = arith.constant 0 : i32
    return %c0_i32, %c0_i32_0 : i32, i32
  }
  func.func @transform_3(%arg0: i32) -> (i32, i32) {
    %c0_i32 = arith.constant 0 : i32
    %c0_i32_0 = arith.constant 0 : i32
    %c0_i32_1 = arith.constant 0 : i32
    return %c0_i32, %c0_i32_0 : i32, i32
  }
  func.func @transform_4(%arg0: i32) -> (i32, i32) {
    %c0_i32 = arith.constant 0 : i32
    %c0_i32_0 = arith.constant 0 : i32
    %c0_i32_1 = arith.constant 0 : i32
    return %c0_i32, %c0_i32_0 : i32, i32
  }
  func.func @transform_5(%arg0: i32) -> (i32, i32) {
    %c0_i32 = arith.constant 0 : i32
    %c0_i32_0 = arith.constant 0 : i32
    %c0_i32_1 = arith.constant 0 : i32
    return %c0_i32, %c0_i32_0 : i32, i32
  }
  func.func @transform_6(%arg0: i32) -> (i32, i32) {
    %c0_i32 = arith.constant 0 : i32
    %c0_i32_0 = arith.constant 0 : i32
    %c0_i32_1 = arith.constant 0 : i32
    return %c0_i32, %c0_i32_0 : i32, i32
  }
  func.func @transform_7(%arg0: i32) -> (i32, i32) {
    %c0_i32 = arith.constant 0 : i32
    %c0_i32_0 = arith.constant 0 : i32
    %c0_i32_1 = arith.constant 0 : i32
    return %c0_i32, %c0_i32_0 : i32, i32
  }
  func.func @transform_8(%arg0: i32) -> (i32, i32) {
    %c0_i32 = arith.constant 0 : i32
    %c0_i32_0 = arith.constant 0 : i32
    %c0_i32_1 = arith.constant 0 : i32
    return %c0_i32, %c0_i32_0 : i32, i32
  }
  func.func @transform_9(%arg0: i32) -> (i32, i32) {
    %c0_i32 = arith.constant 0 : i32
    %c0_i32_0 = arith.constant 0 : i32
    return %arg0, %c0_i32 : i32, i32
  }
}

</mosaic_0001>

<bundles_post_ra>
// kernel: tpu_custom_call.1
= control target key start
LH: loop header
LB: loop body
LE: loop exit
PB: predicated region body
PF: predicated region fallthrough
CT: control target
= control target key end

     0   :  { %s6816_s0 = inlined_call_operand.hbm [shape: f32[16,3000], index: 0, kind: input, shape index: {}]   ;;  %s6817_s1 = inlined_call_operand.hbm [shape: bf16[3000,256], index: 1, kind: input, shape index: {}]   ;;  %s6818_s2 = inlined_call_operand.hbm [shape: f32[1,256], index: 2, kind: input, shape index: {}]   ;;  %s6819_s3 = inlined_call_operand.hbm [shape: bf16[256,128], index: 3, kind: input, shape index: {}]   ;;  %s6820_s4 = inlined_call_operand.hbm [shape: f32[1,128], index: 4, kind: input, shape index: {}]   ;;  %s6821_s5 = inlined_call_operand.vmem [shape: bf16[128,64], index: 5, kind: input, shape index: {}]   ;;  %s6822_s6 = inlined_call_operand.hbm [shape: f32[1,64], index: 6, kind: input, shape index: {}]   ;;  %s6823_s7 = inlined_call_operand.hbm [shape: bf16[64,128], index: 7, kind: input, shape index: {}]   ;;  %s6824_s8 = inlined_call_operand.hbm [shape: f32[1,128], index: 8, kind: input, shape index: {}]   ;;  %s6825_s9 = inlined_call_operand.hbm [shape: f32[16,128], index: 9, kind: output, shape index: {}]  }
   0x1   :  { %6826 = sst [smem:[#allocation23_spill]] %s6817_s1 }
   0x2   :  { %6827 = sst [smem:[#allocation24_spill]] %s6818_s2 }
   0x3   :  { %6828 = sst [smem:[#allocation25_spill]] %s6819_s3 }
   0x4   :  { %6829 = sst [smem:[#allocation26_spill]] %s6820_s4 }
   0x5   :  { %6830 = sst [smem:[#allocation27_spill]] %s6822_s6 }
   0x6   :  { %6831 = sst [smem:[#allocation28_spill]] %s6823_s7 }
   0x7   :  { %14 = vsyncpa [#allocation3], 0 }
   0x8   :  { %16 = vsyncpa [#allocation3 + $0x1], 0 }
   0x9   :  { %17 = vsyncpa [#allocation6], 0 }
   0xa   :  { %18 = vsyncpa [#allocation9], 0 }
   0xb   :  { %19 = vsyncpa [#allocation12], 0 }
   0xc   :  { %20 = vsyncpa [#allocation15], 0 }
   0xd   :  { %21 = vsyncpa [#allocation4], 0 }
   0xe   :  { %23 = vsyncpa [#allocation4 + $0x1], 0  ;;  %s6452_s30 = smov 0   ;;  %s6454_s10 = smov 0  }
   0xf   :  { %s6456_s11 = smov 0   ;;  %s6458_s12 = smov 0  }
  0x10 LB: > { %s6832_s1 = sld [smem:[#allocation23_spill]]  ;;  %s6476_s16 = sadd.s32 4294967295, %s6389_s12   ;;  %s6389_s12 = sphi %s6458_s12, %s6848_s12   ;;  %s6385_s11 = sphi %s6456_s11, %s6847_s11   ;;  %s6381_s10 = sphi %s6454_s10, %s6846_s10   ;;  %s6377_s30 = sphi %s6452_s30, %s6845_s30  }
  0x11   : > { %p3898_p0 = scmp.ge.s32.totalorder %s6389_s12, 1  ;;  %p50_p1 = scmp.eq.s32.totalorder %s6476_s16, 0 }
  0x12   : > { %p254_p2 = scmp.lt.s32.totalorder %s6389_s12, 3  ;;  %s6391_s18 = smov [#allocation5]  }
  0x13   : > { %s267_s19 = sshll.u32 %s6391_s18, 4  ;;  %s6834_s3 = sld [smem:[#allocation25_spill]]  ;;  %s268_s19 = int_to_ptr.vmem [resolvable:$true] %s267_s19 }
  0x14   : > { %p6481_p3 = pnand %p3898_p0, %p254_p2  ;;  %s6392_s24 = smov [#allocation8]  }
  0x15   : > { %s293_s25 = sshll.u32 %s6392_s24, 4  ;;  %s6393_s26 = smov 128   ;;  %s294_s25 = int_to_ptr.vmem [resolvable:$true] %s293_s25 }
  0x16   : > { %s265_s15 = sshll.u32 %s6832_s1, 4  ;;  %p5969_p4 = pneg %p6481_p3  ;;  %s266_s15 = int_to_ptr.hbm [resolvable:$true] %s265_s15 }
  0x17   : > { %s6394_s27 = smov 8   ;;  %s6395_s28 = smov 64  }
  0x18   : > { %p6493_p6 = pnand %p5969_p4, %p50_p1  ;;  %s6396_s29 = smov 4  }
  0x19   : > { %s291_s22 = sshll.u32 %s6834_s3, 4  ;;  %s6836_s6 = sld [smem:[#allocation27_spill]]  ;;  %s292_s22 = int_to_ptr.hbm [resolvable:$true] %s291_s22 }
  0x1a   : > { %5972 = dma.hbm_to_vmem [thread:$0]  (!%p6493_p6), %s266_s15, 48000, %s268_s19, [#allocation6], %s6393_s26, %s6393_s26, %s6394_s27  }
  0x1b   : > { %5978 = dma.hbm_to_vmem [thread:$0]  (!%p6493_p6), %s292_s22, 2048, %s294_s25, [#allocation9], %s6395_s28, %s6395_s28, %s6396_s29  }
  0x1c   : > { %s6397_s20 = smov [#allocation11]   ;;  %s6837_s2 = sld [smem:[#allocation24_spill]] }
  0x1d   : > { %s323_s21 = sshll.u32 %s6397_s20, 4  ;;  %s6398_s26 = smov [#allocation7]   ;;  %s324_s21 = int_to_ptr.vmem [resolvable:$true] %s323_s21 }
  0x1e   : > { %s282_s27 = sshll.u32 %s6398_s26, 4  ;;  %s6838_s4 = sld [smem:[#allocation26_spill]]  ;;  %s283_s27 = int_to_ptr.vmem [resolvable:$true] %s282_s27 }
  0x1f   : > { %s321_s18 = sshll.u32 %s6836_s6, 4  ;;  %s6839_s7 = sld [smem:[#allocation28_spill]]  ;;  %s322_s18 = int_to_ptr.hbm [resolvable:$true] %s321_s18 }
  0x20   : > { %5984 = dma.hbm_to_vmem [thread:$0]  (!%p6493_p6), %s322_s18, 16, %s324_s21, [#allocation12]  }
  0x21   : > { %s6399_s24 = smov [#allocation10]   ;;  %s6400_s1 = smov [#allocation13]  }
  0x22   : > { %s280_s19 = sshll.u32 %s6837_s2, 4  ;;  %s308_s18 = sshll.u32 %s6399_s24, 4  ;;  %s281_s19 = int_to_ptr.hbm [resolvable:$true] %s280_s19  ;;  %s309_s18 = int_to_ptr.vmem [resolvable:$true] %s308_s18 }
  0x23   : > { %5975 = dma.hbm_to_vmem [thread:$0]  (!%p6493_p6), %s281_s19, 32, %s283_s27, [#allocation6]  }
  0x24   : > { %s306_s25 = sshll.u32 %s6838_s4, 4  ;;  %s334_s21 = sshll.u32 %s6400_s1, 4  ;;  %s307_s25 = int_to_ptr.hbm [resolvable:$true] %s306_s25  ;;  %s335_s21 = int_to_ptr.vmem [resolvable:$true] %s334_s21 }
  0x25   : > { %s332_s20 = sshll.u32 %s6839_s7, 4  ;;  %s347_s26 = sshll.u32 %s6824_s8, 4  ;;  %s333_s20 = int_to_ptr.hbm [resolvable:$true] %s332_s20  ;;  %s348_s26 = int_to_ptr.hbm [resolvable:$true] %s347_s26 }
  0x26   : > { %5981 = dma.hbm_to_vmem [thread:$0]  (!%p6493_p6), %s307_s25, 16, %s309_s18, [#allocation9]  }
  0x27   : > { %5987 = dma.hbm_to_vmem [thread:$0]  (!%p6493_p6), %s333_s20, 512, %s335_s21, [#allocation12], %s6395_s28, %s6395_s28, %s6396_s29  }
  0x28   : > { %s6401_s27 = smov [#allocation14]   ;;  %s3897_s25 = sadd.s32 4294967294, %s6389_s12  }
  0x29   : > { %s349_s22 = sshll.u32 %s6401_s27, 4  ;;  %s6534_s13 = sadd.s32 1, %s6389_s12   ;;  %s350_s22 = int_to_ptr.vmem [resolvable:$true] %s349_s22 }
  0x2a   : > { %5990 = dma.hbm_to_vmem [thread:$0]  (!%p6493_p6), %s348_s26, 16, %s350_s22, [#allocation15]  }
  0x2b   : > { %s36_s14 = sadd.s32 1, %s6385_s11  ;;  %s33_s24 = ssub.s32 %s6389_s12, %s6534_s13 }
  0x2c   : > { %p43_p7 = scmp.ne.s32.totalorder %s6385_s11, %s6381_s10  ;;  %p34_p8 = scmp.eq.s32.totalorder %s33_s24, 0 }
  0x2d   : > { %p44_p9 = scmp.eq.s32.totalorder %s6389_s12, 0  ;;  %p49_p10 = scmp.ne.s32.totalorder %s6381_s10, %s6377_s30 }
  0x2e   : > { %p241_p11 = scmp.eq.s32.totalorder %s6476_s16, 1  ;;  %p247_p2 = scmp.eq.s32.totalorder %s3897_s25, 1 }
  0x2f   : > { %s6546_s28 = scalar_select %p34_p8, %s6385_s11, %s36_s14  }
  0x30   : > { %p45_p12 = por %p44_p9, %p43_p7  ;;  %p6550_p13 = por %p50_p1, %p49_p10 }
  0x31   : > { %p6554_p0 = por %p241_p11, %p43_p7  ;;  %p6006_p4 = scmp.lt.s32.totalorder %s6389_s12, 2 }
  0x32   : > { %s360_s20 = sand.u32 1, %s6385_s11   ;;  %p6560_p6 = por %p247_p2, %p49_p10 }
  0x33   : > { %s5934_s1 = smul.u32 192, %s360_s20  ;;  %p6564_p8 = pnand %p6006_p4, %p45_p12 }
  0x34   : > { %s5935_s15 = smul.u32 192, %s6389_s12  ;;  %s361_s24 = scalar_lea.sflag [#allocation3], %s360_s20 }
  0x35   : > { %s364_s22 = scalar_lea.vmem [#allocation2], %s5934_s1  ;;  %p6281_p9 = pneg %p6564_p8 }
  0x36   : > { %s369_s27 = scalar_lea.hbm %s6816_s0, %s5935_s15  ;;  %s373_s14 = sshll.u32 %s364_s22, 4  ;;  %s374_s14 = int_to_ptr.vmem [resolvable:$true] %s373_s14 }
  0x37   : > { %s371_s25 = sshll.u32 %s369_s27, 4  ;;  %s6284_s7 = scalar_lea.hbm %s6816_s0, 384  ;;  %s372_s25 = int_to_ptr.hbm [resolvable:$true] %s371_s25 }
  0x38   : > { %s6277_s2 = sshra.s32 %s372_s25, 4  ;;  %s6278_s2 = int_to_ptr.hbm [resolvable:$true] %s6277_s2 }
  0x39   : > { %s6279_s3 = scalar_lea.hbm %s6278_s2, 192  ;;  %p6285_p12 = scmp.lt.s32.totalorder %s6278_s2, %s6816_s0 }
  0x3a   : > { %p6280_p7 = scmp.ne.s32.totalorder %s6278_s2, %s6279_s3  ;;  %p6286_p2 = scmp.lt.s32.totalorder %s6284_s7, %s6279_s3 }
  0x3c   : > { %p6282_p10 = pnand %p6281_p9, %p6280_p7  ;;  %p6287_p4 = por %p6286_p2, %p6285_p12 }
  0x3e   : > { %p6283_p11 = pneg %p6282_p10 }
  0x40   : > { %p6288_p5 = pnand %p6287_p4, %p6283_p11 }
  0x42   : > { %6291 = shalt.err (!%p6288_p5)
}
  0x43   : > { %5994 = dma.hbm_to_vmem [thread:$0]  (!%p6564_p8), %s372_s25, 3072, %s374_s14, %s361_s24  }
  0x44   : > { %382 = sbr.rel (%p6481_p3) target bundleno = 1168 (0x490), region = 56  ;;  %s6585_s20 = sand.u32 (!%p6481_p3), 1, %s6381_s10  }
  0x45   : > { %s5936_s4 = smul.u32 (!%p6481_p3), 192, %s6585_s20  ;;  %s385_s6 = scalar_lea.sflag (!%p6481_p3), [#allocation3], %s6585_s20 }
  0x47   : > { %s6589_s1 = scalar_lea.vmem (!%p6481_p3), [#allocation2], %s5936_s4 }
  0x49   : > { %6352 = dma.done.wait (%p6550_p13), %s385_s6, 3072  }
  0x4a   : > { %6354 = vsyncadd (%p6550_p13), %s385_s6, 4294964224 }
  0x4b   : > { %6356 = dma.done.wait (%p50_p1), [#allocation6], 48032  }
  0x4c   : > { %6358 = vsyncadd (%p50_p1), [#allocation6], 4294919264 }
  0x4d   : > { %6360 = dma.done.wait (%p50_p1), [#allocation9], 2064  }
  0x4e   : > { %6362 = vsyncadd (%p50_p1), [#allocation9], 4294965232 }
  0x4f   : > { %6364 = dma.done.wait (%p50_p1), [#allocation12], 528  }
  0x50   : > { %6366 = vsyncadd (%p50_p1), [#allocation12], 4294966768 }
  0x51   : > { %6368 = dma.done.wait (%p50_p1), [#allocation15], 16  }
  0x52   : > { %6370 = vsyncadd (%p50_p1), [#allocation15], 4294967280  ;;  %v3975_v0 = vld [vmem:[#allocation5 + $0x70] sm:$0xf]  ;;  %v5547_v1 = vld [vmem:[#allocation5 + $0x74] sm:$0xf0] }
  0x53   : > { %v4039_v2 = vld [vmem:[#allocation5 + $0xf0] sm:$0xf]  ;;  %v3976_v3 = vor.u32 %v5547_v1, %v3975_v0  ;;  %v5563_v4 = vld [vmem:[#allocation5 + $0xf4] sm:$0xf0]  ;;  %v3967_v11 = vld [vmem:[#allocation5 + $0x60] sm:$0xf] }
  0x54   : > { %v4103_v5 = vld [vmem:[#allocation5 + $0x170] sm:$0xf]  ;;  %v5579_v6 = vld [vmem:[#allocation5 + $0x174] sm:$0xf0]  ;;  %v4040_v7 = vor.u32 %v5563_v4, %v4039_v2  ;;  %v5545_v13 = vld [vmem:[#allocation5 + $0x64] sm:$0xf0] }
  0x55   : > { %v4104_v8 = vor.u32 %v5579_v6, %v4103_v5  ;;  %v4167_v9 = vld [vmem:[#allocation5 + $0x1f0] sm:$0xf]  ;;  %v5595_v10 = vld [vmem:[#allocation5 + $0x1f4] sm:$0xf0]  ;;  %2775 = vmatpush.bf16.msra.mxu0 %v3976_v3  ;;  %v4031_v14 = vld [vmem:[#allocation5 + $0xe0] sm:$0xf]  ;;  %v3968_v16 = vor.u32 %v5545_v13, %v3967_v11 }
  0x56   : > { %v4168_v12 = vor.u32 %v5595_v10, %v4167_v9  ;;  %v5561_v15 = vld [vmem:[#allocation5 + $0xe4] sm:$0xf0]  ;;  %2788 = vmatpush.bf16.msra.mxu1 %v4040_v7  ;;  %v4095_v18 = vld [vmem:[#allocation5 + $0x160] sm:$0xf]  ;;  %v3959_v23 = vld [vmem:[#allocation5 + $0x50] sm:$0xf] }
  0x57   : > { %2801 = vmatpush.bf16.msra.mxu2 %v4104_v8  ;;  %v4032_v17 = vor.u32 %v5561_v15, %v4031_v14  ;;  %v5577_v19 = vld [vmem:[#allocation5 + $0x164] sm:$0xf0]  ;;  %v4159_v20 = vld [vmem:[#allocation5 + $0x1e0] sm:$0xf]  ;;  %v5543_v24 = vld [vmem:[#allocation5 + $0x54] sm:$0xf0] }
  0x58   : > { %2814 = vmatpush.bf16.msra.mxu3 %v4168_v12  ;;  %v4096_v21 = vor.u32 %v5577_v19, %v4095_v18  ;;  %v5593_v22 = vld [vmem:[#allocation5 + $0x1e4] sm:$0xf0]  ;;  %v4023_v26 = vld [vmem:[#allocation5 + $0xd0] sm:$0xf]  ;;  %v5559_v27 = vld [vmem:[#allocation5 + $0xd4] sm:$0xf0]  ;;  %v3960_v29 = vor.u32 %v5543_v24, %v3959_v23 }
  0x59   : > { %v4160_v25 = vor.u32 %v5593_v22, %v4159_v20  ;;  %v4087_v28 = vld [vmem:[#allocation5 + $0x150] sm:$0xf]  ;;  %2776 = vmatpush.bf16.msra.mxu0 %v3968_v16  ;;  %v5575_v30 = vld [vmem:[#allocation5 + $0x154] sm:$0xf0]  ;;  %v4024_v33 = vor.u32 %v5559_v27, %v4023_v26  ;;  %v3951_v35 = vld [vmem:[#allocation5 + $0x40] sm:$0xf] }
  0x5a   : > { %v4151_v31 = vld [vmem:[#allocation5 + $0x1d0] sm:$0xf]  ;;  %v5591_v32 = vld [vmem:[#allocation5 + $0x1d4] sm:$0xf0]  ;;  %2789 = vmatpush.bf16.msra.mxu1 %v4032_v17  ;;  %v4088_v34 = vor.u32 %v5575_v30, %v4087_v28  ;;  %v5541_v36 = vld [vmem:[#allocation5 + $0x44] sm:$0xf0] }
  0x5b   : > { %2802 = vmatpush.bf16.msra.mxu2 %v4096_v21  ;;  %v4015_v37 = vld [vmem:[#allocation5 + $0xc0] sm:$0xf]  ;;  %v4152_v38 = vor.u32 %v5591_v32, %v4151_v31  ;;  %v5557_v39 = vld [vmem:[#allocation5 + $0xc4] sm:$0xf0]  ;;  %v3952_v44 = vor.u32 %v5541_v36, %v3951_v35  ;;  %v3943_v47 = vld [vmem:[#allocation5 + $0x30] sm:$0xf] }
  0x5c   : > { %2815 = vmatpush.bf16.msra.mxu3 %v4160_v25  ;;  %v4079_v40 = vld [vmem:[#allocation5 + $0x140] sm:$0xf]  ;;  %v5573_v41 = vld [vmem:[#allocation5 + $0x144] sm:$0xf0]  ;;  %v4016_v45 = vor.u32 %v5557_v39, %v4015_v37  ;;  %v5539_v48 = vld [vmem:[#allocation5 + $0x34] sm:$0xf0] }
  0x5d   : > { %v4143_v42 = vld [vmem:[#allocation5 + $0x1c0] sm:$0xf]  ;;  %v5589_v43 = vld [vmem:[#allocation5 + $0x1c4] sm:$0xf0]  ;;  %2777 = vmatpush.bf16.msra.mxu0 %v3960_v29  ;;  %v4080_v46 = vor.u32 %v5573_v41, %v4079_v40  ;;  %v4007_v49 = vld [vmem:[#allocation5 + $0xb0] sm:$0xf]  ;;  %v3944_v56 = vor.u32 %v5539_v48, %v3943_v47 }
  0x5e   : > { %2790 = vmatpush.bf16.msra.mxu1 %v4024_v33  ;;  %v4144_v50 = vor.u32 %v5589_v43, %v4143_v42  ;;  %v5555_v51 = vld [vmem:[#allocation5 + $0xb4] sm:$0xf0]  ;;  %v4071_v52 = vld [vmem:[#allocation5 + $0x130] sm:$0xf]  ;;  %v3935_v59 = vld [vmem:[#allocation5 + $0x20] sm:$0xf] }
  0x5f   : > { %2803 = vmatpush.bf16.msra.mxu2 %v4088_v34  ;;  %v5571_v53 = vld [vmem:[#allocation5 + $0x134] sm:$0xf0]  ;;  %v4135_v54 = vld [vmem:[#allocation5 + $0x1b0] sm:$0xf]  ;;  %v4008_v57 = vor.u32 %v5555_v51, %v4007_v49  ;;  %v5537_v60 = vld [vmem:[#allocation5 + $0x24] sm:$0xf0] }
  0x60   : > { %2816 = vmatpush.bf16.msra.mxu3 %v4152_v38  ;;  %v5587_v55 = vld [vmem:[#allocation5 + $0x1b4] sm:$0xf0]  ;;  %v4072_v58 = vor.u32 %v5571_v53, %v4071_v52  ;;  %v3999_v61 = vld [vmem:[#allocation5 + $0xa0] sm:$0xf]  ;;  %v5553_v63 = vld [vmem:[#allocation5 + $0xa4] sm:$0xf0]  ;;  %v3936_v4 = vor.u32 %v5537_v60, %v3935_v59 }
  0x61   : > { %2778 = vmatpush.bf16.msra.mxu0 %v3952_v44  ;;  %v4136_v62 = vor.u32 %v5587_v55, %v4135_v54  ;;  %v4063_v0 = vld [vmem:[#allocation5 + $0x120] sm:$0xf]  ;;  %v5569_v1 = vld [vmem:[#allocation5 + $0x124] sm:$0xf0]  ;;  %v4000_v5 = vor.u32 %v5553_v63, %v3999_v61  ;;  %v3927_v7 = vld [vmem:[#allocation5 + $0x10] sm:$0xf] }
  0x62   : > { %2791 = vmatpush.bf16.msra.mxu1 %v4016_v45  ;;  %v4127_v2 = vld [vmem:[#allocation5 + $0x1a0] sm:$0xf]  ;;  %v5585_v3 = vld [vmem:[#allocation5 + $0x1a4] sm:$0xf0]  ;;  %v4064_v6 = vor.u32 %v5569_v1, %v4063_v0  ;;  %v5535_v8 = vld [vmem:[#allocation5 + $0x14] sm:$0xf0] }
  0x63   : > { %2804 = vmatpush.bf16.msra.mxu2 %v4080_v46  ;;  %v3991_v9 = vld [vmem:[#allocation5 + $0x90] sm:$0xf]  ;;  %v4128_v10 = vor.u32 %v5585_v3, %v4127_v2  ;;  %v5551_v11 = vld [vmem:[#allocation5 + $0x94] sm:$0xf0]  ;;  %v3928_v16 = vor.u32 %v5535_v8, %v3927_v7  ;;  %v3919_v17 = vld [vmem:[#allocation5] sm:$0xf] }
  0x64   : > { %2817 = vmatpush.bf16.msra.mxu3 %v4144_v50  ;;  %v4055_v12 = vld [vmem:[#allocation5 + $0x110] sm:$0xf]  ;;  %v5567_v13 = vld [vmem:[#allocation5 + $0x114] sm:$0xf0]  ;;  %v5533_v18 = vld [vmem:[#allocation5 + $0x4] sm:$0xf0]  ;;  %v3992_v19 = vor.u32 %v5551_v11, %v3991_v9 }
  0x65   : > { %2779 = vmatpush.bf16.msra.mxu0 %v3944_v56  ;;  %v4119_v14 = vld [vmem:[#allocation5 + $0x190] sm:$0xf]  ;;  %v5583_v15 = vld [vmem:[#allocation5 + $0x194] sm:$0xf0]  ;;  %v4056_v20 = vor.u32 %v5567_v13, %v4055_v12  ;;  %v3983_v21 = vld [vmem:[#allocation5 + $0x80] sm:$0xf]  ;;  %v3920_v31 = vor.u32 %v5533_v18, %v3919_v17 }
  0x66   : > { %2792 = vmatpush.bf16.msra.mxu1 %v4008_v57  ;;  %v5549_v22 = vld [vmem:[#allocation5 + $0x84] sm:$0xf0]  ;;  %v4047_v23 = vld [vmem:[#allocation5 + $0x100] sm:$0xf]  ;;  %v4120_v24 = vor.u32 %v5583_v15, %v4119_v14  ;;  %v4231_v28 = vld [vmem:[#allocation5 + $0x270] sm:$0xf] }
  0x67   : > { %2805 = vmatpush.bf16.msra.mxu2 %v4072_v58  ;;  %v5565_v25 = vld [vmem:[#allocation5 + $0x104] sm:$0xf0]  ;;  %v4111_v26 = vld [vmem:[#allocation5 + $0x180] sm:$0xf]  ;;  %v5611_v29 = vld [vmem:[#allocation5 + $0x274] sm:$0xf0]  ;;  %v3984_v35 = vor.u32 %v5549_v22, %v3983_v21 }
  0x68   : > { %2818 = vmatpush.bf16.msra.mxu3 %v4136_v62  ;;  %v5581_v27 = vld [vmem:[#allocation5 + $0x184] sm:$0xf0]  ;;  %v4295_v30 = vld [vmem:[#allocation5 + $0x2f0] sm:$0xf]  ;;  %v5627_v32 = vld [vmem:[#allocation5 + $0x2f4] sm:$0xf0]  ;;  %v4048_v36 = vor.u32 %v5565_v25, %v4047_v23  ;;  %v4232_v40 = vor.u32 %v5611_v29, %v4231_v28 }
  0x69   : > { %2780 = vmatpush.bf16.msra.mxu0 %v3936_v4  ;;  %v4359_v33 = vld [vmem:[#allocation5 + $0x370] sm:$0xf]  ;;  %v5643_v34 = vld [vmem:[#allocation5 + $0x374] sm:$0xf0]  ;;  %v4112_v39 = vor.u32 %v5581_v27, %v4111_v26  ;;  %v4296_v41 = vor.u32 %v5627_v32, %v4295_v30  ;;  %v4223_v43 = vld [vmem:[#allocation5 + $0x260] sm:$0xf] }
  0x6a   : > { %2793 = vmatpush.bf16.msra.mxu1 %v4000_v5  ;;  %v4423_v37 = vld [vmem:[#allocation5 + $0x3f0] sm:$0xf]  ;;  %v5659_v38 = vld [vmem:[#allocation5 + $0x3f4] sm:$0xf0]  ;;  %v4360_v42 = vor.u32 %v5643_v34, %v4359_v33  ;;  %v5609_v44 = vld [vmem:[#allocation5 + $0x264] sm:$0xf0] }
  0x6b   : > { %2806 = vmatpush.bf16.msra.mxu2 %v4064_v6  ;;  %v4287_v45 = vld [vmem:[#allocation5 + $0x2e0] sm:$0xf]  ;;  %v4424_v46 = vor.u32 %v5659_v38, %v4423_v37  ;;  %v5625_v47 = vld [vmem:[#allocation5 + $0x2e4] sm:$0xf0]  ;;  %v4224_v52 = vor.u32 %v5609_v44, %v4223_v43  ;;  %v4215_v53 = vld [vmem:[#allocation5 + $0x250] sm:$0xf] }
  0x6c   : > { %2819 = vmatpush.bf16.msra.mxu3 %v4128_v10  ;;  %v4351_v48 = vld [vmem:[#allocation5 + $0x360] sm:$0xf]  ;;  %v5641_v49 = vld [vmem:[#allocation5 + $0x364] sm:$0xf0]  ;;  %v4288_v54 = vor.u32 %v5625_v47, %v4287_v45  ;;  %v5607_v56 = vld [vmem:[#allocation5 + $0x254] sm:$0xf0] }
  0x6d   : > { %2781 = vmatpush.bf16.msra.mxu0 %v3928_v16  ;;  %v4415_v50 = vld [vmem:[#allocation5 + $0x3e0] sm:$0xf]  ;;  %v5657_v51 = vld [vmem:[#allocation5 + $0x3e4] sm:$0xf0]  ;;  %v4352_v55 = vor.u32 %v5641_v49, %v4351_v48  ;;  %v4279_v57 = vld [vmem:[#allocation5 + $0x2d0] sm:$0xf]  ;;  %v4216_v2 = vor.u32 %v5607_v56, %v4215_v53 }
  0x6e   : > { %2794 = vmatpush.bf16.msra.mxu1 %v3992_v19  ;;  %v462_v58 = vld [vmem:[%s6589_s1 + $0x10] sm:$0xff]  ;;  %v4416_v59 = vor.u32 %v5657_v51, %v4415_v50  ;;  %v5623_v60 = vld [vmem:[#allocation5 + $0x2d4] sm:$0xf0]  ;;  %v4207_v3 = vld [vmem:[#allocation5 + $0x240] sm:$0xf]  ;;  %vm2768_vm0 = vcmask 1043456  }
  0x6f   : > { %2807 = vmatpush.bf16.msra.mxu2 %v4056_v20  ;;  %v4343_v61 = vld [vmem:[#allocation5 + $0x350] sm:$0xf]  ;;  %v5639_v62 = vld [vmem:[#allocation5 + $0x354] sm:$0xf0]  ;;  %v6612_v63 = vpack.c.bf16 %v462_v58, %v462_v58  ;;  %v5605_v4 = vld [vmem:[#allocation5 + $0x244] sm:$0xf0]  ;;  %v4280_v6 = vor.u32 %v5623_v60, %v4279_v57 }
  0x70   : > { %2820 = vmatpush.bf16.msra.mxu3 %v4120_v24  ;;  %v4407_v0 = vld [vmem:[#allocation5 + $0x3d0] sm:$0xf]  ;;  %v5655_v1 = vld [vmem:[#allocation5 + $0x3d4] sm:$0xf0]  ;;  %v460_v5 = vld [vmem:[%s6589_s1] sm:$0xff]  ;;  %v4344_v7 = vor.u32 %v5639_v62, %v4343_v61  ;;  %v4208_v20 = vor.u32 %v5605_v4, %v4207_v3  ;;  %vm2764_vm1 = vcmask 457728  }
  0x71   : > { %2782 = vmatpush.bf16.msra.mxu0 %v3920_v31  ;;  %v4271_v8 = vld [vmem:[#allocation5 + $0x2c0] sm:$0xf]  ;;  %v6616_v9 = vpack.c.bf16 %v460_v5, %v460_v5  ;;  %v463_v10 = vld [vmem:[%s6589_s1 + $0x18] sm:$0xff]  ;;  %v461_v11 = vld [vmem:[%s6589_s1 + $0x8] sm:$0xff]  ;;  %v4408_v12 = vor.u32 %v5655_v1, %v4407_v0  ;;  %vm3690_vm6 = vcmask 523264   ;;  %s5529_s2 = sshll.u32 %s6476_s16, 3 }
  0x72   : > { %2795 = vmatpush.bf16.msra.mxu1 %v3984_v35  ;;  %v5621_v13 = vld [vmem:[#allocation5 + $0x2c4] sm:$0xf0]  ;;  %v4335_v14 = vld [vmem:[#allocation5 + $0x340] sm:$0xf]  ;;  %v6620_v16 = vpack.c.bf16 %v463_v10, %v463_v10  ;;  %v6622_v17 = vpack.c.bf16 %v461_v11, %v461_v11  ;;  %v4199_v23 = vld [vmem:[#allocation5 + $0x230] sm:$0xf]  ;;  %s3755_s17 = scalar_lea.hbm %s6825_s9, %s5529_s2 }
  0x73   : > { %2808 = vmatpush.bf16.msra.mxu2 %v4048_v36  ;;  %v5637_v15 = vld [vmem:[#allocation5 + $0x344] sm:$0xf0]  ;;  %v4399_v18 = vld [vmem:[#allocation5 + $0x3c0] sm:$0xf]  ;;  %v4272_v21 = vor.u32 %v5621_v13, %v4271_v8  ;;  %v5603_v24 = vld [vmem:[#allocation5 + $0x234] sm:$0xf0] }
  0x74   : > { %2821 = vmatpush.bf16.msra.mxu3 %v4112_v39  ;;  %v5653_v19 = vld [vmem:[#allocation5 + $0x3c4] sm:$0xf0]  ;;  %2783 = vmatmul.bf16.vlgmr.msra.gmra.mxu0 %v6616_v9  ;;  %v4336_v22 = vor.u32 %v5637_v15, %v4335_v14  ;;  %v4263_v25 = vld [vmem:[#allocation5 + $0x2b0] sm:$0xf]  ;;  %v5619_v27 = vld [vmem:[#allocation5 + $0x2b4] sm:$0xf0]  ;;  %v4200_v32 = vor.u32 %v5603_v24, %v4199_v23 }
  0x75   : > { %2827 = vmatpush.bf16.msrb.mxu0 %v4232_v40  ;;  %v4400_v26 = vor.u32 %v5653_v19, %v4399_v18  ;;  %v4327_v28 = vld [vmem:[#allocation5 + $0x330] sm:$0xf]  ;;  %v5635_v29 = vld [vmem:[#allocation5 + $0x334] sm:$0xf0]  ;;  %2796 = vmatmul.bf16.vlgmr.msra.gmra.mxu1 %v6622_v17  ;;  %v4264_v33 = vor.u32 %v5619_v27, %v4263_v25  ;;  %v4191_v35 = vld [vmem:[#allocation5 + $0x220] sm:$0xf] }
  0x76   : > { %2840 = vmatpush.bf16.msrb.mxu1 %v4296_v41  ;;  %2809 = vmatmul.bf16.vlgmr.msra.gmra.mxu2 %v6612_v63  ;;  %v4391_v30 = vld [vmem:[#allocation5 + $0x3b0] sm:$0xf]  ;;  %v5651_v31 = vld [vmem:[#allocation5 + $0x3b4] sm:$0xf0]  ;;  %v4328_v34 = vor.u32 %v5635_v29, %v4327_v28  ;;  %v5601_v36 = vld [vmem:[#allocation5 + $0x224] sm:$0xf0] }
  0x77   : > { %2853 = vmatpush.bf16.msrb.mxu2 %v4360_v42  ;;  %2822 = vmatmul.bf16.vlgmr.msra.gmra.mxu3 %v6620_v16  ;;  %v4255_v37 = vld [vmem:[#allocation5 + $0x2a0] sm:$0xf]  ;;  %v4392_v38 = vor.u32 %v5651_v31, %v4391_v30  ;;  %v5617_v39 = vld [vmem:[#allocation5 + $0x2a4] sm:$0xf0]  ;;  %v4192_v44 = vor.u32 %v5601_v36, %v4191_v35  ;;  %v4183_v47 = vld [vmem:[#allocation5 + $0x210] sm:$0xf] }
  0x78   : > { %2866 = vmatpush.bf16.msrb.mxu3 %v4424_v46  ;;  %v4319_v40 = vld [vmem:[#allocation5 + $0x320] sm:$0xf]  ;;  %v5633_v41 = vld [vmem:[#allocation5 + $0x324] sm:$0xf0]  ;;  %v4256_v45 = vor.u32 %v5617_v39, %v4255_v37  ;;  %v5599_v48 = vld [vmem:[#allocation5 + $0x214] sm:$0xf0] }
  0x79   : > { %2828 = vmatpush.bf16.msrb.mxu0 %v4224_v52  ;;  %v4383_v42 = vld [vmem:[#allocation5 + $0x3a0] sm:$0xf]  ;;  %v5649_v43 = vld [vmem:[#allocation5 + $0x3a4] sm:$0xf0]  ;;  %v4320_v46 = vor.u32 %v5633_v41, %v4319_v40  ;;  %v4247_v49 = vld [vmem:[#allocation5 + $0x290] sm:$0xf]  ;;  %v4184_v56 = vor.u32 %v5599_v48, %v4183_v47 }
  0x7a   : > { %2841 = vmatpush.bf16.msrb.mxu1 %v4288_v54  ;;  %v4384_v50 = vor.u32 %v5649_v43, %v4383_v42  ;;  %v5615_v51 = vld [vmem:[#allocation5 + $0x294] sm:$0xf0]  ;;  %v4311_v52 = vld [vmem:[#allocation5 + $0x310] sm:$0xf]  ;;  %v4175_v57 = vld [vmem:[#allocation5 + $0x200] sm:$0xf] }
  0x7b   : > { %2854 = vmatpush.bf16.msrb.mxu2 %v4352_v55  ;;  %v5631_v53 = vld [vmem:[#allocation5 + $0x314] sm:$0xf0]  ;;  %v4375_v54 = vld [vmem:[#allocation5 + $0x390] sm:$0xf]  ;;  %v5597_v58 = vld [vmem:[#allocation5 + $0x204] sm:$0xf0] }
  0x7c   : > { %2867 = vmatpush.bf16.msrb.mxu3 %v4416_v59  ;;  %v5647_v55 = vld [vmem:[#allocation5 + $0x394] sm:$0xf0]  ;;  %v4248_v59 = vor.u32 %v5615_v51, %v4247_v49  ;;  %v4312_v60 = vor.u32 %v5631_v53, %v4311_v52  ;;  %v4239_v61 = vld [vmem:[#allocation5 + $0x280] sm:$0xf]  ;;  %v5613_v62 = vld [vmem:[#allocation5 + $0x284] sm:$0xf0]  ;;  %v4176_v8 = vor.u32 %v5597_v58, %v4175_v57 }
  0x7d   : > { %2829 = vmatpush.bf16.msrb.mxu0 %v4216_v2  ;;  %v4303_v0 = vld [vmem:[#allocation5 + $0x300] sm:$0xf]  ;;  %v4376_v1 = vor.u32 %v5647_v55, %v4375_v54  ;;  %v5629_v2 = vld [vmem:[#allocation5 + $0x304] sm:$0xf0]  ;;  %v4487_v5 = vld [vmem:[#allocation5 + $0x470] sm:$0xf]  ;;  %v4240_v13 = vor.u32 %v5613_v62, %v4239_v61 }
  0x7e   : > { %2842 = vmatpush.bf16.msrb.mxu1 %v4280_v6  ;;  %v4367_v3 = vld [vmem:[#allocation5 + $0x380] sm:$0xf]  ;;  %v5645_v4 = vld [vmem:[#allocation5 + $0x384] sm:$0xf0]  ;;  %v5675_v6 = vld [vmem:[#allocation5 + $0x474] sm:$0xf0]  ;;  %v4304_v14 = vor.u32 %v5629_v2, %v4303_v0 }
  0x7f   : > { %2855 = vmatpush.bf16.msrb.mxu2 %v4344_v7  ;;  %v4551_v7 = vld [vmem:[#allocation5 + $0x4f0] sm:$0xf]  ;;  %v5691_v10 = vld [vmem:[#allocation5 + $0x4f4] sm:$0xf0]  ;;  %v464_v23 = vld [vmem:[%s6589_s1 + $0x20] sm:$0xff]  ;;  %s3759_s26 = sshll.u32 %s3755_s17, 4  ;;  %s3760_s26 = int_to_ptr.hbm [resolvable:$true] %s3759_s26 }
  0x80   : > { %2868 = vmatpush.bf16.msrb.mxu3 %v4408_v12  ;;  %v4615_v11 = vld [vmem:[#allocation5 + $0x570] sm:$0xf]  ;;  %v5707_v12 = vld [vmem:[#allocation5 + $0x574] sm:$0xf0]  ;;  %v4552_v25 = vor.u32 %v5691_v10, %v4551_v7  ;;  %v5673_v27 = vld [vmem:[#allocation5 + $0x464] sm:$0xf0]  ;;  %v6633_v37 = vpack.c.bf16 %v464_v23, %v464_v23 }
  0x81   : > { %2830 = vmatpush.bf16.msrb.mxu0 %v4208_v20  ;;  %v4679_v15 = vld [vmem:[#allocation5 + $0x5f0] sm:$0xf]  ;;  %v5723_v18 = vld [vmem:[#allocation5 + $0x5f4] sm:$0xf0]  ;;  %v4368_v20 = vor.u32 %v5645_v4, %v4367_v3  ;;  %v4543_v28 = vld [vmem:[#allocation5 + $0x4e0] sm:$0xf] }
  0x82   : > { %2843 = vmatpush.bf16.msrb.mxu1 %v4272_v21  ;;  %v466_v19 = vld [vmem:[%s6589_s1 + $0x30] sm:$0xff]  ;;  %v4488_v21 = vor.u32 %v5675_v6, %v4487_v5  ;;  %v467_v24 = vld [vmem:[%s6589_s1 + $0x38] sm:$0xff]  ;;  %v465_v29 = vld [vmem:[%s6589_s1 + $0x28] sm:$0xff]  ;;  %v4680_v30 = vor.u32 %v5723_v18, %v4679_v15  ;;  %s3745_s16 = scalar_lea.sflag [#allocation4], %s6585_s20  ;;  %s6321_s27 = sshra.s32 %s3760_s26, 4  ;;  %s6322_s27 = int_to_ptr.hbm [resolvable:$true] %s6321_s27 }
  0x83   : > { %2856 = vmatpush.bf16.msrb.mxu2 %v4336_v22  ;;  %v4479_v22 = vld [vmem:[#allocation5 + $0x460] sm:$0xf]  ;;  %v5689_v31 = vld [vmem:[#allocation5 + $0x4e4] sm:$0xf0]  ;;  %v6637_v40 = vpack.c.bf16 %v465_v29, %v465_v29  ;;  %v4471_v43 = vld [vmem:[#allocation5 + $0x450] sm:$0xf]  ;;  %p6328_p13 = scmp.lt.s32.totalorder %s6322_s27, %s6825_s9 }
  0x84   : > { %2869 = vmatpush.bf16.msrb.mxu3 %v4400_v26  ;;  %v4616_v26 = vor.u32 %v5707_v12, %v4615_v11  ;;  %v4671_v35 = vld [vmem:[#allocation5 + $0x5e0] sm:$0xf]  ;;  %v5721_v36 = vld [vmem:[#allocation5 + $0x5e4] sm:$0xf0]  ;;  %v4480_v39 = vor.u32 %v5673_v27, %v4479_v22  ;;  %v4544_v41 = vor.u32 %v5689_v31, %v4543_v28  ;;  %v5687_v47 = vld [vmem:[#allocation5 + $0x4d4] sm:$0xf0] }
  0x85   : > { %2831 = vmatpush.bf16.msrb.mxu0 %v4200_v32  ;;  %v4607_v32 = vld [vmem:[#allocation5 + $0x560] sm:$0xf]  ;;  %v4599_v48 = vld [vmem:[#allocation5 + $0x550] sm:$0xf]  ;;  %v5703_v49 = vld [vmem:[#allocation5 + $0x554] sm:$0xf0] }
  0x86   : > { %2844 = vmatpush.bf16.msrb.mxu1 %v4264_v33  ;;  %v5705_v33 = vld [vmem:[#allocation5 + $0x564] sm:$0xf0]  ;;  %v5719_v51 = vld [vmem:[#allocation5 + $0x5d4] sm:$0xf0]  ;;  %v4600_v54 = vor.u32 %v5703_v49, %v4599_v48  ;;  %v4463_v55 = vld [vmem:[#allocation5 + $0x440] sm:$0xf] }
  0x87   : > { %2857 = vmatpush.bf16.msrb.mxu2 %v4328_v34  ;;  %v6631_v34 = vpack.c.bf16 %v466_v19, %v466_v19  ;;  %v4608_v42 = vor.u32 %v5705_v33, %v4607_v32  ;;  %v4527_v57 = vld [vmem:[#allocation5 + $0x4c0] sm:$0xf]  ;;  %v5701_v61 = vld [vmem:[#allocation5 + $0x544] sm:$0xf0]  ;;  %v4455_v4 = vld [vmem:[#allocation5 + $0x430] sm:$0xf] }
  0x88   : > { %2870 = vmatpush.bf16.msrb.mxu3 %v4392_v38  ;;  %v6635_v38 = vpack.c.bf16 %v467_v24, %v467_v24  ;;  %v4655_v62 = vld [vmem:[#allocation5 + $0x5c0] sm:$0xf]  ;;  %v5717_v0 = vld [vmem:[#allocation5 + $0x5c4] sm:$0xf0]  ;;  %v5667_v5 = vld [vmem:[#allocation5 + $0x434] sm:$0xf0] }
  0x89   : > { %2832 = vmatpush.bf16.msrb.mxu0 %v4192_v44  ;;  %v5671_v44 = vld [vmem:[#allocation5 + $0x454] sm:$0xf0]  ;;  %v4519_v6 = vld [vmem:[#allocation5 + $0x4b0] sm:$0xf]  ;;  %v4656_v7 = vor.u32 %v5717_v0, %v4655_v62  ;;  %v4447_v19 = vld [vmem:[#allocation5 + $0x420] sm:$0xf] }
  0x8a   : > { %2845 = vmatpush.bf16.msrb.mxu1 %v4256_v45  ;;  %v4535_v45 = vld [vmem:[#allocation5 + $0x4d0] sm:$0xf]  ;;  %v4472_v52 = vor.u32 %v5671_v44, %v4471_v43  ;;  %v5699_v11 = vld [vmem:[#allocation5 + $0x534] sm:$0xf0]  ;;  %v5681_v23 = vld [vmem:[#allocation5 + $0x4a4] sm:$0xf0] }
  0x8b   : > { %2858 = vmatpush.bf16.msrb.mxu2 %v4320_v46  ;;  %v4672_v46 = vor.u32 %v5721_v36, %v4671_v35  ;;  %v4536_v53 = vor.u32 %v5687_v47, %v4535_v45  ;;  %v4583_v10 = vld [vmem:[#allocation5 + $0x530] sm:$0xf]  ;;  %v4575_v24 = vld [vmem:[#allocation5 + $0x520] sm:$0xf]  ;;  %v5713_v27 = vld [vmem:[#allocation5 + $0x5a4] sm:$0xf0] }
  0x8c   : > { %2871 = vmatpush.bf16.msrb.mxu3 %v4384_v50  ;;  %v4663_v50 = vld [vmem:[#allocation5 + $0x5d0] sm:$0xf]  ;;  %v4584_v18 = vor.u32 %v5699_v11, %v4583_v10  ;;  %v5663_v32 = vld [vmem:[#allocation5 + $0x414] sm:$0xf0]  ;;  %v4431_v44 = vld [vmem:[#allocation5 + $0x400] sm:$0xf] }
  0x8d   : > { %2833 = vmatpush.bf16.msrb.mxu0 %v4184_v56  ;;  %v5669_v56 = vld [vmem:[#allocation5 + $0x444] sm:$0xf0]  ;;  %v4664_v58 = vor.u32 %v5719_v51, %v4663_v50  ;;  %v4647_v12 = vld [vmem:[#allocation5 + $0x5b0] sm:$0xf]  ;;  %v5679_v36 = vld [vmem:[#allocation5 + $0x494] sm:$0xf0] }
  0x8e   : > { %2846 = vmatpush.bf16.msrb.mxu1 %v4248_v59  ;;  %v5685_v59 = vld [vmem:[#allocation5 + $0x4c4] sm:$0xf0]  ;;  %v4439_v31 = vld [vmem:[#allocation5 + $0x410] sm:$0xf]  ;;  %v5711_v43 = vld [vmem:[#allocation5 + $0x594] sm:$0xf0] }
  0x8f   : > { %2859 = vmatpush.bf16.msrb.mxu2 %v4312_v60  ;;  %v4591_v60 = vld [vmem:[#allocation5 + $0x540] sm:$0xf]  ;;  %v4528_v2 = vor.u32 %v5685_v59, %v4527_v57  ;;  %v4503_v33 = vld [vmem:[#allocation5 + $0x490] sm:$0xf]  ;;  %v4440_v45 = vor.u32 %v5663_v32, %v4439_v31  ;;  %v5677_v48 = vld [vmem:[#allocation5 + $0x484] sm:$0xf0] }
  0x90   : > { %2872 = vmatpush.bf16.msrb.mxu3 %v4376_v1  ;;  %v4464_v1 = vor.u32 %v5669_v56, %v4463_v55  ;;  %v4592_v3 = vor.u32 %v5701_v61, %v4591_v60  ;;  %v4495_v47 = vld [vmem:[#allocation5 + $0x480] sm:$0xf]  ;;  %v4504_v49 = vor.u32 %v5679_v36, %v4503_v33  ;;  %v5709_v55 = vld [vmem:[#allocation5 + $0x584] sm:$0xf0]  ;;  %v4743_v56 = vld [vmem:[#allocation5 + $0x670] sm:$0xf] }
  0x91   : > { %2834 = vmatpush.bf16.msrb.mxu0 %v4176_v8  ;;  %v5683_v8 = vld [vmem:[#allocation5 + $0x4b4] sm:$0xf0]  ;;  %v4559_v51 = vld [vmem:[#allocation5 + $0x500] sm:$0xf]  ;;  %v4871_v61 = vld [vmem:[#allocation5 + $0x770] sm:$0xf]  ;;  %v4496_v0 = vor.u32 %v5677_v48, %v4495_v47 }
  0x92   : > { %2847 = vmatpush.bf16.msrb.mxu1 %v4240_v13  ;;  %v5715_v13 = vld [vmem:[#allocation5 + $0x5b4] sm:$0xf0]  ;;  %v4520_v15 = vor.u32 %v5683_v8, %v4519_v6  ;;  %v469_v8 = vld [vmem:[%s6589_s1 + $0x48] sm:$0xff]  ;;  %v4727_v31 = vld [vmem:[#allocation5 + $0x650] sm:$0xf]  ;;  %s6323_s22 = scalar_lea.hbm %s6322_s27, 8 }
  0x93   : > { %2860 = vmatpush.bf16.msrb.mxu2 %v4304_v14  ;;  %v4456_v14 = vor.u32 %v5667_v5, %v4455_v4  ;;  %v4648_v22 = vor.u32 %v5715_v13, %v4647_v12  ;;  %v5739_v57 = vld [vmem:[#allocation5 + $0x674] sm:$0xf0]  ;;  %v468_v4 = vld [vmem:[%s6589_s1 + $0x40] sm:$0xff]  ;;  %v4791_v33 = vld [vmem:[#allocation5 + $0x6d0] sm:$0xf]  ;;  %p6324_p1 = scmp.ne.s32.totalorder %s6322_s27, %s6323_s22  ;;  %s6327_s24 = scalar_lea.hbm %s6825_s9, 16 }
  0x94   : > { %2873 = vmatpush.bf16.msrb.mxu3 %v4368_v20  ;;  %2835 = vmatmul.bf16.vlgmr.msrb.gmra.mxu0 %v6633_v37  ;;  %v5665_v20 = vld [vmem:[#allocation5 + $0x424] sm:$0xf0]  ;;  %v5755_v59 = vld [vmem:[#allocation5 + $0x6f4] sm:$0xf0]  ;;  %v4744_v6 = vor.u32 %v5739_v57, %v4743_v56  ;;  %v4735_v13 = vld [vmem:[#allocation5 + $0x660] sm:$0xf]  ;;  %p6329_p8 = scmp.lt.s32.totalorder %s6327_s24, %s6323_s22 }
  0x95   : > { %2879 = vmatpush.bf16.msra.mxu0 %v4488_v21  ;;  %2848 = vmatmul.bf16.vlgmr.msrb.gmra.mxu1 %v6637_v40  ;;  %v4511_v21 = vld [vmem:[#allocation5 + $0x4a0] sm:$0xf]  ;;  %v4448_v28 = vor.u32 %v5665_v20, %v4447_v19  ;;  %v5771_v62 = vld [vmem:[#allocation5 + $0x774] sm:$0xf0]  ;;  %v6647_v19 = vpack.c.bf16 %v468_v4, %v468_v4  ;;  %v5753_v20 = vld [vmem:[#allocation5 + $0x6e4] sm:$0xf0]  ;;  %p6325_p3 = pnand %p6324_p1, %p6554_p0 }
  0x96   : > { %2892 = vmatpush.bf16.msra.mxu1 %v4552_v25  ;;  %2861 = vmatmul.bf16.vlgmr.msrb.gmra.mxu2 %v6631_v34  ;;  %v5697_v25 = vld [vmem:[#allocation5 + $0x524] sm:$0xf0]  ;;  %v4512_v29 = vor.u32 %v5681_v23, %v4511_v21  ;;  %v471_v10 = vld [vmem:[%s6589_s1 + $0x58] sm:$0xff]  ;;  %v4872_v12 = vor.u32 %v5771_v62, %v4871_v61  ;;  %v4863_v21 = vld [vmem:[#allocation5 + $0x760] sm:$0xf]  ;;  %p6330_p7 = por %p6329_p8, %p6328_p13 }
  0x97   : > { %2905 = vmatpush.bf16.msra.mxu2 %v4616_v26  ;;  %2874 = vmatmul.bf16.vlgmr.msrb.gmra.mxu3 %v6635_v38  ;;  %v4639_v26 = vld [vmem:[#allocation5 + $0x5a0] sm:$0xf]  ;;  %v5735_v32 = vld [vmem:[#allocation5 + $0x654] sm:$0xf0]  ;;  %v5733_v48 = vld [vmem:[#allocation5 + $0x644] sm:$0xf0]  ;;  %p6326_p5 = pneg %p6325_p3 }
  0x98   : > { %2918 = vmatpush.bf16.msra.mxu3 %v4680_v30  ;;  %v4576_v30 = vor.u32 %v5697_v25, %v4575_v24  ;;  %v4640_v35 = vor.u32 %v5713_v27, %v4639_v26  ;;  %v6651_v24 = vpack.c.bf16 %v469_v8, %v469_v8  ;;  %v4927_v25 = vld [vmem:[#allocation5 + $0x7e0] sm:$0xf]  ;;  %v5785_v26 = vld [vmem:[#allocation5 + $0x7e4] sm:$0xf0]  ;;  %v6653_v27 = vpack.c.bf16 %v471_v10, %v471_v10  ;;  %v5751_v36 = vld [vmem:[#allocation5 + $0x6d4] sm:$0xf0] }
  0x99   : > { %2880 = vmatpush.bf16.msra.mxu0 %v4480_v39  ;;  %v4567_v39 = vld [vmem:[#allocation5 + $0x510] sm:$0xf]  ;;  %v4719_v47 = vld [vmem:[#allocation5 + $0x640] sm:$0xf]  ;;  %v5779_v4 = vld [vmem:[#allocation5 + $0x7b4] sm:$0xf0]  ;;  %p6331_p9 = pnand %p6330_p7, %p6326_p5 }
  0x9a   : > { %2893 = vmatpush.bf16.msra.mxu1 %v4544_v41  ;;  %v5695_v41 = vld [vmem:[#allocation5 + $0x514] sm:$0xf0]  ;;  %v4720_v56 = vor.u32 %v5733_v48, %v4719_v47  ;;  %v4775_v61 = vld [vmem:[#allocation5 + $0x6b0] sm:$0xf]  ;;  %v4703_v8 = vld [vmem:[#allocation5 + $0x620] sm:$0xf] }
  0x9b   : > { %2906 = vmatpush.bf16.msra.mxu2 %v4608_v42  ;;  %v4631_v42 = vld [vmem:[#allocation5 + $0x590] sm:$0xf]  ;;  %v4568_v50 = vor.u32 %v5695_v41, %v4567_v39  ;;  %v5767_v41 = vld [vmem:[#allocation5 + $0x754] sm:$0xf0]  ;;  %v5729_v10 = vld [vmem:[#allocation5 + $0x624] sm:$0xf0] }
  0x9c   : > { %2919 = vmatpush.bf16.msra.mxu3 %v4672_v46  ;;  %v5661_v46 = vld [vmem:[#allocation5 + $0x404] sm:$0xf0]  ;;  %v4855_v39 = vld [vmem:[#allocation5 + $0x750] sm:$0xf]  ;;  %v4815_v47 = vld [vmem:[#allocation5 + $0x700] sm:$0xf] }
  0x9d   : > { %2881 = vmatpush.bf16.msra.mxu0 %v4472_v52  ;;  %v5693_v52 = vld [vmem:[#allocation5 + $0x504] sm:$0xf0]  ;;  %v4432_v60 = vor.u32 %v5661_v46, %v4431_v44  ;;  %v4728_v44 = vor.u32 %v5735_v32, %v4727_v31  ;;  %v4856_v46 = vor.u32 %v5767_v41, %v4855_v39  ;;  %v5743_v31 = vld [vmem:[#allocation5 + $0x694] sm:$0xf0]  ;;  %v4823_v32 = vld [vmem:[#allocation5 + $0x710] sm:$0xf] }
  0x9e   : > { %2894 = vmatpush.bf16.msra.mxu1 %v4536_v53  ;;  %v4623_v53 = vld [vmem:[#allocation5 + $0x580] sm:$0xf] }
  0x9f   : > { %2907 = vmatpush.bf16.msra.mxu2 %v4600_v54  ;;  %v4632_v54 = vor.u32 %v5711_v43, %v4631_v42  ;;  %v4624_v5 = vor.u32 %v5709_v55, %v4623_v53  ;;  %v4919_v42 = vld [vmem:[#allocation5 + $0x7d0] sm:$0xf]  ;;  %v5783_v43 = vld [vmem:[#allocation5 + $0x7d4] sm:$0xf0]  ;;  %v5765_v53 = vld [vmem:[#allocation5 + $0x744] sm:$0xf0] }
  0xa0   : > { %2920 = vmatpush.bf16.msra.mxu3 %v4664_v58  ;;  %v4807_v58 = vld [vmem:[#allocation5 + $0x6f0] sm:$0xf]  ;;  %v5781_v55 = vld [vmem:[#allocation5 + $0x7c4] sm:$0xf0]  ;;  %v4687_v41 = vld [vmem:[#allocation5 + $0x600] sm:$0xf] }
  0xa1   : > { %2882 = vmatpush.bf16.msra.mxu0 %v4464_v1  ;;  %v4560_v1 = vor.u32 %v5693_v52, %v4559_v51  ;;  %v4808_v11 = vor.u32 %v5755_v59, %v4807_v58  ;;  %v5749_v51 = vld [vmem:[#allocation5 + $0x6c4] sm:$0xf0]  ;;  %v4847_v52 = vld [vmem:[#allocation5 + $0x740] sm:$0xf]  ;;  %v4711_v59 = vld [vmem:[#allocation5 + $0x630] sm:$0xf] }
  0xa2   : > { %2895 = vmatpush.bf16.msra.mxu1 %v4528_v2  ;;  %v4935_v2 = vld [vmem:[#allocation5 + $0x7f0] sm:$0xf]  ;;  %v4848_v58 = vor.u32 %v5765_v53, %v4847_v52  ;;  %v5803_v53 = vld [vmem:[#allocation5 + $0x874] sm:$0xf0] }
  0xa3   : > { %2908 = vmatpush.bf16.msra.mxu2 %v4592_v3  ;;  %v5787_v3 = vld [vmem:[#allocation5 + $0x7f4] sm:$0xf0]  ;;  %v4999_v52 = vld [vmem:[#allocation5 + $0x870] sm:$0xf] }
  0xa4   : > { %2921 = vmatpush.bf16.msra.mxu3 %v4656_v7  ;;  %v470_v7 = vld [vmem:[%s6589_s1 + $0x50] sm:$0xff] }
  0xa5   : > { %2883 = vmatpush.bf16.msra.mxu0 %v4456_v14  ;;  %v5737_v14 = vld [vmem:[#allocation5 + $0x664] sm:$0xf0]  ;;  %v6649_v23 = vpack.c.bf16 %v470_v7, %v470_v7 }
  0xa6   : > { %2896 = vmatpush.bf16.msra.mxu1 %v4520_v15  ;;  %v4799_v15 = vld [vmem:[#allocation5 + $0x6e0] sm:$0xf] }
  0xa7   : > { %2909 = vmatpush.bf16.msra.mxu2 %v4584_v18  ;;  %v4936_v18 = vor.u32 %v5787_v3, %v4935_v2  ;;  %v5763_v2 = vld [vmem:[#allocation5 + $0x734] sm:$0xf0]  ;;  %v4903_v3 = vld [vmem:[#allocation5 + $0x7b0] sm:$0xf] }
  0xa8   : > { %2922 = vmatpush.bf16.msra.mxu3 %v4648_v22  ;;  %v5769_v22 = vld [vmem:[#allocation5 + $0x764] sm:$0xf0] }
  0xa9   : > { %2884 = vmatpush.bf16.msra.mxu0 %v4448_v28  ;;  %v4736_v28 = vor.u32 %v5737_v14, %v4735_v13  ;;  %v5745_v13 = vld [vmem:[#allocation5 + $0x6a4] sm:$0xf0]  ;;  %v4831_v14 = vld [vmem:[#allocation5 + $0x720] sm:$0xf] }
  0xaa   : > { %2897 = vmatpush.bf16.msra.mxu1 %v4512_v29  ;;  %v4800_v29 = vor.u32 %v5753_v20, %v4799_v15  ;;  %v5761_v15 = vld [vmem:[#allocation5 + $0x724] sm:$0xf0] }
  0xab   : > { %2910 = vmatpush.bf16.msra.mxu2 %v4576_v30  ;;  %v4864_v30 = vor.u32 %v5769_v22, %v4863_v21  ;;  %v5777_v20 = vld [vmem:[#allocation5 + $0x7a4] sm:$0xf0]  ;;  %v4704_v21 = vor.u32 %v5729_v10, %v4703_v8  ;;  %v4991_v8 = vld [vmem:[#allocation5 + $0x860] sm:$0xf] }
  0xac   : > { %2923 = vmatpush.bf16.msra.mxu3 %v4640_v35  ;;  %v4928_v35 = vor.u32 %v5785_v26, %v4927_v25  ;;  %v4832_v25 = vor.u32 %v5761_v15, %v4831_v14  ;;  %v4695_v26 = vld [vmem:[#allocation5 + $0x610] sm:$0xf]  ;;  %v5801_v10 = vld [vmem:[#allocation5 + $0x864] sm:$0xf0]  ;;  %v5119_v15 = vld [vmem:[#allocation5 + $0x960] sm:$0xf] }
  0xad   : > { %2885 = vmatpush.bf16.msra.mxu0 %v4440_v45  ;;  %v4792_v45 = vor.u32 %v5751_v36, %v4791_v33  ;;  %v5759_v33 = vld [vmem:[#allocation5 + $0x714] sm:$0xf0]  ;;  %v5817_v14 = vld [vmem:[#allocation5 + $0x8e4] sm:$0xf0] }
  0xae   : > { %2898 = vmatpush.bf16.msra.mxu1 %v4504_v49  ;;  %v4783_v49 = vld [vmem:[#allocation5 + $0x6c0] sm:$0xf]  ;;  %v5775_v36 = vld [vmem:[#allocation5 + $0x794] sm:$0xf0] }
  0xaf   : > { %2911 = vmatpush.bf16.msra.mxu2 %v4568_v50  ;;  %v4920_v50 = vor.u32 %v5783_v43, %v4919_v42  ;;  %v4784_v57 = vor.u32 %v5749_v51, %v4783_v49  ;;  %v5725_v42 = vld [vmem:[#allocation5 + $0x604] sm:$0xf0] }
  0xb0   : > { %2924 = vmatpush.bf16.msra.mxu3 %v4632_v54  ;;  %v4911_v54 = vld [vmem:[#allocation5 + $0x7c0] sm:$0xf]  ;;  %v5757_v49 = vld [vmem:[#allocation5 + $0x704] sm:$0xf0] }
  0xb1   : > { %2886 = vmatpush.bf16.msra.mxu0 %v4432_v60  ;;  %v5731_v60 = vld [vmem:[#allocation5 + $0x634] sm:$0xf0]  ;;  %v4912_v62 = vor.u32 %v5781_v55, %v4911_v54  ;;  %v5773_v51 = vld [vmem:[#allocation5 + $0x784] sm:$0xf0]  ;;  %v5063_v54 = vld [vmem:[#allocation5 + $0x8f0] sm:$0xf]  ;;  %v4688_v55 = vor.u32 %v5725_v42, %v4687_v41 }
  0xb2   : > { %2899 = vmatpush.bf16.msra.mxu1 %v4496_v0  ;;  %v5747_v0 = vld [vmem:[#allocation5 + $0x6b4] sm:$0xf0]  ;;  %v5175_v42 = vld [vmem:[#allocation5 + $0x9d0] sm:$0xf] }
  0xb3   : > { %2912 = vmatpush.bf16.msra.mxu2 %v4560_v1  ;;  %v4839_v1 = vld [vmem:[#allocation5 + $0x730] sm:$0xf]  ;;  %v5831_v41 = vld [vmem:[#allocation5 + $0x954] sm:$0xf0] }
  0xb4   : > { %2925 = vmatpush.bf16.msra.mxu3 %v4624_v5  ;;  %2887 = vmatmul.bf16.vlgmr.msra.gmra.mxu0 %v6647_v19  ;;  %v4712_v5 = vor.u32 %v5731_v60, %v4711_v59  ;;  %v4840_v7 = vor.u32 %v5763_v2, %v4839_v1  ;;  %v4816_v60 = vor.u32 %v5757_v49, %v4815_v47  ;;  %v4975_v47 = vld [vmem:[#allocation5 + $0x840] sm:$0xf] }
  0xb5   : > { %2931 = vmatpush.bf16.msrb.mxu0 %v4744_v6  ;;  %2900 = vmatmul.bf16.vlgmr.msra.gmra.mxu1 %v6651_v24  ;;  %v4776_v6 = vor.u32 %v5747_v0, %v4775_v61  ;;  %v5191_v61 = vld [vmem:[#allocation5 + $0x9f0] sm:$0xf]  ;;  %v472_v0 = vld [vmem:[%s6589_s1 + $0x60] sm:$0xff]  ;;  %v5000_v2 = vor.u32 %v5803_v53, %v4999_v52  ;;  %v5829_v53 = vld [vmem:[#allocation5 + $0x944] sm:$0xf0] }
  0xb6   : > { %2944 = vmatpush.bf16.msrb.mxu1 %v4808_v11  ;;  %2913 = vmatmul.bf16.vlgmr.msra.gmra.mxu2 %v6649_v23  ;;  %v4767_v11 = vld [vmem:[#allocation5 + $0x6a0] sm:$0xf] }
  0xb7   : > { %2957 = vmatpush.bf16.msrb.mxu2 %v4872_v12  ;;  %2926 = vmatmul.bf16.vlgmr.msra.gmra.mxu3 %v6653_v27  ;;  %v4904_v12 = vor.u32 %v5779_v4, %v4903_v3  ;;  %v4768_v22 = vor.u32 %v5745_v13, %v4767_v11  ;;  %v474_v3 = vld [vmem:[%s6589_s1 + $0x70] sm:$0xff]  ;;  %v473_v4 = vld [vmem:[%s6589_s1 + $0x68] sm:$0xff]  ;;  %v5055_v11 = vld [vmem:[#allocation5 + $0x8e0] sm:$0xf]  ;;  %v6663_v13 = vpack.c.bf16 %v472_v0, %v472_v0 }
  0xb8   : > { %2970 = vmatpush.bf16.msrb.mxu3 %v4936_v18  ;;  %v4895_v18 = vld [vmem:[#allocation5 + $0x7a0] sm:$0xf]  ;;  %v5811_v0 = vld [vmem:[#allocation5 + $0x8b4] sm:$0xf0] }
  0xb9   : > { %2932 = vmatpush.bf16.msrb.mxu0 %v4736_v28  ;;  %v5727_v28 = vld [vmem:[#allocation5 + $0x614] sm:$0xf0]  ;;  %v5039_v49 = vld [vmem:[#allocation5 + $0x8c0] sm:$0xf] }
  0xba   : > { %2945 = vmatpush.bf16.msrb.mxu1 %v4800_v29  ;;  %v4759_v29 = vld [vmem:[#allocation5 + $0x690] sm:$0xf]  ;;  %v4696_v39 = vor.u32 %v5727_v28, %v4695_v26  ;;  %v4992_v28 = vor.u32 %v5801_v10, %v4991_v8  ;;  %v5103_v52 = vld [vmem:[#allocation5 + $0x940] sm:$0xf]  ;;  %v5793_v10 = vld [vmem:[#allocation5 + $0x824] sm:$0xf0] }
  0xbb   : > { %2958 = vmatpush.bf16.msrb.mxu2 %v4864_v30  ;;  %v4896_v30 = vor.u32 %v5777_v20, %v4895_v18  ;;  %v4760_v43 = vor.u32 %v5743_v31, %v4759_v29  ;;  %v5833_v18 = vld [vmem:[#allocation5 + $0x964] sm:$0xf0]  ;;  %v6665_v20 = vpack.c.bf16 %v474_v3, %v474_v3  ;;  %v5056_v29 = vor.u32 %v5817_v14, %v5055_v11  ;;  %v4983_v31 = vld [vmem:[#allocation5 + $0x850] sm:$0xf]  ;;  %v4959_v8 = vld [vmem:[#allocation5 + $0x820] sm:$0xf] }
  0xbc   : > { %2971 = vmatpush.bf16.msrb.mxu3 %v4928_v35  ;;  %v4887_v35 = vld [vmem:[#allocation5 + $0x790] sm:$0xf]  ;;  %v5023_v11 = vld [vmem:[#allocation5 + $0x8a0] sm:$0xf]  ;;  %v5809_v14 = vld [vmem:[#allocation5 + $0x8a4] sm:$0xf0] }
  0xbd   : > { %2933 = vmatpush.bf16.msrb.mxu0 %v4728_v44  ;;  %v4824_v44 = vor.u32 %v5759_v33, %v4823_v32  ;;  %v4888_v48 = vor.u32 %v5775_v36, %v4887_v35  ;;  %v5799_v32 = vld [vmem:[#allocation5 + $0x854] sm:$0xf0]  ;;  %v5047_v33 = vld [vmem:[#allocation5 + $0x8d0] sm:$0xf] }
  0xbe   : > { %2946 = vmatpush.bf16.msrb.mxu1 %v4792_v45  ;;  %v4751_v45 = vld [vmem:[#allocation5 + $0x680] sm:$0xf]  ;;  %v5815_v36 = vld [vmem:[#allocation5 + $0x8d4] sm:$0xf0]  ;;  %v5159_v3 = vld [vmem:[#allocation5 + $0x9b0] sm:$0xf] }
  0xbf   : > { %2959 = vmatpush.bf16.msrb.mxu2 %v4856_v46  ;;  %v5741_v46 = vld [vmem:[#allocation5 + $0x684] sm:$0xf0] }
  0xc0   : > { %2972 = vmatpush.bf16.msrb.mxu3 %v4920_v50  ;;  %v4879_v50 = vld [vmem:[#allocation5 + $0x780] sm:$0xf]  ;;  %v4752_v59 = vor.u32 %v5741_v46, %v4751_v45  ;;  %v5048_v45 = vor.u32 %v5815_v36, %v5047_v33  ;;  %v5015_v33 = vld [vmem:[#allocation5 + $0x890] sm:$0xf] }
  0xc1   : > { %2934 = vmatpush.bf16.msrb.mxu0 %v4720_v56  ;;  %v5819_v56 = vld [vmem:[#allocation5 + $0x8f4] sm:$0xf0]  ;;  %v4880_v1 = vor.u32 %v5773_v51, %v4879_v50  ;;  %v5813_v51 = vld [vmem:[#allocation5 + $0x8c4] sm:$0xf0] }
  0xc2   : > { %2947 = vmatpush.bf16.msrb.mxu1 %v4784_v57  ;;  %v5127_v57 = vld [vmem:[#allocation5 + $0x970] sm:$0xf] }
  0xc3   : > { %2960 = vmatpush.bf16.msrb.mxu2 %v4848_v58  ;;  %v5835_v58 = vld [vmem:[#allocation5 + $0x974] sm:$0xf0] }
  0xc4   : > { %2973 = vmatpush.bf16.msrb.mxu3 %v4912_v62  ;;  %v5851_v62 = vld [vmem:[#allocation5 + $0x9f4] sm:$0xf0] }
  0xc5   : > { %2935 = vmatpush.bf16.msrb.mxu0 %v4712_v5  ;;  %v475_v5 = vld [vmem:[%s6589_s1 + $0x78] sm:$0xff] }
  0xc6   : > { %2948 = vmatpush.bf16.msrb.mxu1 %v4776_v6  ;;  %v5064_v6 = vor.u32 %v5819_v56, %v5063_v54  ;;  %v6669_v26 = vpack.c.bf16 %v475_v5, %v475_v5  ;;  %v5167_v54 = vld [vmem:[#allocation5 + $0x9c0] sm:$0xf] }
  0xc7   : > { %2961 = vmatpush.bf16.msrb.mxu2 %v4840_v7  ;;  %v5128_v7 = vor.u32 %v5835_v58, %v5127_v57  ;;  %v5040_v57 = vor.u32 %v5813_v51, %v5039_v49  ;;  %v5104_v58 = vor.u32 %v5829_v53, %v5103_v52  ;;  %v5805_v51 = vld [vmem:[#allocation5 + $0x884] sm:$0xf0]  ;;  %v5071_v52 = vld [vmem:[#allocation5 + $0x900] sm:$0xf] }
  0xc8   : > { %2974 = vmatpush.bf16.msrb.mxu3 %v4904_v12  ;;  %v5192_v12 = vor.u32 %v5851_v62, %v5191_v61  ;;  %v5031_v61 = vld [vmem:[#allocation5 + $0x8b0] sm:$0xf] }
  0xc9   : > { %2936 = vmatpush.bf16.msrb.mxu0 %v4704_v21  ;;  %v6667_v21 = vpack.c.bf16 %v473_v4, %v473_v4  ;;  %v5843_v4 = vld [vmem:[#allocation5 + $0x9b4] sm:$0xf0] }
  0xca   : > { %2949 = vmatpush.bf16.msrb.mxu1 %v4768_v22  ;;  %v5183_v22 = vld [vmem:[#allocation5 + $0x9e0] sm:$0xf] }
  0xcb   : > { %2962 = vmatpush.bf16.msrb.mxu2 %v4832_v25  ;;  %v5849_v25 = vld [vmem:[#allocation5 + $0x9e4] sm:$0xf0] }
  0xcc   : > { %2975 = vmatpush.bf16.msrb.mxu3 %v4896_v30  ;;  %v5120_v30 = vor.u32 %v5833_v18, %v5119_v15  ;;  %v5184_v35 = vor.u32 %v5849_v25, %v5183_v22  ;;  %v5087_v15 = vld [vmem:[#allocation5 + $0x920] sm:$0xf]  ;;  %v5825_v18 = vld [vmem:[#allocation5 + $0x924] sm:$0xf0] }
  0xcd   : > { %2937 = vmatpush.bf16.msrb.mxu0 %v4696_v39  ;;  %v5111_v39 = vld [vmem:[#allocation5 + $0x950] sm:$0xf]  ;;  %v5151_v22 = vld [vmem:[#allocation5 + $0x9a0] sm:$0xf]  ;;  %v5841_v25 = vld [vmem:[#allocation5 + $0x9a4] sm:$0xf0] }
  0xce   : > { %2950 = vmatpush.bf16.msrb.mxu1 %v4760_v43  ;;  %v5847_v43 = vld [vmem:[#allocation5 + $0x9d4] sm:$0xf0]  ;;  %v5112_v46 = vor.u32 %v5831_v41, %v5111_v39  ;;  %v5152_v36 = vor.u32 %v5841_v25, %v5151_v22  ;;  %v5079_v39 = vld [vmem:[#allocation5 + $0x910] sm:$0xf]  ;;  %v5311_v22 = vld [vmem:[#allocation5 + $0xae0] sm:$0xf] }
  0xcf   : > { %2963 = vmatpush.bf16.msrb.mxu2 %v4824_v44  ;;  %v4984_v44 = vor.u32 %v5799_v32, %v4983_v31  ;;  %v5176_v50 = vor.u32 %v5847_v43, %v5175_v42  ;;  %v5088_v31 = vor.u32 %v5825_v18, %v5087_v15  ;;  %v5791_v32 = vld [vmem:[#allocation5 + $0x814] sm:$0xf0]  ;;  %v882_v42 = vld [vmem:[#allocation5 + $0xbb0] sm:$0xff]  ;;  %v5247_v15 = vld [vmem:[#allocation5 + $0xa60] sm:$0xf] }
  0xd0   : > { %2976 = vmatpush.bf16.msrb.mxu3 %v4888_v48  ;;  %v5797_v48 = vld [vmem:[#allocation5 + $0x844] sm:$0xf0]  ;;  %v5823_v41 = vld [vmem:[#allocation5 + $0x914] sm:$0xf0]  ;;  %v5143_v43 = vld [vmem:[#allocation5 + $0x990] sm:$0xf]  ;;  %v2012_v53 = vunpack.c.l.b16 %v882_v42 }
  0xd1   : > { %2938 = vmatpush.bf16.msrb.mxu0 %v4688_v55  ;;  %v5845_v55 = vld [vmem:[#allocation5 + $0x9c4] sm:$0xf0]  ;;  %v4976_v56 = vor.u32 %v5797_v48, %v4975_v47  ;;  %v5080_v49 = vor.u32 %v5823_v41, %v5079_v39 }
  0xd2   : > { %2951 = vmatpush.bf16.msrb.mxu1 %v4752_v59  ;;  %v4967_v59 = vld [vmem:[#allocation5 + $0x830] sm:$0xf]  ;;  %v5168_v62 = vor.u32 %v5845_v55, %v5167_v54  ;;  %v5789_v47 = vld [vmem:[#allocation5 + $0x804] sm:$0xf0] }
  0xd3   : > { %2964 = vmatpush.bf16.msrb.mxu2 %v4816_v60  ;;  %v5795_v60 = vld [vmem:[#allocation5 + $0x834] sm:$0xf0]  ;;  %v5821_v55 = vld [vmem:[#allocation5 + $0x904] sm:$0xf0] }
  0xd4   : > { %2977 = vmatpush.bf16.msrb.mxu3 %v4880_v1  ;;  %2939 = vmatmul.bf16.vlgmr.msrb.gmra.mxu0 %v6663_v13  ;;  %v5095_v1 = vld [vmem:[#allocation5 + $0x930] sm:$0xf]  ;;  %v4968_v5 = vor.u32 %v5795_v60, %v4967_v59  ;;  %v5867_v59 = vld [vmem:[#allocation5 + $0xa74] sm:$0xf0]  ;;  %v5865_v18 = vld [vmem:[#allocation5 + $0xa64] sm:$0xf0] }
  0xd5   : > { %2983 = vmatpush.bf16.msra.mxu0 %v5000_v2  ;;  %2952 = vmatmul.bf16.vlgmr.msrb.gmra.mxu1 %v6667_v21  ;;  %v5827_v2 = vld [vmem:[#allocation5 + $0x934] sm:$0xf0]  ;;  %v5319_v60 = vld [vmem:[#allocation5 + $0xaf0] sm:$0xf]  ;;  %v5248_v41 = vor.u32 %v5865_v18, %v5247_v15 }
  0xd6   : > { %2996 = vmatpush.bf16.msra.mxu1 %v5064_v6  ;;  %2965 = vmatmul.bf16.vlgmr.msrb.gmra.mxu2 %v6665_v20  ;;  %v5032_v6 = vor.u32 %v5811_v0, %v5031_v61  ;;  %v5383_v0 = vld [vmem:[#allocation5 + $0xb70] sm:$0xf]  ;;  %v5875_v15 = vld [vmem:[#allocation5 + $0xab4] sm:$0xf0] }
  0xd7   : > { %3009 = vmatpush.bf16.msra.mxu2 %v5128_v7  ;;  %2978 = vmatmul.bf16.vlgmr.msrb.gmra.mxu3 %v6669_v26  ;;  %v5096_v7 = vor.u32 %v5827_v2, %v5095_v1  ;;  %v5899_v1 = vld [vmem:[#allocation5 + $0xb74] sm:$0xf0]  ;;  %v5351_v18 = vld [vmem:[#allocation5 + $0xb30] sm:$0xf] }
  0xd8   : > { %3022 = vmatpush.bf16.msra.mxu3 %v5192_v12  ;;  %v5160_v12 = vor.u32 %v5843_v4, %v5159_v3  ;;  %v5072_v3 = vor.u32 %v5821_v55, %v5071_v52  ;;  %v2388_v4 = vpack.c.b16 %v2012_v53, %v2012_v53  ;;  %v5903_v52 = vld [vmem:[#allocation5 + $0xb94] sm:$0xf0] }
  0xd9   : > { %2984 = vmatpush.bf16.msra.mxu0 %v4992_v28  ;;  %v4960_v28 = vor.u32 %v5793_v10, %v4959_v8  ;;  %v478_v8 = vld [vmem:[%s6589_s1 + $0x90] sm:$0xff]  ;;  %v477_v10 = vld [vmem:[%s6589_s1 + $0x88] sm:$0xff] }
  0xda   : > { %2997 = vmatpush.bf16.msra.mxu1 %v5056_v29  ;;  %v4951_v29 = vld [vmem:[#allocation5 + $0x810] sm:$0xf] }
  0xdb   : > { %3010 = vmatpush.bf16.msra.mxu2 %v5120_v30  ;;  %v5024_v30 = vor.u32 %v5809_v14, %v5023_v11  ;;  %v479_v11 = vld [vmem:[%s6589_s1 + $0x98] sm:$0xff]  ;;  %v5384_v14 = vor.u32 %v5899_v1, %v5383_v0  ;;  %v5391_v1 = vld [vmem:[#allocation5 + $0xb80] sm:$0xf] }
  0xdc   : > { %3023 = vmatpush.bf16.msra.mxu3 %v5184_v35  ;;  %v5807_v35 = vld [vmem:[#allocation5 + $0x894] sm:$0xf0]  ;;  %v6686_v39 = vpack.c.bf16 %v479_v11, %v479_v11  ;;  %v5287_v11 = vld [vmem:[#allocation5 + $0xab0] sm:$0xf] }
  0xdd   : > { %2985 = vmatpush.bf16.msra.mxu0 %v4984_v44  ;;  %v5839_v44 = vld [vmem:[#allocation5 + $0x994] sm:$0xf0]  ;;  %v5016_v48 = vor.u32 %v5807_v35, %v5015_v33  ;;  %v6684_v33 = vpack.c.bf16 %v477_v10, %v477_v10  ;;  %v5407_v35 = vld [vmem:[#allocation5 + $0xba0] sm:$0xf] }
  0xde   : > { %2998 = vmatpush.bf16.msra.mxu1 %v5048_v45  ;;  %v4952_v45 = vor.u32 %v5791_v32, %v4951_v29  ;;  %v5144_v54 = vor.u32 %v5839_v44, %v5143_v43  ;;  %v5375_v29 = vld [vmem:[#allocation5 + $0xb60] sm:$0xf]  ;;  %v6682_v32 = vpack.c.bf16 %v478_v8, %v478_v8  ;;  %v5239_v44 = vld [vmem:[#allocation5 + $0xa50] sm:$0xf]  ;;  %v883_v0 = vld [vmem:[#allocation7] sm:$0x3] }
  0xdf   : > { %3011 = vmatpush.bf16.msra.mxu2 %v5112_v46  ;;  %v4943_v46 = vld [vmem:[#allocation5 + $0x800] sm:$0xf]  ;;  %v5859_v10 = vld [vmem:[#allocation5 + $0xa34] sm:$0xf0] }
  0xe0   : > { %3024 = vmatpush.bf16.msra.mxu3 %v5176_v50  ;;  %v5007_v50 = vld [vmem:[#allocation5 + $0x880] sm:$0xf]  ;;  %v4944_v61 = vor.u32 %v5789_v47, %v4943_v46  ;;  %v5303_v46 = vld [vmem:[#allocation5 + $0xad0] sm:$0xf] }
  0xe1   : > { %2986 = vmatpush.bf16.msra.mxu0 %v4976_v56  ;;  %v5135_v56 = vld [vmem:[#allocation5 + $0x980] sm:$0xf]  ;;  %v5008_v2 = vor.u32 %v5805_v51, %v5007_v50  ;;  %v5895_v50 = vld [vmem:[#allocation5 + $0xb54] sm:$0xf0]  ;;  %v5399_v51 = vld [vmem:[#allocation5 + $0xb90] sm:$0xf] }
  0xe2   : > { %2999 = vmatpush.bf16.msra.mxu1 %v5040_v57  ;;  %v5837_v57 = vld [vmem:[#allocation5 + $0x984] sm:$0xf0] }
  0xe3   : > { %3012 = vmatpush.bf16.msra.mxu2 %v5104_v58  ;;  %v5255_v58 = vld [vmem:[#allocation5 + $0xa70] sm:$0xf] }
  0xe4   : > { %3025 = vmatpush.bf16.msra.mxu3 %v5168_v62  ;;  %v5883_v62 = vld [vmem:[#allocation5 + $0xaf4] sm:$0xf0] }
  0xe5   : > { %2987 = vmatpush.bf16.msra.mxu0 %v4968_v5  ;;  %v476_v5 = vld [vmem:[%s6589_s1 + $0x80] sm:$0xff] }
  0xe6   : > { %3000 = vmatpush.bf16.msra.mxu1 %v5032_v6  ;;  %v5136_v6 = vor.u32 %v5837_v57, %v5135_v56  ;;  %v6679_v25 = vpack.c.bf16 %v476_v5, %v476_v5  ;;  %v5861_v57 = vld [vmem:[#allocation5 + $0xa44] sm:$0xf0]  ;;  %v3977_v5 = vld [vmem:[#allocation5 + $0x78] sm:$0xf0] }
  0xe7   : > { %3013 = vmatpush.bf16.msra.mxu2 %v5096_v7  ;;  %v5256_v7 = vor.u32 %v5867_v59, %v5255_v58  ;;  %v5295_v58 = vld [vmem:[#allocation5 + $0xac0] sm:$0xf]  ;;  %v5877_v59 = vld [vmem:[#allocation5 + $0xac4] sm:$0xf0] }
  0xe8   : > { %3026 = vmatpush.bf16.msra.mxu3 %v5160_v12  ;;  %v5320_v12 = vor.u32 %v5883_v62, %v5319_v60  ;;  %v5400_v60 = vor.u32 %v5903_v52, %v5399_v51  ;;  %v5893_v62 = vld [vmem:[#allocation5 + $0xb44] sm:$0xf0] }
  0xe9   : > { %2988 = vmatpush.bf16.msra.mxu0 %v4960_v28  ;;  %v5881_v28 = vld [vmem:[#allocation5 + $0xae4] sm:$0xf0] }
  0xea   : > { %3001 = vmatpush.bf16.msra.mxu1 %v5024_v30  ;;  %v5897_v30 = vld [vmem:[#allocation5 + $0xb64] sm:$0xf0]  ;;  %v5312_v42 = vor.u32 %v5881_v28, %v5311_v22  ;;  %v5891_v22 = vld [vmem:[#allocation5 + $0xb34] sm:$0xf0] }
  0xeb   : > { %3014 = vmatpush.bf16.msra.mxu2 %v5088_v31  ;;  %v2770_v31 = vsel %vm2768_vm0, %v2388_v4, 0  ;;  %v5376_v43 = vor.u32 %v5897_v30, %v5375_v29  ;;  %v5546_v4 = vld [vmem:[#allocation5 + $0x74] sm:$0xf]  ;;  %v5544_v30 = vld [vmem:[#allocation5 + $0x64] sm:$0xf] }
  0xec   : > { %3027 = vmatpush.bf16.msra.mxu3 %v5152_v36  ;;  %v5905_v36 = vld [vmem:[#allocation5 + $0xba4] sm:$0xf0]  ;;  %v3980_v28 = vor.u32 %v5546_v4, %v3977_v5  ;;  %v5540_v5 = vld [vmem:[#allocation5 + $0x44] sm:$0xf] }
  0xed   : > { %2989 = vmatpush.bf16.msra.mxu0 %v4952_v45  ;;  %v5863_v45 = vld [vmem:[#allocation5 + $0xa54] sm:$0xf0]  ;;  %v5408_v47 = vor.u32 %v5905_v36, %v5407_v35  ;;  %v5215_v35 = vld [vmem:[#allocation5 + $0xa20] sm:$0xf] }
  0xee   : > { %3002 = vmatpush.bf16.msra.mxu1 %v5016_v48  ;;  %v5879_v48 = vld [vmem:[#allocation5 + $0xad4] sm:$0xf0]  ;;  %v5240_v53 = vor.u32 %v5863_v45, %v5239_v44  ;;  %v5279_v44 = vld [vmem:[#allocation5 + $0xaa0] sm:$0xf] }
  0xef   : > { %3015 = vmatpush.bf16.msra.mxu2 %v5080_v49  ;;  %v5367_v49 = vld [vmem:[#allocation5 + $0xb50] sm:$0xf]  ;;  %v5304_v55 = vor.u32 %v5879_v48, %v5303_v46  ;;  %v483_v46 = vld [vmem:[%s6589_s1 + $0xb8] sm:$0xff]  ;;  %v5343_v48 = vld [vmem:[#allocation5 + $0xb20] sm:$0xf] }
  0xf0   : > { %3028 = vmatpush.bf16.msra.mxu3 %v5144_v54  ;;  %v5231_v54 = vld [vmem:[#allocation5 + $0xa40] sm:$0xf]  ;;  %v5368_v56 = vor.u32 %v5895_v50, %v5367_v49  ;;  %v5889_v49 = vld [vmem:[#allocation5 + $0xb24] sm:$0xf0] }
  0xf1   : > { %2990 = vmatpush.bf16.msra.mxu0 %v4944_v61  ;;  %v5359_v61 = vld [vmem:[#allocation5 + $0xb40] sm:$0xf]  ;;  %v2784_v36 = vpop.f32.mrf.mxu0 }
  0xf2   : > { %3003 = vmatpush.bf16.msra.mxu1 %v5008_v2  ;;  %v5901_v2 = vld [vmem:[#allocation5 + $0xb84] sm:$0xf0]  ;;  %v5360_v8 = vor.u32 %v5893_v62, %v5359_v61  ;;  %v2797_v51 = vpop.f32.mrf.mxu1  ;;  %v5855_v61 = vld [vmem:[#allocation5 + $0xa14] sm:$0xf0]  ;;  %v5271_v62 = vld [vmem:[#allocation5 + $0xa90] sm:$0xf] }
  0xf3   : > { %3016 = vmatpush.bf16.msra.mxu2 %v5072_v3  ;;  %v5232_v3 = vor.u32 %v5861_v57, %v5231_v54  ;;  %v5542_v54 = vld [vmem:[#allocation5 + $0x54] sm:$0xf] }
  0xf4   : > { %3029 = vmatpush.bf16.msra.mxu3 %v5136_v6  ;;  %2991 = vmatmul.bf16.vlgmr.msra.gmra.mxu0 %v6679_v25  ;;  %v5223_v6 = vld [vmem:[#allocation5 + $0xa30] sm:$0xf] }
  0xf5   : > { %3035 = vmatpush.bf16.msrb.mxu0 %v5256_v7  ;;  %3004 = vmatmul.bf16.vlgmr.msra.gmra.mxu1 %v6684_v33  ;;  %v5296_v7 = vor.u32 %v5877_v59, %v5295_v58  ;;  %v5224_v29 = vor.u32 %v5859_v10, %v5223_v6  ;;  %v6693_v58 = vpack.c.bf16 %v483_v46, %v483_v46  ;;  %v5199_v10 = vld [vmem:[#allocation5 + $0xa00] sm:$0xf] }
  0xf6   : > { %3048 = vmatpush.bf16.msrb.mxu1 %v5320_v12  ;;  %3017 = vmatmul.bf16.vlgmr.msra.gmra.mxu2 %v6682_v32  ;;  %v885_v12 = vperm.slane %v883_v0, 0  ;;  %v5871_v0 = vld [vmem:[#allocation5 + $0xa94] sm:$0xf0] }
  0xf7   : > { %3061 = vmatpush.bf16.msrb.mxu2 %v5384_v14  ;;  %3030 = vmatmul.bf16.vlgmr.msra.gmra.mxu3 %v6686_v39  ;;  %v5392_v14 = vor.u32 %v5901_v2, %v5391_v1  ;;  %v5335_v1 = vld [vmem:[#allocation5 + $0xb10] sm:$0xf]  ;;  %v5887_v2 = vld [vmem:[#allocation5 + $0xb14] sm:$0xf0] }
  0xf8   : > { %3078 = vmatpush.bf16.msrb.mxu3 %v2770_v31  ;;  %v3969_v31 = vld [vmem:[#allocation5 + $0x68] sm:$0xf0]  ;;  %v2785_v45 = vadd.f32 %v2784_v36, %v885_v12 }
  0xf9   : > { %3036 = vmatpush.bf16.msrb.mxu0 %v5248_v41  ;;  %v5288_v41 = vor.u32 %v5875_v15, %v5287_v11  ;;  %v3972_v50 = vor.u32 %v5544_v30, %v3969_v31  ;;  %v2810_v52 = vpop.f32.mrf.mxu2  ;;  %v5853_v11 = vld [vmem:[#allocation5 + $0xa04] sm:$0xf0]  ;;  %v5272_v15 = vor.u32 %v5871_v0, %v5271_v62  ;;  %v5538_v31 = vld [vmem:[#allocation5 + $0x34] sm:$0xf]  ;;  %v4033_v62 = vld [vmem:[#allocation5 + $0xe8] sm:$0xf0] }
  0xfa   : > { %3049 = vmatpush.bf16.msrb.mxu1 %v5312_v42  ;;  %v5352_v42 = vor.u32 %v5891_v22, %v5351_v18  ;;  %v2798_v57 = vadd.f32 %v2797_v51, %v2785_v45  ;;  %v2823_v6 = vpop.f32.mrf.mxu3  ;;  %v5336_v18 = vor.u32 %v5887_v2, %v5335_v1  ;;  %v5263_v22 = vld [vmem:[#allocation5 + $0xa80] sm:$0xf]  ;;  %v5885_v30 = vld [vmem:[#allocation5 + $0xb04] sm:$0xf0]  ;;  %v5200_v46 = vor.u32 %v5853_v11, %v5199_v10  ;;  %v5576_v0 = vld [vmem:[#allocation5 + $0x164] sm:$0xf] }
  0xfb   : > { %3062 = vmatpush.bf16.msrb.mxu2 %v5376_v43  ;;  %v5857_v43 = vld [vmem:[#allocation5 + $0xa24] sm:$0xf0]  ;;  %v4097_v1 = vld [vmem:[#allocation5 + $0x168] sm:$0xf0] }
  0xfc   : > { %3079 = vmatpush.bf16.msrb.mxu3 %v5408_v47  ;;  %v5873_v47 = vld [vmem:[#allocation5 + $0xaa4] sm:$0xf0]  ;;  %v4100_v11 = vor.u32 %v5576_v0, %v4097_v1  ;;  %v5570_v0 = vld [vmem:[#allocation5 + $0x134] sm:$0xf]  ;;  %v4073_v1 = vld [vmem:[#allocation5 + $0x138] sm:$0xf0] }
  0xfd   : > { %3037 = vmatpush.bf16.msrb.mxu0 %v5240_v53  ;;  %v5216_v53 = vor.u32 %v5857_v43, %v5215_v35  ;;  %v5280_v59 = vor.u32 %v5873_v47, %v5279_v44  ;;  %v5562_v35 = vld [vmem:[#allocation5 + $0xf4] sm:$0xf]  ;;  %v4105_v43 = vld [vmem:[#allocation5 + $0x178] sm:$0xf0]  ;;  %v2799_v44 = vpop.f32.mrf.mxu1 }
  0xfe   : > { %3050 = vmatpush.bf16.msrb.mxu1 %v5304_v55  ;;  %v3961_v55 = vld [vmem:[#allocation5 + $0x58] sm:$0xf0]  ;;  %v5556_v44 = vld [vmem:[#allocation5 + $0xc4] sm:$0xf] }
  0xff   : > { %3063 = vmatpush.bf16.msrb.mxu2 %v5368_v56  ;;  %v5207_v56 = vld [vmem:[#allocation5 + $0xa10] sm:$0xf]  ;;  %v3964_v4 = vor.u32 %v5542_v54, %v3961_v55  ;;  %v3945_v47 = vld [vmem:[#allocation5 + $0x38] sm:$0xf0] }
 0x100   : > { %3080 = vmatpush.bf16.msrb.mxu3 %v5400_v60  ;;  %v5344_v60 = vor.u32 %v5889_v49, %v5343_v48  ;;  %v5594_v48 = vld [vmem:[#allocation5 + $0x1f4] sm:$0xf]  ;;  %v4169_v49 = vld [vmem:[#allocation5 + $0x1f8] sm:$0xf0] }
 0x101   : > { %3038 = vmatpush.bf16.msrb.mxu0 %v5232_v3  ;;  %v2811_v3 = vadd.f32 %v2810_v52, %v2798_v57  ;;  %v2812_v45 = vpop.f32.mrf.mxu2  ;;  %v480_v52 = vld [vmem:[%s6589_s1 + $0xa0] sm:$0xff] }
 0x102   : > { %3051 = vmatpush.bf16.msrb.mxu1 %v5296_v7  ;;  %v5208_v7 = vor.u32 %v5855_v61, %v5207_v56  ;;  %v481_v56 = vld [vmem:[%s6589_s1 + $0xa8] sm:$0xff]  ;;  %v5536_v57 = vld [vmem:[#allocation5 + $0x24] sm:$0xf]  ;;  %v4172_v61 = vor.u32 %v5594_v48, %v4169_v49  ;;  %v2825_v2 = vpop.f32.mrf.mxu3 }
 0x103   : > { %3064 = vmatpush.bf16.msrb.mxu2 %v5360_v8  ;;  %v3953_v8 = vld [vmem:[#allocation5 + $0x48] sm:$0xf0]  ;;  %v6697_v12 = vadd.f32 %v2823_v6, %v2811_v3  ;;  %v6702_v3 = vpack.c.bf16 %v480_v52, %v480_v52  ;;  %v5592_v6 = vld [vmem:[#allocation5 + $0x1e4] sm:$0xf] }
 0x104   : > { %3081 = vmatpush.bf16.msrb.mxu3 %v5392_v14  ;;  %v2786_v14 = vpop.f32.mrf.mxu0  ;;  %v3956_v36 = vor.u32 %v5540_v5, %v3953_v8  ;;  %v3937_v5 = vld [vmem:[#allocation5 + $0x28] sm:$0xf0]  ;;  %v6706_v8 = vpack.c.bf16 %v481_v56, %v481_v56  ;;  %v5572_v48 = vld [vmem:[#allocation5 + $0x144] sm:$0xf] }
 0x105   : > { %3039 = vmatpush.bf16.msrb.mxu0 %v5224_v29  ;;  %v5327_v29 = vld [vmem:[#allocation5 + $0xb00] sm:$0xf]  ;;  %v5534_v14 = vld [vmem:[#allocation5 + $0x14] sm:$0xf]  ;;  %v4081_v49 = vld [vmem:[#allocation5 + $0x148] sm:$0xf0] }
 0x106   : > { %3052 = vmatpush.bf16.msrb.mxu1 %v5288_v41  ;;  %v4041_v41 = vld [vmem:[#allocation5 + $0xf8] sm:$0xf0]  ;;  %v5328_v51 = vor.u32 %v5885_v30, %v5327_v29  ;;  %v5574_v29 = vld [vmem:[#allocation5 + $0x154] sm:$0xf]  ;;  %v4145_v52 = vld [vmem:[#allocation5 + $0x1c8] sm:$0xf0]  ;;  %v4084_v56 = vor.u32 %v5572_v48, %v4081_v49 }
 0x107   : > { %3065 = vmatpush.bf16.msrb.mxu2 %v5352_v42  ;;  %5413 = vmatmul.msk.bf16.vlgmr.msrb.gmra.mxu3 %vm2764_vm1, %v6693_v58  ;;  %v5578_v42 = vld [vmem:[#allocation5 + $0x174] sm:$0xf]  ;;  %v4044_v54 = vor.u32 %v5562_v35, %v4041_v41  ;;  %v4089_v30 = vld [vmem:[#allocation5 + $0x158] sm:$0xf0] }
 0x108   : > { %3087 = vmatpush.bf16.msra.mxu3 %v3980_v28  ;;  %v5869_v28 = vld [vmem:[#allocation5 + $0xa84] sm:$0xf0]  ;;  %v4108_v55 = vor.u32 %v5578_v42, %v4105_v43  ;;  %v5590_v35 = vld [vmem:[#allocation5 + $0x1d4] sm:$0xf]  ;;  %v4092_v42 = vor.u32 %v5574_v29, %v4089_v30  ;;  %v5532_v43 = vld [vmem:[#allocation5 + $0x4] sm:$0xf] }
 0x109   : > { %3040 = vmatpush.bf16.msrb.mxu0 %v5216_v53  ;;  %v482_v53 = vld [vmem:[%s6589_s1 + $0xb0] sm:$0xff]  ;;  %v4001_v30 = vld [vmem:[#allocation5 + $0xa8] sm:$0xf0]  ;;  %s3916_s1 = sshll.u32 %s6585_s20, 3 }
 0x10a   : > { %3053 = vmatpush.bf16.msrb.mxu1 %v5280_v59  ;;  %v5560_v59 = vld [vmem:[#allocation5 + $0xe4] sm:$0xf]  ;;  %s458_s23 = scalar_lea.vmem [#allocation16], %s3916_s1 }
 0x10b   : > { %3066 = vmatpush.bf16.msrb.mxu2 %v5344_v60  ;;  %v3948_v60 = vor.u32 %v5538_v31, %v3945_v47  ;;  %v4036_v10 = vor.u32 %v5560_v59, %v4033_v62  ;;  %v3929_v31 = vld [vmem:[#allocation5 + $0x18] sm:$0xf0]  ;;  %v4017_v47 = vld [vmem:[#allocation5 + $0xc8] sm:$0xf0]  ;;  %s3757_s21 = sshll.u32 %s458_s23, 4  ;;  %s3758_s21 = int_to_ptr.vmem [resolvable:$true] %s3757_s21 }
 0x10c   : > { %3088 = vmatpush.bf16.msra.mxu3 %v3972_v50  ;;  %v5264_v50 = vor.u32 %v5869_v28, %v5263_v22  ;;  %v4025_v28 = vld [vmem:[#allocation5 + $0xd8] sm:$0xf0]  ;;  %v3932_v45 = vor.u32 %v5534_v14, %v3929_v31  ;;  %v4225_v14 = vld [vmem:[#allocation5 + $0x268] sm:$0xf0]  ;;  %v5568_v31 = vld [vmem:[#allocation5 + $0x124] sm:$0xf] }
 0x10d   : > { %3041 = vmatpush.bf16.msrb.mxu0 %v5208_v7  ;;  %v4161_v7 = vld [vmem:[#allocation5 + $0x1e8] sm:$0xf0]  ;;  %v4009_v62 = vld [vmem:[#allocation5 + $0xb8] sm:$0xf0] }
 0x10e   : > { %3054 = vmatpush.bf16.msrb.mxu1 %v5272_v15  ;;  %v5558_v15 = vld [vmem:[#allocation5 + $0xd4] sm:$0xf]  ;;  %v4164_v22 = vor.u32 %v5592_v6, %v4161_v7 }
 0x10f   : > { %3067 = vmatpush.bf16.msrb.mxu2 %v5336_v18  ;;  %v3940_v18 = vor.u32 %v5536_v57, %v3937_v5  ;;  %v4028_v41 = vor.u32 %v5558_v15, %v4025_v28  ;;  %v5554_v57 = vld [vmem:[#allocation5 + $0xb4] sm:$0xf]  ;;  %v5552_v28 = vld [vmem:[#allocation5 + $0xa4] sm:$0xf] }
 0x110   : > { %3089 = vmatpush.bf16.msra.mxu3 %v3964_v4  ;;  %v6704_v4 = vpack.c.bf16 %v482_v53, %v482_v53  ;;  %v5610_v53 = vld [vmem:[#allocation5 + $0x274] sm:$0xf] }
 0x111   : > { %3042 = vmatpush.bf16.msrb.mxu0 %v5200_v46  ;;  %v2836_v59 = vpop.f32.mrf.mxu0  ;;  %v5586_v7 = vld [vmem:[#allocation5 + $0x1b4] sm:$0xf] }
 0x112   : > { %3055 = vmatpush.bf16.msrb.mxu1 %v5264_v50  ;;  %v3921_v50 = vld [vmem:[#allocation5 + $0x8] sm:$0xf0]  ;;  %v2837_v2 = vadd.f32 %v2836_v59, %v6697_v12  ;;  %v2849_v5 = vpop.f32.mrf.mxu1  ;;  %v5582_v59 = vld [vmem:[#allocation5 + $0x194] sm:$0xf] }
 0x113   : > { %3068 = vmatpush.bf16.msrb.mxu2 %v5328_v51  ;;  %v5588_v51 = vld [vmem:[#allocation5 + $0x1c4] sm:$0xf] }
 0x114   : > { %3090 = vmatpush.bf16.msra.mxu3 %v3956_v36  ;;  %3043 = vmatmul.bf16.vlgmr.msrb.gmra.mxu0 %v6702_v3  ;;  %v4153_v36 = vld [vmem:[#allocation5 + $0x1d8] sm:$0xf0]  ;;  %v2850_v15 = vadd.f32 %v2849_v5, %v2837_v2  ;;  %v5548_v2 = vld [vmem:[#allocation5 + $0x84] sm:$0xf]  ;;  %v3985_v5 = vld [vmem:[#allocation5 + $0x88] sm:$0xf0] }
 0x115   : > { %3100 = vmatpush.bf16.msra.mxu0 %v4044_v54  ;;  %3056 = vmatmul.bf16.vlgmr.msrb.gmra.mxu1 %v6706_v8  ;;  %v4156_v46 = vor.u32 %v5590_v35, %v4153_v36  ;;  %v4233_v54 = vld [vmem:[#allocation5 + $0x278] sm:$0xf0]  ;;  %v4065_v35 = vld [vmem:[#allocation5 + $0x128] sm:$0xf0] }
 0x116   : > { %3113 = vmatpush.bf16.msra.mxu1 %v4108_v55  ;;  %3069 = vmatmul.bf16.vlgmr.msrb.gmra.mxu2 %v6704_v4  ;;  %v4020_v55 = vor.u32 %v5556_v44, %v4017_v47  ;;  %v4236_v6 = vor.u32 %v5610_v53, %v4233_v54  ;;  %v4004_v47 = vor.u32 %v5552_v28, %v4001_v30  ;;  %v3993_v53 = vld [vmem:[#allocation5 + $0x98] sm:$0xf0]  ;;  %v5566_v54 = vld [vmem:[#allocation5 + $0x114] sm:$0xf] }
 0x117   : > { %3126 = vmatpush.bf16.msra.mxu2 %v4172_v61  ;;  %v4148_v61 = vor.u32 %v5588_v51, %v4145_v52  ;;  %v4068_v48 = vor.u32 %v5568_v31, %v4065_v35  ;;  %v4297_v28 = vld [vmem:[#allocation5 + $0x2f8] sm:$0xf0]  ;;  %v5642_v31 = vld [vmem:[#allocation5 + $0x374] sm:$0xf] }
 0x118   : > { %3091 = vmatpush.bf16.msra.mxu3 %v3948_v60  ;;  %v3924_v60 = vor.u32 %v5532_v43, %v3921_v50  ;;  %v5550_v50 = vld [vmem:[#allocation5 + $0x94] sm:$0xf]  ;;  %v4201_v30 = vld [vmem:[#allocation5 + $0x238] sm:$0xf0] }
 0x119   : > { %3101 = vmatpush.bf16.msra.mxu0 %v4036_v10  ;;  %v4137_v10 = vld [vmem:[#allocation5 + $0x1b8] sm:$0xf0]  ;;  %v2862_v36 = vpop.f32.mrf.mxu2  ;;  %v2838_v51 = vpop.f32.mrf.mxu0 }
 0x11a   : > { %3114 = vmatpush.bf16.msra.mxu1 %v4100_v11  ;;  %v5608_v11 = vld [vmem:[#allocation5 + $0x264] sm:$0xf]  ;;  %v4140_v29 = vor.u32 %v5586_v7, %v4137_v10  ;;  %v2863_v43 = vadd.f32 %v2862_v36, %v2850_v15  ;;  %v2875_v44 = vpop.f32.mrf.mxu3  ;;  %v4049_v10 = vld [vmem:[#allocation5 + $0x108] sm:$0xf0]  ;;  %v4361_v35 = vld [vmem:[#allocation5 + $0x378] sm:$0xf0]  ;;  %v3988_v36 = vor.u32 %v5548_v2, %v3985_v5 }
 0x11b   : > { %3127 = vmatpush.bf16.msra.mxu2 %v4164_v22  ;;  %v4076_v22 = vor.u32 %v5570_v0, %v4073_v1  ;;  %v4228_v12 = vor.u32 %v5608_v11, %v4225_v14  ;;  %v3996_v0 = vor.u32 %v5550_v50, %v3993_v53  ;;  %v5580_v11 = vld [vmem:[#allocation5 + $0x184] sm:$0xf]  ;;  %v4113_v14 = vld [vmem:[#allocation5 + $0x188] sm:$0xf0]  ;;  %v4185_v2 = vld [vmem:[#allocation5 + $0x218] sm:$0xf0] }
 0x11c   : > { %3092 = vmatpush.bf16.msra.mxu3 %v3940_v18  ;;  %v4012_v18 = vor.u32 %v5554_v57, %v4009_v62  ;;  %v6712_v49 = vadd.f32 %v2875_v44, %v2863_v43  ;;  %v4209_v62 = vld [vmem:[#allocation5 + $0x248] sm:$0xf0]  ;;  %v4116_v43 = vor.u32 %v5580_v11, %v4113_v14  ;;  %v5640_v53 = vld [vmem:[#allocation5 + $0x364] sm:$0xf]  ;;  %v5638_v5 = vld [vmem:[#allocation5 + $0x354] sm:$0xf] }
 0x11d   : > { %3102 = vmatpush.bf16.msra.mxu0 %v4028_v41  ;;  %v5584_v41 = vld [vmem:[#allocation5 + $0x1a4] sm:$0xf]  ;;  %v4289_v50 = vld [vmem:[#allocation5 + $0x2e8] sm:$0xf0] }
 0x11e   : > { %3115 = vmatpush.bf16.msra.mxu1 %v4092_v42  ;;  %v4129_v42 = vld [vmem:[#allocation5 + $0x1a8] sm:$0xf0]  ;;  %v5596_v14 = vld [vmem:[#allocation5 + $0x204] sm:$0xf] }
 0x11f   : > { %3128 = vmatpush.bf16.msra.mxu2 %v4156_v46  ;;  %v4217_v46 = vld [vmem:[#allocation5 + $0x258] sm:$0xf0]  ;;  %v4132_v52 = vor.u32 %v5584_v41, %v4129_v42  ;;  %v5658_v41 = vld [vmem:[#allocation5 + $0x3f4] sm:$0xf] }
 0x120   : > { %3093 = vmatpush.bf16.msra.mxu3 %v3932_v45  ;;  %v5606_v45 = vld [vmem:[#allocation5 + $0x254] sm:$0xf]  ;;  %v4425_v42 = vld [vmem:[#allocation5 + $0x3f8] sm:$0xf0] }
 0x121   : > { %3103 = vmatpush.bf16.msra.mxu0 %v4020_v55  ;;  %v4057_v55 = vld [vmem:[#allocation5 + $0x118] sm:$0xf0]  ;;  %v4220_v57 = vor.u32 %v5606_v45, %v4217_v46  ;;  %v2864_v15 = vpop.f32.mrf.mxu2  ;;  %v4364_v46 = vor.u32 %v5642_v31, %v4361_v35  ;;  %v4428_v51 = vor.u32 %v5658_v41, %v4425_v42  ;;  %v5652_v31 = vld [vmem:[#allocation5 + $0x3c4] sm:$0xf]  ;;  %v4401_v35 = vld [vmem:[#allocation5 + $0x3c8] sm:$0xf0] }
 0x122   : > { %3116 = vmatpush.bf16.msra.mxu1 %v4084_v56  ;;  %v2851_v56 = vpop.f32.mrf.mxu1  ;;  %v4060_v1 = vor.u32 %v5566_v54, %v4057_v55  ;;  %v4353_v54 = vld [vmem:[#allocation5 + $0x368] sm:$0xf0]  ;;  %v5656_v55 = vld [vmem:[#allocation5 + $0x3e4] sm:$0xf] }
 0x123   : > { %3129 = vmatpush.bf16.msra.mxu2 %v4148_v61  ;;  %v5604_v61 = vld [vmem:[#allocation5 + $0x244] sm:$0xf]  ;;  %v4417_v56 = vld [vmem:[#allocation5 + $0x3e8] sm:$0xf0] }
 0x124   : > { %3094 = vmatpush.bf16.msra.mxu3 %v3924_v60  ;;  %v4121_v60 = vld [vmem:[#allocation5 + $0x198] sm:$0xf0] }
 0x125   : > { %3104 = vmatpush.bf16.msra.mxu0 %v4012_v18  ;;  %v4124_v7 = vor.u32 %v5582_v59, %v4121_v60  ;;  %v5602_v18 = vld [vmem:[#allocation5 + $0x234] sm:$0xf]  ;;  %v4356_v60 = vor.u32 %v5640_v53, %v4353_v54  ;;  %v4393_v54 = vld [vmem:[#allocation5 + $0x3b8] sm:$0xf0] }
 0x126   : > { %3117 = vmatpush.bf16.msra.mxu1 %v4076_v22  ;;  %v5626_v22 = vld [vmem:[#allocation5 + $0x2f4] sm:$0xf]  ;;  %v4204_v45 = vor.u32 %v5602_v18, %v4201_v30  ;;  %v4177_v18 = vld [vmem:[#allocation5 + $0x208] sm:$0xf0]  ;;  %v5636_v30 = vld [vmem:[#allocation5 + $0x344] sm:$0xf] }
 0x127   : > { %3130 = vmatpush.bf16.msra.mxu2 %v4140_v29  ;;  %3095 = vmatmul.bf16.vlgmr.msra.gmra.mxu3 %v6616_v9  ;;  %v4212_v9 = vor.u32 %v5604_v61, %v4209_v62  ;;  %v2877_v29 = vpop.f32.mrf.mxu3  ;;  %v4300_v44 = vor.u32 %v5626_v22, %v4297_v28  ;;  %v5598_v61 = vld [vmem:[#allocation5 + $0x214] sm:$0xf]  ;;  %v5620_v22 = vld [vmem:[#allocation5 + $0x2c4] sm:$0xf]  ;;  %v4273_v28 = vld [vmem:[#allocation5 + $0x2c8] sm:$0xf0]  ;;  %v4180_v42 = vor.u32 %v5596_v14, %v4177_v18 }
 0x128   : > { %3139 = vmatpush.bf16.msrb.mxu3 %v4236_v6  ;;  %v5564_v6 = vld [vmem:[#allocation5 + $0x104] sm:$0xf]  ;;  %v5622_v62 = vld [vmem:[#allocation5 + $0x2d4] sm:$0xf]  ;;  %v4188_v15 = vor.u32 %v5598_v61, %v4185_v2 }
 0x129   : > { %3105 = vmatpush.bf16.msra.mxu0 %v4004_v47  ;;  %v5600_v47 = vld [vmem:[#allocation5 + $0x224] sm:$0xf] }
 0x12a   : > { %3118 = vmatpush.bf16.msra.mxu1 %v4068_v48  ;;  %v5624_v48 = vld [vmem:[#allocation5 + $0x2e4] sm:$0xf] }
 0x12b   : > { %3131 = vmatpush.bf16.msra.mxu2 %v4132_v52  ;;  %v4193_v52 = vld [vmem:[#allocation5 + $0x228] sm:$0xf0]  ;;  %v5648_v2 = vld [vmem:[#allocation5 + $0x3a4] sm:$0xf] }
 0x12c   : > { %3140 = vmatpush.bf16.msrb.mxu3 %v4228_v12  ;;  %v4052_v12 = vor.u32 %v5564_v6, %v4049_v10  ;;  %v4196_v59 = vor.u32 %v5600_v47, %v4193_v52  ;;  %v4345_v6 = vld [vmem:[#allocation5 + $0x358] sm:$0xf0]  ;;  %v4404_v47 = vor.u32 %v5652_v31, %v4401_v35  ;;  %v5650_v52 = vld [vmem:[#allocation5 + $0x3b4] sm:$0xf] }
 0x12d   : > { %3106 = vmatpush.bf16.msra.mxu0 %v3996_v0  ;;  %v4281_v0 = vld [vmem:[#allocation5 + $0x2d8] sm:$0xf0]  ;;  %v4396_v61 = vor.u32 %v5650_v52, %v4393_v54  ;;  %v5630_v35 = vld [vmem:[#allocation5 + $0x314] sm:$0xf] }
 0x12e   : > { %3119 = vmatpush.bf16.msra.mxu1 %v4060_v1  ;;  %v4420_v1 = vor.u32 %v5656_v55, %v4417_v56  ;;  %v4409_v10 = vld [vmem:[#allocation5 + $0x3d8] sm:$0xf0]  ;;  %v4284_v11 = vor.u32 %v5622_v62, %v4281_v0  ;;  %v5672_v55 = vld [vmem:[#allocation5 + $0x464] sm:$0xf]  ;;  %v4481_v56 = vld [vmem:[#allocation5 + $0x468] sm:$0xf0] }
 0x12f   : > { %3132 = vmatpush.bf16.msra.mxu2 %v4124_v7  ;;  %v5654_v7 = vld [vmem:[#allocation5 + $0x3d4] sm:$0xf]  ;;  %v4484_v62 = vor.u32 %v5672_v55, %v4481_v56  ;;  %v5632_v0 = vld [vmem:[#allocation5 + $0x324] sm:$0xf]  ;;  %v4457_v55 = vld [vmem:[#allocation5 + $0x438] sm:$0xf0] }
 0x130   : > { %3141 = vmatpush.bf16.msrb.mxu3 %v4220_v57  ;;  %v4292_v57 = vor.u32 %v5624_v48, %v4289_v50  ;;  %v4412_v29 = vor.u32 %v5654_v7, %v4409_v10  ;;  %v5634_v50 = vld [vmem:[#allocation5 + $0x334] sm:$0xf]  ;;  %v4473_v10 = vld [vmem:[#allocation5 + $0x458] sm:$0xf0] }
 0x131   : > { %3107 = vmatpush.bf16.msra.mxu0 %v3988_v36  ;;  %v5674_v36 = vld [vmem:[#allocation5 + $0x474] sm:$0xf] }
 0x132   : > { %3120 = vmatpush.bf16.msra.mxu1 %v4052_v12  ;;  %v4276_v12 = vor.u32 %v5620_v22, %v4273_v28  ;;  %v5670_v7 = vld [vmem:[#allocation5 + $0x454] sm:$0xf]  ;;  %v4249_v28 = vld [vmem:[#allocation5 + $0x298] sm:$0xf0] }
 0x133   : > { %3133 = vmatpush.bf16.msra.mxu2 %v4116_v43  ;;  %v5614_v22 = vld [vmem:[#allocation5 + $0x294] sm:$0xf]  ;;  %v4476_v31 = vor.u32 %v5670_v7, %v4473_v10  ;;  %v4545_v7 = vld [vmem:[#allocation5 + $0x4e8] sm:$0xf0] }
 0x134   : > { %3142 = vmatpush.bf16.msrb.mxu3 %v4212_v9  ;;  %3108 = vmatmul.bf16.vlgmr.msra.gmra.mxu0 %v6622_v17  ;;  %v4348_v9 = vor.u32 %v5638_v5, %v4345_v6  ;;  %v4337_v17 = vld [vmem:[#allocation5 + $0x348] sm:$0xf0]  ;;  %v5690_v52 = vld [vmem:[#allocation5 + $0x4f4] sm:$0xf] }
 0x135   : > { %3152 = vmatpush.bf16.msrb.mxu0 %v4300_v44  ;;  %3121 = vmatmul.bf16.vlgmr.msra.gmra.mxu1 %v6612_v63  ;;  %v2888_v63 = vpop.f32.mrf.mxu0  ;;  %v4340_v43 = vor.u32 %v5636_v30, %v4337_v17  ;;  %v2901_v44 = vpop.f32.mrf.mxu1  ;;  %v4385_v6 = vld [vmem:[#allocation5 + $0x3a8] sm:$0xf0]  ;;  %v5666_v54 = vld [vmem:[#allocation5 + $0x434] sm:$0xf] }
 0x136   : > { %3165 = vmatpush.bf16.msrb.mxu1 %v4364_v46  ;;  %3134 = vmatmul.bf16.vlgmr.msra.gmra.mxu2 %v6620_v16  ;;  %v4489_v16 = vld [vmem:[#allocation5 + $0x478] sm:$0xf0]  ;;  %v2889_v41 = vadd.f32 %v2888_v63, %v6712_v49  ;;  %v4388_v17 = vor.u32 %v5648_v2, %v4385_v6  ;;  %v5706_v56 = vld [vmem:[#allocation5 + $0x574] sm:$0xf]  ;;  %v5688_v6 = vld [vmem:[#allocation5 + $0x4e4] sm:$0xf] }
 0x137   : > { %3178 = vmatpush.bf16.msrb.mxu2 %v4428_v51  ;;  %v4265_v46 = vld [vmem:[#allocation5 + $0x2b8] sm:$0xf0]  ;;  %v4492_v48 = vor.u32 %v5674_v36, %v4489_v16  ;;  %v5646_v16 = vld [vmem:[#allocation5 + $0x394] sm:$0xf] }
 0x138   : > { %3143 = vmatpush.bf16.msrb.mxu3 %v4204_v45  ;;  %v5618_v45 = vld [vmem:[#allocation5 + $0x2b4] sm:$0xf]  ;;  %v4329_v51 = vld [vmem:[#allocation5 + $0x338] sm:$0xf0]  ;;  %v2902_v53 = vadd.f32 %v2901_v44, %v2889_v41  ;;  %v4465_v41 = vld [vmem:[#allocation5 + $0x448] sm:$0xf0] }
 0x139   : > { %3153 = vmatpush.bf16.msrb.mxu0 %v4292_v57  ;;  %v4268_v57 = vor.u32 %v5618_v45, %v4265_v46  ;;  %v4332_v49 = vor.u32 %v5634_v50, %v4329_v51  ;;  %v2914_v5 = vpop.f32.mrf.mxu2  ;;  %v4313_v36 = vld [vmem:[#allocation5 + $0x318] sm:$0xf0]  ;;  %v5628_v45 = vld [vmem:[#allocation5 + $0x304] sm:$0xf]  ;;  %v4305_v46 = vld [vmem:[#allocation5 + $0x308] sm:$0xf0] }
 0x13a   : > { %3166 = vmatpush.bf16.msrb.mxu1 %v4356_v60  ;;  %v4257_v60 = vld [vmem:[#allocation5 + $0x2a8] sm:$0xf0]  ;;  %v2927_v14 = vpop.f32.mrf.mxu3  ;;  %v4377_v63 = vld [vmem:[#allocation5 + $0x398] sm:$0xf0]  ;;  %v4316_v44 = vor.u32 %v5630_v35, %v4313_v36 }
 0x13b   : > { %3179 = vmatpush.bf16.msrb.mxu2 %v4420_v1  ;;  %v4321_v1 = vld [vmem:[#allocation5 + $0x328] sm:$0xf0]  ;;  %v4537_v35 = vld [vmem:[#allocation5 + $0x4d8] sm:$0xf0] }
 0x13c   : > { %3144 = vmatpush.bf16.msrb.mxu3 %v4196_v59  ;;  %v5616_v59 = vld [vmem:[#allocation5 + $0x2a4] sm:$0xf]  ;;  %v4324_v18 = vor.u32 %v5632_v0, %v4321_v1  ;;  %v4369_v51 = vld [vmem:[#allocation5 + $0x388] sm:$0xf0]  ;;  %v4308_v0 = vor.u32 %v5628_v45, %v4305_v46 }
 0x13d   : > { %3154 = vmatpush.bf16.msrb.mxu0 %v4284_v11  ;;  %v2915_v11 = vadd.f32 %v2914_v5, %v2902_v53  ;;  %v4553_v53 = vld [vmem:[#allocation5 + $0x4f8] sm:$0xf0]  ;;  %v4460_v5 = vor.u32 %v5666_v54, %v4457_v55  ;;  %v5684_v46 = vld [vmem:[#allocation5 + $0x4c4] sm:$0xf]  ;;  %v4657_v55 = vld [vmem:[#allocation5 + $0x5c8] sm:$0xf0] }
 0x13e   : > { %3167 = vmatpush.bf16.msrb.mxu1 %v4348_v9  ;;  %v2890_v9 = vpop.f32.mrf.mxu0  ;;  %v4556_v1 = vor.u32 %v5690_v52, %v4553_v53  ;;  %v4433_v52 = vld [vmem:[#allocation5 + $0x408] sm:$0xf0]  ;;  %v5716_v54 = vld [vmem:[#allocation5 + $0x5c4] sm:$0xf] }
 0x13f   : > { %3180 = vmatpush.bf16.msrb.mxu2 %v4412_v29  ;;  %v2903_v29 = vpop.f32.mrf.mxu1  ;;  %v6720_v30 = vadd.f32 %v2927_v14, %v2915_v11  ;;  %v5664_v14 = vld [vmem:[#allocation5 + $0x424] sm:$0xf]  ;;  %v4593_v53 = vld [vmem:[#allocation5 + $0x548] sm:$0xf0] }
 0x140   : > { %3145 = vmatpush.bf16.msrb.mxu3 %v4188_v15  ;;  %v4260_v15 = vor.u32 %v5616_v59, %v4257_v60  ;;  %v4617_v59 = vld [vmem:[#allocation5 + $0x578] sm:$0xf0]  ;;  %v5722_v60 = vld [vmem:[#allocation5 + $0x5f4] sm:$0xf]  ;;  %v5704_v9 = vld [vmem:[#allocation5 + $0x564] sm:$0xf]  ;;  %v4548_v29 = vor.u32 %v5688_v6, %v4545_v7 }
 0x141   : > { %3155 = vmatpush.bf16.msrb.mxu0 %v4276_v12  ;;  %v5668_v12 = vld [vmem:[#allocation5 + $0x444] sm:$0xf]  ;;  %v4620_v10 = vor.u32 %v5706_v56, %v4617_v59  ;;  %v5738_v56 = vld [vmem:[#allocation5 + $0x674] sm:$0xf]  ;;  %v4585_v6 = vld [vmem:[#allocation5 + $0x538] sm:$0xf0] }
 0x142   : > { %3168 = vmatpush.bf16.msrb.mxu1 %v4340_v43  ;;  %v4241_v43 = vld [vmem:[#allocation5 + $0x288] sm:$0xf0]  ;;  %v4468_v50 = vor.u32 %v5668_v12, %v4465_v41  ;;  %v4441_v12 = vld [vmem:[#allocation5 + $0x418] sm:$0xf0]  ;;  %v5702_v41 = vld [vmem:[#allocation5 + $0x554] sm:$0xf] }
 0x143   : > { %3181 = vmatpush.bf16.msrb.mxu2 %v4404_v47  ;;  %v5644_v47 = vld [vmem:[#allocation5 + $0x384] sm:$0xf]  ;;  %v5682_v59 = vld [vmem:[#allocation5 + $0x4b4] sm:$0xf] }
 0x144   : > { %3146 = vmatpush.bf16.msrb.mxu3 %v4180_v42  ;;  %v5612_v42 = vld [vmem:[#allocation5 + $0x284] sm:$0xf]  ;;  %v4372_v2 = vor.u32 %v5644_v47, %v4369_v51  ;;  %v4529_v47 = vld [vmem:[#allocation5 + $0x4c8] sm:$0xf0]  ;;  %v5714_v7 = vld [vmem:[#allocation5 + $0x5b4] sm:$0xf] }
 0x145   : > { %3156 = vmatpush.bf16.msrb.mxu0 %v4268_v57  ;;  %v2916_v57 = vpop.f32.mrf.mxu2  ;;  %v5660_v51 = vld [vmem:[#allocation5 + $0x404] sm:$0xf] }
 0x146   : > { %3169 = vmatpush.bf16.msrb.mxu1 %v4332_v49  ;;  %v4244_v49 = vor.u32 %v5612_v42, %v4241_v43  ;;  %v5718_v42 = vld [vmem:[#allocation5 + $0x5d4] sm:$0xf]  ;;  %v4665_v43 = vld [vmem:[#allocation5 + $0x5d8] sm:$0xf0] }
 0x147   : > { %3147 = vmatmul.bf16.vlgmr.msrb.gmra.mxu3 %v6633_v37  ;;  %3182 = vmatpush.bf16.msrb.mxu2 %v4396_v61  ;;  %v4252_v37 = vor.u32 %v5614_v22, %v4249_v28  ;;  %v4681_v61 = vld [vmem:[#allocation5 + $0x5f8] sm:$0xf0]  ;;  %v5720_v22 = vld [vmem:[#allocation5 + $0x5e4] sm:$0xf]  ;;  %v4673_v28 = vld [vmem:[#allocation5 + $0x5e8] sm:$0xf0] }
 0x148   : > { %3191 = vmatpush.bf16.msra.mxu3 %v4492_v48  ;;  %v4380_v48 = vor.u32 %v5646_v16, %v4377_v63  ;;  %v4684_v11 = vor.u32 %v5722_v60, %v4681_v61  ;;  %v4676_v16 = vor.u32 %v5720_v22, %v4673_v28  ;;  %v5662_v63 = vld [vmem:[#allocation5 + $0x414] sm:$0xf]  ;;  %v4745_v57 = vld [vmem:[#allocation5 + $0x678] sm:$0xf0]  ;;  %v4513_v22 = vld [vmem:[#allocation5 + $0x4a8] sm:$0xf0] }
 0x149   : > { %3157 = vmatpush.bf16.msrb.mxu0 %v4260_v15  ;;  %v4449_v15 = vld [vmem:[#allocation5 + $0x428] sm:$0xf0]  ;;  %v4444_v45 = vor.u32 %v5662_v63, %v4441_v12  ;;  %v4521_v60 = vld [vmem:[#allocation5 + $0x4b8] sm:$0xf0]  ;;  %v5734_v12 = vld [vmem:[#allocation5 + $0x654] sm:$0xf] }
 0x14a   : > { %3170 = vmatpush.bf16.msrb.mxu1 %v4324_v18  ;;  %v4609_v18 = vld [vmem:[#allocation5 + $0x568] sm:$0xf0] }
 0x14b   : > { %3183 = vmatpush.bf16.msrb.mxu2 %v4388_v17  ;;  %v4452_v17 = vor.u32 %v5664_v14, %v4449_v15  ;;  %v4612_v36 = vor.u32 %v5704_v9, %v4609_v18  ;;  %v4524_v14 = vor.u32 %v5682_v59, %v4521_v60  ;;  %v5736_v15 = vld [vmem:[#allocation5 + $0x664] sm:$0xf]  ;;  %v4737_v9 = vld [vmem:[#allocation5 + $0x668] sm:$0xf0] }
 0x14c   : > { %3192 = vmatpush.bf16.msra.mxu3 %v4484_v62  ;;  %v2929_v62 = vpop.f32.mrf.mxu3  ;;  %v5680_v18 = vld [vmem:[#allocation5 + $0x4a4] sm:$0xf]  ;;  %v4561_v60 = vld [vmem:[#allocation5 + $0x508] sm:$0xf0] }
 0x14d   : > { %3158 = vmatpush.bf16.msrb.mxu0 %v4252_v37  ;;  %v4601_v37 = vld [vmem:[#allocation5 + $0x558] sm:$0xf0]  ;;  %v4516_v63 = vor.u32 %v5680_v18, %v4513_v22 }
 0x14e   : > { %3171 = vmatpush.bf16.msrb.mxu1 %v4316_v44  ;;  %v4937_v18 = vld [vmem:[#allocation5 + $0x7f8] sm:$0xf0] }
 0x14f   : > { %3184 = vmatpush.bf16.msrb.mxu2 %v4380_v48  ;;  %v4604_v48 = vor.u32 %v5702_v41, %v4601_v37  ;;  %v4729_v41 = vld [vmem:[#allocation5 + $0x658] sm:$0xf0] }
 0x150   : > { %3193 = vmatpush.bf16.msra.mxu3 %v4476_v31  ;;  %v5686_v31 = vld [vmem:[#allocation5 + $0x4d4] sm:$0xf] }
 0x151   : > { %3159 = vmatpush.bf16.msrb.mxu0 %v4244_v49  ;;  %v4540_v44 = vor.u32 %v5686_v31, %v4537_v35  ;;  %v4436_v49 = vor.u32 %v5660_v51, %v4433_v52  ;;  %v4577_v31 = vld [vmem:[#allocation5 + $0x528] sm:$0xf0]  ;;  %v5712_v35 = vld [vmem:[#allocation5 + $0x5a4] sm:$0xf]  ;;  %v4569_v52 = vld [vmem:[#allocation5 + $0x518] sm:$0xf0] }
 0x152   : > { %3172 = vmatpush.bf16.msrb.mxu1 %v4308_v0  ;;  %v4660_v0 = vor.u32 %v5716_v54, %v4657_v55  ;;  %v5732_v55 = vld [vmem:[#allocation5 + $0x644] sm:$0xf] }
 0x153   : > { %3185 = vmatpush.bf16.msrb.mxu2 %v4372_v2  ;;  %v5698_v2 = vld [vmem:[#allocation5 + $0x534] sm:$0xf] }
 0x154   : > { %3194 = vmatpush.bf16.msra.mxu3 %v4468_v50  ;;  %3160 = vmatmul.bf16.vlgmr.msrb.gmra.mxu0 %v6637_v40  ;;  %v4668_v50 = vor.u32 %v5718_v42, %v4665_v43  ;;  %v5700_v40 = vld [vmem:[#allocation5 + $0x544] sm:$0xf]  ;;  %v4588_v28 = vor.u32 %v5698_v2, %v4585_v6  ;;  %v5678_v43 = vld [vmem:[#allocation5 + $0x494] sm:$0xf]  ;;  %v4625_v2 = vld [vmem:[#allocation5 + $0x588] sm:$0xf0] }
 0x155   : > { %3204 = vmatpush.bf16.msra.mxu0 %v4556_v1  ;;  %3173 = vmatmul.bf16.vlgmr.msrb.gmra.mxu1 %v6631_v34  ;;  %v4532_v34 = vor.u32 %v5684_v46, %v4529_v47  ;;  %v4596_v62 = vor.u32 %v5700_v40, %v4593_v53  ;;  %v2953_v1 = vpop.f32.mrf.mxu1  ;;  %v5710_v40 = vld [vmem:[#allocation5 + $0x594] sm:$0xf]  ;;  %v4633_v53 = vld [vmem:[#allocation5 + $0x598] sm:$0xf0] }
 0x156   : > { %3217 = vmatpush.bf16.msra.mxu1 %v4620_v10  ;;  %3186 = vmatmul.bf16.vlgmr.msrb.gmra.mxu2 %v6635_v38  ;;  %v2940_v38 = vpop.f32.mrf.mxu0  ;;  %v4649_v10 = vld [vmem:[#allocation5 + $0x5b8] sm:$0xf0]  ;;  %v4636_v59 = vor.u32 %v5710_v40, %v4633_v53  ;;  %v5782_v53 = vld [vmem:[#allocation5 + $0x7d4] sm:$0xf] }
 0x157   : > { %3230 = vmatpush.bf16.msra.mxu2 %v4684_v11  ;;  %v2941_v61 = vadd.f32 %v2940_v38, %v6720_v30  ;;  %v4652_v30 = vor.u32 %v5714_v7, %v4649_v10  ;;  %v5692_v38 = vld [vmem:[#allocation5 + $0x504] sm:$0xf]  ;;  %v4713_v7 = vld [vmem:[#allocation5 + $0x638] sm:$0xf0]  ;;  %v5770_v10 = vld [vmem:[#allocation5 + $0x774] sm:$0xf] }
 0x158   : > { %3195 = vmatpush.bf16.msra.mxu3 %v4460_v5  ;;  %v4748_v5 = vor.u32 %v5738_v56, %v4745_v57  ;;  %v5676_v56 = vld [vmem:[#allocation5 + $0x484] sm:$0xf]  ;;  %v4497_v57 = vld [vmem:[#allocation5 + $0x488] sm:$0xf0]  ;;  %v4857_v40 = vld [vmem:[#allocation5 + $0x758] sm:$0xf0] }
 0x159   : > { %3205 = vmatpush.bf16.msra.mxu0 %v4548_v29  ;;  %v2954_v11 = vadd.f32 %v2953_v1, %v2941_v61  ;;  %v5696_v29 = vld [vmem:[#allocation5 + $0x524] sm:$0xf]  ;;  %v5754_v61 = vld [vmem:[#allocation5 + $0x6f4] sm:$0xf]  ;;  %v4500_v6 = vor.u32 %v5676_v56, %v4497_v57 }
 0x15a   : > { %3218 = vmatpush.bf16.msra.mxu1 %v4612_v36  ;;  %v4641_v36 = vld [vmem:[#allocation5 + $0x5a8] sm:$0xf0]  ;;  %v2979_v42 = vpop.f32.mrf.mxu3  ;;  %v4580_v46 = vor.u32 %v5696_v29, %v4577_v31  ;;  %v5708_v1 = vld [vmem:[#allocation5 + $0x584] sm:$0xf] }
 0x15b   : > { %3231 = vmatpush.bf16.msra.mxu2 %v4676_v16  ;;  %v2966_v16 = vpop.f32.mrf.mxu2  ;;  %v4644_v47 = vor.u32 %v5712_v35, %v4641_v36  ;;  %v5728_v31 = vld [vmem:[#allocation5 + $0x624] sm:$0xf]  ;;  %v4801_v36 = vld [vmem:[#allocation5 + $0x6e8] sm:$0xf0] }
 0x15c   : > { %3196 = vmatpush.bf16.msra.mxu3 %v4452_v17  ;;  %v4740_v17 = vor.u32 %v5736_v15, %v4737_v9  ;;  %v2967_v37 = vadd.f32 %v2966_v16, %v2954_v11  ;;  %v4873_v11 = vld [vmem:[#allocation5 + $0x778] sm:$0xf0]  ;;  %v5786_v9 = vld [vmem:[#allocation5 + $0x7f4] sm:$0xf]  ;;  %v5752_v35 = vld [vmem:[#allocation5 + $0x6e4] sm:$0xf] }
 0x15d   : > { %3206 = vmatpush.bf16.msra.mxu0 %v4540_v44  ;;  %v4505_v44 = vld [vmem:[#allocation5 + $0x498] sm:$0xf0]  ;;  %v4940_v16 = vor.u32 %v5786_v9, %v4937_v18  ;;  %v5762_v18 = vld [vmem:[#allocation5 + $0x734] sm:$0xf] }
 0x15e   : > { %3219 = vmatpush.bf16.msra.mxu1 %v4604_v48  ;;  %v5694_v48 = vld [vmem:[#allocation5 + $0x514] sm:$0xf]  ;;  %v6727_v51 = vadd.f32 %v2979_v42, %v2967_v37  ;;  %v4508_v54 = vor.u32 %v5678_v43, %v4505_v44  ;;  %v5784_v37 = vld [vmem:[#allocation5 + $0x7e4] sm:$0xf]  ;;  %v4929_v42 = vld [vmem:[#allocation5 + $0x7e8] sm:$0xf0]  ;;  %v4804_v43 = vor.u32 %v5752_v35, %v4801_v36 }
 0x15f   : > { %3232 = vmatpush.bf16.msra.mxu2 %v4668_v50  ;;  %v2955_v50 = vpop.f32.mrf.mxu1 }
 0x160   : > { %3197 = vmatpush.bf16.msra.mxu3 %v4444_v45  ;;  %v2942_v45 = vpop.f32.mrf.mxu0  ;;  %v4932_v50 = vor.u32 %v5784_v37, %v4929_v42  ;;  %v4833_v37 = vld [vmem:[#allocation5 + $0x728] sm:$0xf0]  ;;  %v5776_v42 = vld [vmem:[#allocation5 + $0x7a4] sm:$0xf] }
 0x161   : > { %3207 = vmatpush.bf16.msra.mxu0 %v4532_v34  ;;  %v4721_v34 = vld [vmem:[#allocation5 + $0x648] sm:$0xf0] }
 0x162   : > { %3220 = vmatpush.bf16.msra.mxu1 %v4596_v62  ;;  %v4809_v62 = vld [vmem:[#allocation5 + $0x6f8] sm:$0xf0]  ;;  %v2981_v22 = vpop.f32.mrf.mxu3 }
 0x163   : > { %3233 = vmatpush.bf16.msra.mxu2 %v4660_v0  ;;  %v4724_v0 = vor.u32 %v5732_v55, %v4721_v34  ;;  %v4812_v15 = vor.u32 %v5754_v61, %v4809_v62  ;;  %v5724_v34 = vld [vmem:[#allocation5 + $0x604] sm:$0xf]  ;;  %v4849_v61 = vld [vmem:[#allocation5 + $0x748] sm:$0xf0]  ;;  %v4841_v22 = vld [vmem:[#allocation5 + $0x738] sm:$0xf0] }
 0x164   : > { %3198 = vmatpush.bf16.msra.mxu3 %v4436_v49  ;;  %v4572_v49 = vor.u32 %v5694_v48, %v4569_v52  ;;  %v4793_v48 = vld [vmem:[#allocation5 + $0x6d8] sm:$0xf0]  ;;  %v5766_v52 = vld [vmem:[#allocation5 + $0x754] sm:$0xf]  ;;  %v5780_v62 = vld [vmem:[#allocation5 + $0x7c4] sm:$0xf]  ;;  %v4844_v36 = vor.u32 %v5762_v18, %v4841_v22 }
 0x165   : > { %3208 = vmatpush.bf16.msra.mxu0 %v4524_v14  ;;  %v2968_v14 = vpop.f32.mrf.mxu2  ;;  %v4860_v57 = vor.u32 %v5766_v52, %v4857_v40  ;;  %v5742_v52 = vld [vmem:[#allocation5 + $0x694] sm:$0xf]  ;;  %v4761_v40 = vld [vmem:[#allocation5 + $0x698] sm:$0xf0] }
 0x166   : > { %3221 = vmatpush.bf16.msra.mxu1 %v4588_v28  ;;  %v4564_v28 = vor.u32 %v5692_v38, %v4561_v60  ;;  %v4689_v38 = vld [vmem:[#allocation5 + $0x608] sm:$0xf0]  ;;  %v5764_v60 = vld [vmem:[#allocation5 + $0x744] sm:$0xf]  ;;  %v5129_v18 = vld [vmem:[#allocation5 + $0x978] sm:$0xf0] }
 0x167   : > { %3199 = vmatmul.bf16.vlgmr.msra.gmra.mxu3 %v6647_v19  ;;  %3234 = vmatpush.bf16.msra.mxu2 %v4652_v30  ;;  %v4732_v19 = vor.u32 %v5734_v12, %v4729_v41  ;;  %v4628_v30 = vor.u32 %v5708_v1, %v4625_v2  ;;  %v5768_v12 = vld [vmem:[#allocation5 + $0x764] sm:$0xf]  ;;  %v4865_v41 = vld [vmem:[#allocation5 + $0x768] sm:$0xf0]  ;;  %v5850_v22 = vld [vmem:[#allocation5 + $0x9f4] sm:$0xf] }
 0x168   : > { %3243 = vmatpush.bf16.msrb.mxu3 %v4748_v5  ;;  %v5730_v5 = vld [vmem:[#allocation5 + $0x634] sm:$0xf]  ;;  %v4868_v45 = vor.u32 %v5768_v12, %v4865_v41  ;;  %v5760_v41 = vld [vmem:[#allocation5 + $0x724] sm:$0xf] }
 0x169   : > { %3209 = vmatpush.bf16.msra.mxu0 %v4516_v63  ;;  %v4716_v29 = vor.u32 %v5730_v5, %v4713_v7  ;;  %v4705_v63 = vld [vmem:[#allocation5 + $0x628] sm:$0xf0]  ;;  %v4692_v5 = vor.u32 %v5724_v34, %v4689_v38  ;;  %v5746_v7 = vld [vmem:[#allocation5 + $0x6b4] sm:$0xf] }
 0x16a   : > { %3222 = vmatpush.bf16.msra.mxu1 %v4580_v46  ;;  %v4708_v44 = vor.u32 %v5728_v31, %v4705_v63  ;;  %v5726_v46 = vld [vmem:[#allocation5 + $0x614] sm:$0xf]  ;;  %v4769_v63 = vld [vmem:[#allocation5 + $0x6a8] sm:$0xf0] }
 0x16b   : > { %3235 = vmatpush.bf16.msra.mxu2 %v4644_v47  ;;  %v5750_v47 = vld [vmem:[#allocation5 + $0x6d4] sm:$0xf] }
 0x16c   : > { %3244 = vmatpush.bf16.msrb.mxu3 %v4740_v17  ;;  %v4876_v17 = vor.u32 %v5770_v10, %v4873_v11  ;;  %v4796_v55 = vor.u32 %v5750_v47, %v4793_v48  ;;  %v4777_v10 = vld [vmem:[#allocation5 + $0x6b8] sm:$0xf0]  ;;  %v5758_v34 = vld [vmem:[#allocation5 + $0x714] sm:$0xf] }
 0x16d   : > { %3210 = vmatpush.bf16.msra.mxu0 %v4508_v54  ;;  %v4921_v54 = vld [vmem:[#allocation5 + $0x7d8] sm:$0xf0]  ;;  %v4780_v35 = vor.u32 %v5746_v7, %v4777_v10  ;;  %v5818_v7 = vld [vmem:[#allocation5 + $0x8f4] sm:$0xf] }
 0x16e   : > { %3223 = vmatpush.bf16.msra.mxu1 %v4572_v49  ;;  %v5748_v49 = vld [vmem:[#allocation5 + $0x6c4] sm:$0xf]  ;;  %v5065_v10 = vld [vmem:[#allocation5 + $0x8f8] sm:$0xf0] }
 0x16f   : > { %3236 = vmatpush.bf16.msra.mxu2 %v4636_v59  ;;  %v4924_v59 = vor.u32 %v5782_v53, %v4921_v54 }
 0x170   : > { %3245 = vmatpush.bf16.msrb.mxu3 %v4732_v19  ;;  %v4697_v19 = vld [vmem:[#allocation5 + $0x618] sm:$0xf0] }
 0x171   : > { %3211 = vmatpush.bf16.msra.mxu0 %v4500_v6  ;;  %v4700_v56 = vor.u32 %v5726_v46, %v4697_v19  ;;  %v2992_v2 = vpop.f32.mrf.mxu0  ;;  %v4852_v6 = vor.u32 %v5764_v60, %v4849_v61  ;;  %v4836_v19 = vor.u32 %v5760_v41, %v4833_v37  ;;  %v4764_v60 = vor.u32 %v5742_v52, %v4761_v40  ;;  %v5740_v61 = vld [vmem:[#allocation5 + $0x684] sm:$0xf]  ;;  %v4961_v37 = vld [vmem:[#allocation5 + $0x828] sm:$0xf0]  ;;  %v5790_v40 = vld [vmem:[#allocation5 + $0x814] sm:$0xf] }
 0x172   : > { %3224 = vmatpush.bf16.msra.mxu1 %v4564_v28  ;;  %v2993_v11 = vadd.f32 %v2992_v2, %v6727_v51  ;;  %v5778_v28 = vld [vmem:[#allocation5 + $0x7b4] sm:$0xf]  ;;  %v5792_v41 = vld [vmem:[#allocation5 + $0x824] sm:$0xf] }
 0x173   : > { %3237 = vmatpush.bf16.msra.mxu2 %v4628_v30  ;;  %v4905_v30 = vld [vmem:[#allocation5 + $0x7b8] sm:$0xf0] }
 0x174   : > { %3246 = vmatpush.bf16.msrb.mxu3 %v4724_v0  ;;  %3212 = vmatmul.bf16.vlgmr.msra.gmra.mxu0 %v6651_v24  ;;  %v4785_v24 = vld [vmem:[#allocation5 + $0x6c8] sm:$0xf0]  ;;  %v5802_v0 = vld [vmem:[#allocation5 + $0x874] sm:$0xf]  ;;  %v4908_v51 = vor.u32 %v5778_v28, %v4905_v30  ;;  %v5193_v28 = vld [vmem:[#allocation5 + $0x9f8] sm:$0xf0] }
 0x175   : > { %3256 = vmatpush.bf16.msrb.mxu0 %v4812_v15  ;;  %3225 = vmatmul.bf16.vlgmr.msra.gmra.mxu1 %v6649_v23  ;;  %v5001_v23 = vld [vmem:[#allocation5 + $0x878] sm:$0xf0]  ;;  %v4788_v1 = vor.u32 %v5748_v49, %v4785_v24  ;;  %v3005_v15 = vpop.f32.mrf.mxu1  ;;  %v5796_v24 = vld [vmem:[#allocation5 + $0x844] sm:$0xf] }
 0x176   : > { %3269 = vmatpush.bf16.msrb.mxu1 %v4876_v17  ;;  %3238 = vmatmul.bf16.vlgmr.msra.gmra.mxu2 %v6653_v27  ;;  %v4913_v27 = vld [vmem:[#allocation5 + $0x7c8] sm:$0xf0]  ;;  %v5004_v9 = vor.u32 %v5802_v0, %v5001_v23  ;;  %v3006_v31 = vadd.f32 %v3005_v15, %v2993_v11  ;;  %v5756_v0 = vld [vmem:[#allocation5 + $0x704] sm:$0xf]  ;;  %v5794_v11 = vld [vmem:[#allocation5 + $0x834] sm:$0xf] }
 0x177   : > { %3282 = vmatpush.bf16.msrb.mxu2 %v4940_v16  ;;  %v4916_v14 = vor.u32 %v5780_v62, %v4913_v27  ;;  %v4993_v17 = vld [vmem:[#allocation5 + $0x868] sm:$0xf0]  ;;  %v5744_v16 = vld [vmem:[#allocation5 + $0x6a4] sm:$0xf]  ;;  %v5834_v15 = vld [vmem:[#allocation5 + $0x974] sm:$0xf] }
 0x178   : > { %3247 = vmatpush.bf16.msrb.mxu3 %v4716_v29  ;;  %v5800_v29 = vld [vmem:[#allocation5 + $0x864] sm:$0xf]  ;;  %v4772_v47 = vor.u32 %v5744_v16, %v4769_v63  ;;  %v4753_v62 = vld [vmem:[#allocation5 + $0x688] sm:$0xf0] }
 0x179   : > { %3257 = vmatpush.bf16.msrb.mxu0 %v4804_v43  ;;  %v4996_v12 = vor.u32 %v5800_v29, %v4993_v17  ;;  %v4897_v43 = vld [vmem:[#allocation5 + $0x7a8] sm:$0xf0]  ;;  %v3018_v46 = vpop.f32.mrf.mxu2  ;;  %v2994_v53 = vpop.f32.mrf.mxu0  ;;  %v5068_v17 = vor.u32 %v5818_v7, %v5065_v10  ;;  %v5816_v16 = vld [vmem:[#allocation5 + $0x8e4] sm:$0xf]  ;;  %v5033_v7 = vld [vmem:[#allocation5 + $0x8b8] sm:$0xf0] }
 0x17a   : > { %3270 = vmatpush.bf16.msrb.mxu1 %v4868_v45  ;;  %v4985_v45 = vld [vmem:[#allocation5 + $0x858] sm:$0xf0]  ;;  %v3019_v48 = vadd.f32 %v3018_v46, %v3006_v31  ;;  %v4900_v54 = vor.u32 %v5776_v42, %v4897_v43  ;;  %v4817_v23 = vld [vmem:[#allocation5 + $0x708] sm:$0xf0]  ;;  %v5832_v42 = vld [vmem:[#allocation5 + $0x964] sm:$0xf] }
 0x17b   : > { %3283 = vmatpush.bf16.msrb.mxu2 %v4932_v50  ;;  %v3031_v50 = vpop.f32.mrf.mxu3  ;;  %v4820_v29 = vor.u32 %v5756_v0, %v4817_v23  ;;  %v5057_v63 = vld [vmem:[#allocation5 + $0x8e8] sm:$0xf0]  ;;  %v4953_v53 = vld [vmem:[#allocation5 + $0x818] sm:$0xf0]  ;;  %v5844_v0 = vld [vmem:[#allocation5 + $0x9c4] sm:$0xf] }
 0x17c   : > { %3248 = vmatpush.bf16.msrb.mxu3 %v4708_v44  ;;  %v5798_v44 = vld [vmem:[#allocation5 + $0x854] sm:$0xf]  ;;  %v6734_v49 = vadd.f32 %v3031_v50, %v3019_v48  ;;  %v5121_v43 = vld [vmem:[#allocation5 + $0x968] sm:$0xf0]  ;;  %v5060_v46 = vor.u32 %v5816_v16, %v5057_v63  ;;  %v5049_v50 = vld [vmem:[#allocation5 + $0x8d8] sm:$0xf0] }
 0x17d   : > { %3258 = vmatpush.bf16.msrb.mxu0 %v4796_v55  ;;  %v4988_v55 = vor.u32 %v5798_v44, %v4985_v45  ;;  %v3007_v38 = vpop.f32.mrf.mxu1  ;;  %v5848_v44 = vld [vmem:[#allocation5 + $0x9e4] sm:$0xf]  ;;  %v5185_v45 = vld [vmem:[#allocation5 + $0x9e8] sm:$0xf0]  ;;  %v5814_v48 = vld [vmem:[#allocation5 + $0x8d4] sm:$0xf] }
 0x17e   : > { %3271 = vmatpush.bf16.msrb.mxu1 %v4860_v57  ;;  %v5774_v57 = vld [vmem:[#allocation5 + $0x794] sm:$0xf]  ;;  %v5188_v52 = vor.u32 %v5848_v44, %v5185_v45  ;;  %v5169_v23 = vld [vmem:[#allocation5 + $0x9c8] sm:$0xf0]  ;;  %v5808_v16 = vld [vmem:[#allocation5 + $0x8a4] sm:$0xf] }
 0x17f   : > { %3284 = vmatpush.bf16.msrb.mxu2 %v4924_v59  ;;  %v4977_v59 = vld [vmem:[#allocation5 + $0x848] sm:$0xf0] }
 0x180   : > { %3249 = vmatpush.bf16.msrb.mxu3 %v4700_v56  ;;  %v4825_v56 = vld [vmem:[#allocation5 + $0x718] sm:$0xf0]  ;;  %v5025_v63 = vld [vmem:[#allocation5 + $0x8a8] sm:$0xf0] }
 0x181   : > { %3259 = vmatpush.bf16.msrb.mxu0 %v4788_v1  ;;  %v4828_v27 = vor.u32 %v5758_v34, %v4825_v56  ;;  %v5772_v1 = vld [vmem:[#allocation5 + $0x784] sm:$0xf]  ;;  %v3020_v30 = vpop.f32.mrf.mxu2  ;;  %v5846_v34 = vld [vmem:[#allocation5 + $0x9d4] sm:$0xf]  ;;  %v5177_v56 = vld [vmem:[#allocation5 + $0x9d8] sm:$0xf0] }
 0x182   : > { %3272 = vmatpush.bf16.msrb.mxu1 %v4852_v6  ;;  %v4881_v6 = vld [vmem:[#allocation5 + $0x788] sm:$0xf0]  ;;  %v5842_v30 = vld [vmem:[#allocation5 + $0x9b4] sm:$0xf] }
 0x183   : > { %3285 = vmatpush.bf16.msrb.mxu2 %v4916_v14  ;;  %v4969_v14 = vld [vmem:[#allocation5 + $0x838] sm:$0xf0]  ;;  %v3033_v31 = vpop.f32.mrf.mxu3  ;;  %v5153_v44 = vld [vmem:[#allocation5 + $0x9a8] sm:$0xf0] }
 0x184   : > { %3250 = vmatpush.bf16.msrb.mxu3 %v4692_v5  ;;  %v4980_v5 = vor.u32 %v5796_v24, %v4977_v59  ;;  %v5812_v24 = vld [vmem:[#allocation5 + $0x8c4] sm:$0xf]  ;;  %v5041_v59 = vld [vmem:[#allocation5 + $0x8c8] sm:$0xf0] }
 0x185   : > { %3260 = vmatpush.bf16.msrb.mxu0 %v4780_v35  ;;  %v4884_v35 = vor.u32 %v5772_v1, %v4881_v6  ;;  %v5866_v1 = vld [vmem:[#allocation5 + $0xa74] sm:$0xf]  ;;  %v5864_v31 = vld [vmem:[#allocation5 + $0xa64] sm:$0xf] }
 0x186   : > { %3273 = vmatpush.bf16.msrb.mxu1 %v4844_v36  ;;  %v4972_v36 = vor.u32 %v5794_v11, %v4969_v14  ;;  %v5810_v6 = vld [vmem:[#allocation5 + $0x8b4] sm:$0xf]  ;;  %v5172_v14 = vor.u32 %v5844_v0, %v5169_v23 }
 0x187   : > { %3251 = vmatmul.bf16.vlgmr.msrb.gmra.mxu3 %v6663_v13  ;;  %3286 = vmatpush.bf16.msrb.mxu2 %v4908_v51  ;;  %v4889_v13 = vld [vmem:[#allocation5 + $0x798] sm:$0xf0]  ;;  %v5132_v51 = vor.u32 %v5834_v15, %v5129_v18  ;;  %v5826_v15 = vld [vmem:[#allocation5 + $0x934] sm:$0xf] }
 0x188   : > { %3295 = vmatpush.bf16.msra.mxu3 %v5004_v9  ;;  %v4892_v2 = vor.u32 %v5774_v57, %v4889_v13  ;;  %v4756_v9 = vor.u32 %v5740_v61, %v4753_v62  ;;  %v5052_v57 = vor.u32 %v5814_v48, %v5049_v50  ;;  %v4956_v13 = vor.u32 %v5790_v40, %v4953_v53  ;;  %v4945_v62 = vld [vmem:[#allocation5 + $0x808] sm:$0xf0]  ;;  %v5241_v48 = vld [vmem:[#allocation5 + $0xa58] sm:$0xf0] }
 0x189   : > { %3261 = vmatpush.bf16.msrb.mxu0 %v4772_v47  ;;  %v4964_v47 = vor.u32 %v5792_v41, %v4961_v37  ;;  %v5180_v61 = vor.u32 %v5846_v34, %v5177_v56  ;;  %v5824_v41 = vld [vmem:[#allocation5 + $0x924] sm:$0xf] }
 0x18a   : > { %3274 = vmatpush.bf16.msrb.mxu1 %v4836_v19  ;;  %v5124_v19 = vor.u32 %v5832_v42, %v5121_v43  ;;  %v5089_v42 = vld [vmem:[#allocation5 + $0x928] sm:$0xf0]  ;;  %v5840_v43 = vld [vmem:[#allocation5 + $0x9a4] sm:$0xf] }
 0x18b   : > { %3287 = vmatpush.bf16.msrb.mxu2 %v4900_v54  ;;  %v5830_v54 = vld [vmem:[#allocation5 + $0x954] sm:$0xf]  ;;  %v6739_v38 = vpop.f32.mrf.mxu3  ;;  %v5092_v40 = vor.u32 %v5824_v41, %v5089_v42  ;;  %v5156_v53 = vor.u32 %v5840_v43, %v5153_v44 }
 0x18c   : > { %3296 = vmatpush.bf16.msra.mxu3 %v4996_v12  ;;  %v5196_v12 = vor.u32 %v5850_v22, %v5193_v28  ;;  %v5097_v28 = vld [vmem:[#allocation5 + $0x938] sm:$0xf0]  ;;  %v5854_v43 = vld [vmem:[#allocation5 + $0xa14] sm:$0xf] }
 0x18d   : > { %3262 = vmatpush.bf16.msrb.mxu0 %v4764_v60 }
 0x18e   : > { %3275 = vmatpush.bf16.msrb.mxu1 %v4828_v27  ;;  %v5105_v27 = vld [vmem:[#allocation5 + $0x948] sm:$0xf0] }
 0x18f   : > { %3288 = vmatpush.bf16.msrb.mxu2 %v4892_v2  ;;  %v5257_v2 = vld [vmem:[#allocation5 + $0xa78] sm:$0xf0] }
 0x190   : > { %3297 = vmatpush.bf16.msra.mxu3 %v4988_v55  ;;  %v5113_v55 = vld [vmem:[#allocation5 + $0x958] sm:$0xf0]  ;;  %v5260_v22 = vor.u32 %v5866_v1, %v5257_v2  ;;  %v5882_v1 = vld [vmem:[#allocation5 + $0xaf4] sm:$0xf] }
 0x191   : > { %3263 = vmatpush.bf16.msrb.mxu0 %v4756_v9  ;;  %v5116_v60 = vor.u32 %v5830_v54, %v5113_v55  ;;  %v3044_v10 = vpop.f32.mrf.mxu0  ;;  %v5822_v54 = vld [vmem:[#allocation5 + $0x914] sm:$0xf]  ;;  %v5321_v2 = vld [vmem:[#allocation5 + $0xaf8] sm:$0xf0] }
 0x192   : > { %3276 = vmatpush.bf16.msrb.mxu1 %v4820_v29  ;;  %v3045_v9 = vadd.f32 %v3044_v10, %v6734_v49  ;;  %v3057_v18 = vpop.f32.mrf.mxu1  ;;  %v5161_v29 = vld [vmem:[#allocation5 + $0x9b8] sm:$0xf0]  ;;  %v5858_v10 = vld [vmem:[#allocation5 + $0xa34] sm:$0xf] }
 0x193   : > { %3289 = vmatpush.bf16.msrb.mxu2 %v4884_v35  ;;  %v5249_v35 = vld [vmem:[#allocation5 + $0xa68] sm:$0xf0] }
 0x194   : > { %3298 = vmatpush.bf16.msra.mxu3 %v4980_v5  ;;  %3264 = vmatmul.bf16.vlgmr.msrb.gmra.mxu0 %v6667_v21  ;;  %v5788_v21 = vld [vmem:[#allocation5 + $0x804] sm:$0xf]  ;;  %v3058_v37 = vadd.f32 %v3057_v18, %v3045_v9  ;;  %v5252_v49 = vor.u32 %v5864_v31, %v5249_v35  ;;  %v5385_v9 = vld [vmem:[#allocation5 + $0xb78] sm:$0xf0] }
 0x195   : > { %3308 = vmatpush.bf16.msra.mxu0 %v5068_v17  ;;  %3277 = vmatmul.bf16.vlgmr.msrb.gmra.mxu1 %v6665_v20  ;;  %v5828_v20 = vld [vmem:[#allocation5 + $0x944] sm:$0xf]  ;;  %v4948_v5 = vor.u32 %v5788_v21, %v4945_v62  ;;  %v5036_v17 = vor.u32 %v5810_v6, %v5033_v7  ;;  %v5009_v62 = vld [vmem:[#allocation5 + $0x888] sm:$0xf0] }
 0x196   : > { %3321 = vmatpush.bf16.msra.mxu1 %v5132_v51  ;;  %3290 = vmatmul.bf16.vlgmr.msrb.gmra.mxu2 %v6669_v26  ;;  %v5044_v26 = vor.u32 %v5812_v24, %v5041_v59  ;;  %v5108_v11 = vor.u32 %v5828_v20, %v5105_v27  ;;  %v5100_v51 = vor.u32 %v5826_v15, %v5097_v28  ;;  %v5804_v21 = vld [vmem:[#allocation5 + $0x884] sm:$0xf]  ;;  %v6065_v27 = vld [vmem:[#allocation5 + $0xbb0] sm:$0xff]  ;;  %v5137_v7 = vld [vmem:[#allocation5 + $0x988] sm:$0xf0] }
 0x197   : > { %3334 = vmatpush.bf16.msra.mxu2 %v5196_v12  ;;  %v5164_v12 = vor.u32 %v5842_v30, %v5161_v29  ;;  %v5820_v20 = vld [vmem:[#allocation5 + $0x904] sm:$0xf]  ;;  %v2013_v0 = vunpack.c.h.b16 %v6065_v27  ;;  %v5898_v15 = vld [vmem:[#allocation5 + $0xb74] sm:$0xf]  ;;  %v5393_v27 = vld [vmem:[#allocation5 + $0xb88] sm:$0xf0] }
 0x198   : > { %3299 = vmatpush.bf16.msra.mxu3 %v4972_v36  ;;  %v3085_v36 = vpop.f32.mrf.mxu3  ;;  %v5836_v6 = vld [vmem:[#allocation5 + $0x984] sm:$0xf]  ;;  %v5388_v31 = vor.u32 %v5898_v15, %v5385_v9 }
 0x199   : > { %3309 = vmatpush.bf16.msra.mxu0 %v5060_v46  ;;  %v3070_v45 = vpop.f32.mrf.mxu2  ;;  %v5028_v46 = vor.u32 %v5808_v16, %v5025_v63  ;;  %v3046_v55 = vpop.f32.mrf.mxu0  ;;  %v2389_v28 = vpack.c.b16 %v2013_v0, %v2013_v0  ;;  %v5140_v29 = vor.u32 %v5836_v6, %v5137_v7  ;;  %v5856_v35 = vld [vmem:[#allocation5 + $0xa24] sm:$0xf]  ;;  %v5313_v16 = vld [vmem:[#allocation5 + $0xae8] sm:$0xf0]  ;;  %v5890_v6 = vld [vmem:[#allocation5 + $0xb34] sm:$0xf] }
 0x19a   : > { %3322 = vmatpush.bf16.msra.mxu1 %v5124_v19  ;;  %v3071_v50 = vadd.f32 %v3070_v45, %v3058_v37  ;;  %v5806_v19 = vld [vmem:[#allocation5 + $0x894] sm:$0xf]  ;;  %v3059_v24 = vpop.f32.mrf.mxu1  ;;  %v5880_v36 = vld [vmem:[#allocation5 + $0xae4] sm:$0xf]  ;;  %v5217_v63 = vld [vmem:[#allocation5 + $0xa28] sm:$0xf0] }
 0x19b   : > { %3335 = vmatpush.bf16.msra.mxu2 %v5188_v52  ;;  %v5017_v52 = vld [vmem:[#allocation5 + $0x898] sm:$0xf0]  ;;  %v2773_v41 = vsel %vm2768_vm0, %v2389_v28, 0  ;;  %v5904_v37 = vld [vmem:[#allocation5 + $0xba4] sm:$0xf]  ;;  %v5316_v42 = vor.u32 %v5880_v36, %v5313_v16  ;;  %v5220_v44 = vor.u32 %v5856_v35, %v5217_v63 }
 0x19c   : > { %3300 = vmatpush.bf16.msra.mxu3 %v4964_v47  ;;  %v5862_v47 = vld [vmem:[#allocation5 + $0xa54] sm:$0xf]  ;;  %v6744_v34 = vadd.f32 %v6739_v38, %v3071_v50  ;;  %v5020_v59 = vor.u32 %v5806_v19, %v5017_v52  ;;  %v5073_v38 = vld [vmem:[#allocation5 + $0x908] sm:$0xf0]  ;;  %v5852_v24 = vld [vmem:[#allocation5 + $0xa04] sm:$0xf] }
 0x19d   : > { %3310 = vmatpush.bf16.msra.mxu0 %v5052_v57  ;;  %v5244_v56 = vor.u32 %v5862_v47, %v5241_v48  ;;  %v5838_v57 = vld [vmem:[#allocation5 + $0x994] sm:$0xf]  ;;  %v5076_v30 = vor.u32 %v5820_v20, %v5073_v38  ;;  %v5305_v48 = vld [vmem:[#allocation5 + $0xad8] sm:$0xf0]  ;;  %v5281_v28 = vld [vmem:[#allocation5 + $0xaa8] sm:$0xf0] }
 0x19e   : > { %3323 = vmatpush.bf16.msra.mxu1 %v5116_v60  ;;  %v5860_v60 = vld [vmem:[#allocation5 + $0xa44] sm:$0xf]  ;;  %v5878_v47 = vld [vmem:[#allocation5 + $0xad4] sm:$0xf]  ;;  %v5289_v38 = vld [vmem:[#allocation5 + $0xab8] sm:$0xf0] }
 0x19f   : > { %3336 = vmatpush.bf16.msra.mxu2 %v5180_v61  ;;  %v5233_v61 = vld [vmem:[#allocation5 + $0xa48] sm:$0xf0]  ;;  %v5894_v52 = vld [vmem:[#allocation5 + $0xb54] sm:$0xf]  ;;  %v5353_v7 = vld [vmem:[#allocation5 + $0xb38] sm:$0xf0] }
 0x1a0   : > { %3301 = vmatpush.bf16.msra.mxu3 %v4956_v13  ;;  %v5145_v13 = vld [vmem:[#allocation5 + $0x998] sm:$0xf0]  ;;  %v5902_v55 = vld [vmem:[#allocation5 + $0xb94] sm:$0xf]  ;;  %vm3399_vm2 = vcmp.gt.f32.partialorder %v6744_v34, 0.0 }
 0x1a1   : > { %3311 = vmatpush.bf16.msra.mxu0 %v5044_v26  ;;  %v5148_v26 = vor.u32 %v5838_v57, %v5145_v13  ;;  %v3072_v18 = vpop.f32.mrf.mxu2  ;;  %v5870_v16 = vld [vmem:[#allocation5 + $0xa94] sm:$0xf]  ;;  %v5273_v63 = vld [vmem:[#allocation5 + $0xa98] sm:$0xf0] }
 0x1a2   : > { %3324 = vmatpush.bf16.msra.mxu1 %v5108_v11  ;;  %v5012_v11 = vor.u32 %v5804_v21, %v5009_v62  ;;  %v5892_v21 = vld [vmem:[#allocation5 + $0xb44] sm:$0xf]  ;;  %v5361_v62 = vld [vmem:[#allocation5 + $0xb48] sm:$0xf0]  ;;  %v5356_v18 = vor.u32 %v5890_v6, %v5353_v7 }
 0x1a3   : > { %3337 = vmatpush.bf16.msra.mxu2 %v5172_v14  ;;  %v5225_v14 = vld [vmem:[#allocation5 + $0xa38] sm:$0xf0] }
 0x1a4   : > { %3302 = vmatpush.bf16.msra.mxu3 %v4948_v5  ;;  %v5236_v5 = vor.u32 %v5860_v60, %v5233_v61  ;;  %v5201_v61 = vld [vmem:[#allocation5 + $0xa08] sm:$0xf0] }
 0x1a5   : > { %3312 = vmatpush.bf16.msra.mxu0 %v5036_v17  ;;  %v5228_v17 = vor.u32 %v5858_v10, %v5225_v14  ;;  %v5204_v0 = vor.u32 %v5852_v24, %v5201_v61  ;;  %v5913_v14 = vld [vmem:[#allocation8 + $0x38] sm:$0xff] }
 0x1a6   : > { %3325 = vmatpush.bf16.msra.mxu1 %v5100_v51  ;;  %v5896_v51 = vld [vmem:[#allocation5 + $0xb64] sm:$0xf] }
 0x1a7   : > { %3303 = vmatmul.bf16.vlgmr.msra.gmra.mxu3 %v6679_v25  ;;  %3338 = vmatpush.bf16.msra.mxu2 %v5164_v12  ;;  %v5081_v25 = vld [vmem:[#allocation5 + $0x918] sm:$0xf0]  ;;  %v5377_v12 = vld [vmem:[#allocation5 + $0xb68] sm:$0xf0] }
 0x1a8   : > { %3347 = vmatpush.bf16.msrb.mxu3 %v5260_v22  ;;  %v5084_v23 = vor.u32 %v5822_v54, %v5081_v25  ;;  %v5324_v22 = vor.u32 %v5882_v1, %v5321_v2  ;;  %v5380_v45 = vor.u32 %v5896_v51, %v5377_v12  ;;  %v5308_v25 = vor.u32 %v5878_v47, %v5305_v48  ;;  %v5329_v47 = vld [vmem:[#allocation5 + $0xb08] sm:$0xf0]  ;;  %v5910_v48 = vld [vmem:[#allocation8 + $0x20] sm:$0xff] }
 0x1a9   : > { %3313 = vmatpush.bf16.msra.mxu0 %v5028_v46  ;;  %v5209_v46 = vld [vmem:[#allocation5 + $0xa18] sm:$0xf0] }
 0x1aa   : > { %3326 = vmatpush.bf16.msra.mxu1 %v5092_v40  ;;  %v3096_v50 = vpop.f32.mrf.mxu3  ;;  %v5369_v40 = vld [vmem:[#allocation5 + $0xb58] sm:$0xf0]  ;;  %v5212_v57 = vor.u32 %v5854_v43, %v5209_v46  ;;  %v5276_v43 = vor.u32 %v5870_v16, %v5273_v63  ;;  %v5884_v46 = vld [vmem:[#allocation5 + $0xb04] sm:$0xf] }
 0x1ab   : > { %3339 = vmatpush.bf16.msra.mxu2 %v5156_v53  ;;  %v6066_v53 = vld [vmem:[#allocation7] sm:$0x3]  ;;  %v5372_v13 = vor.u32 %v5894_v52, %v5369_v40  ;;  %v5332_v52 = vor.u32 %v5884_v46, %v5329_v47 }
 0x1ac   : > { %3348 = vmatpush.bf16.msrb.mxu3 %v5252_v49  ;;  %v5409_v49 = vld [vmem:[#allocation5 + $0xba8] sm:$0xf0]  ;;  %v886_v54 = vperm.slane %v6066_v53, 1  ;;  %v5909_v40 = vld [vmem:[#allocation8 + $0x18] sm:$0xff] }
 0x1ad   : > { %3314 = vmatpush.bf16.msra.mxu0 %v5020_v59  ;;  %v5412_v19 = vor.u32 %v5904_v37, %v5409_v49  ;;  %v5876_v59 = vld [vmem:[#allocation5 + $0xac4] sm:$0xf]  ;;  %v5337_v37 = vld [vmem:[#allocation5 + $0xb18] sm:$0xf0] }
 0x1ae   : > { %3327 = vmatpush.bf16.msra.mxu1 %v5084_v23  ;;  %v3097_v20 = vadd.f32 %v3096_v50, %v886_v54  ;;  %v5364_v23 = vor.u32 %v5892_v21, %v5361_v62  ;;  %v5908_v54 = vld [vmem:[#allocation8 + $0x10] sm:$0xff] }
 0x1af   : > { %3340 = vmatpush.bf16.msra.mxu2 %v5148_v26  ;;  %v5874_v26 = vld [vmem:[#allocation5 + $0xab4] sm:$0xf] }
 0x1b0   : > { %3349 = vmatpush.bf16.msrb.mxu3 %v5244_v56  ;;  %v5401_v56 = vld [vmem:[#allocation5 + $0xb98] sm:$0xf0]  ;;  %v5292_v15 = vor.u32 %v5874_v26, %v5289_v38 }
 0x1b1   : > { %3315 = vmatpush.bf16.msra.mxu0 %v5012_v11  ;;  %v5404_v60 = vor.u32 %v5902_v55, %v5401_v56  ;;  %v3109_v1 = vpop.f32.mrf.mxu0  ;;  %v5907_v55 = vld [vmem:[#allocation8 + $0x8] sm:$0xff]  ;;  %v3401_v56 = vmul.f32 0.01, %v6744_v34 }
 0x1b2   : > { %3328 = vmatpush.bf16.msra.mxu1 %v5076_v30  ;;  %v3098_v2 = vpop.f32.mrf.mxu3  ;;  %v3110_v10 = vadd.f32 %v3109_v1, %v3097_v20  ;;  %v3122_v11 = vpop.f32.mrf.mxu1  ;;  %v5888_v30 = vld [vmem:[#allocation5 + $0xb24] sm:$0xf] }
 0x1b3   : > { %3341 = vmatpush.bf16.msra.mxu2 %v5140_v29  ;;  %v5345_v29 = vld [vmem:[#allocation5 + $0xb28] sm:$0xf0] }
 0x1b4   : > { %3350 = vmatpush.bf16.msrb.mxu3 %v5236_v5  ;;  %3316 = vmatmul.bf16.vlgmr.msra.gmra.mxu0 %v6684_v33  ;;  %v5297_v33 = vld [vmem:[#allocation5 + $0xac8] sm:$0xf0]  ;;  %v3123_v9 = vadd.f32 %v3122_v11, %v3110_v10  ;;  %v5348_v36 = vor.u32 %v5888_v30, %v5345_v29  ;;  %v5918_v29 = vld [vmem:[#allocation8 + $0x60] sm:$0xff] }
 0x1b5   : > { %3360 = vmatpush.bf16.msrb.mxu0 %v5324_v22  ;;  %3329 = vmatmul.bf16.vlgmr.msra.gmra.mxu1 %v6682_v32  ;;  %v5300_v32 = vor.u32 %v5876_v59, %v5297_v33  ;;  %v5872_v22 = vld [vmem:[#allocation5 + $0xaa4] sm:$0xf]  ;;  %v3403_v33 = vsel %vm3399_vm2, %v6744_v34, %v3401_v56 }
 0x1b6   : > { %3373 = vmatpush.bf16.msrb.mxu1 %v5388_v31  ;;  %3342 = vmatmul.bf16.vlgmr.msra.gmra.mxu2 %v6686_v39  ;;  %v5900_v39 = vld [vmem:[#allocation5 + $0xb84] sm:$0xf]  ;;  %v5284_v31 = vor.u32 %v5872_v22, %v5281_v28 }
 0x1b7   : > { %3390 = vmatpush.bf16.msrb.mxu2 %v2773_v41  ;;  %v5396_v5 = vor.u32 %v5900_v39, %v5393_v27  ;;  %v5886_v41 = vld [vmem:[#allocation5 + $0xb14] sm:$0xf]  ;;  %v5919_v28 = vld [vmem:[#allocation8 + $0x68] sm:$0xff] }
 0x1b8   : > { %3351 = vmatpush.bf16.msrb.mxu3 %v5228_v17  ;;  %v5912_v17 = vld [vmem:[#allocation8 + $0x30] sm:$0xff] }
 0x1b9   : > { %3361 = vmatpush.bf16.msrb.mxu0 %v5316_v42  ;;  %v3135_v35 = vpop.f32.mrf.mxu2  ;;  %v3111_v12 = vpop.f32.mrf.mxu0  ;;  %v5911_v42 = vld [vmem:[#allocation8 + $0x28] sm:$0xff] }
 0x1ba   : > { %3374 = vmatpush.bf16.msrb.mxu1 %v5380_v45  ;;  %v3136_v51 = vadd.f32 %v3135_v35, %v3123_v9  ;;  %v3124_v49 = vpop.f32.mrf.mxu1  ;;  %v5265_v45 = vld [vmem:[#allocation5 + $0xa88] sm:$0xf0] }
 0x1bb   : > { %3391 = vmatpush.bf16.msrb.mxu2 %v5412_v19  ;;  %v5920_v9 = vld [vmem:[#allocation8 + $0x70] sm:$0xff] }
 0x1bc   : > { %3352 = vmatpush.bf16.msrb.mxu3 %v5220_v44  ;;  %v5868_v44 = vld [vmem:[#allocation5 + $0xa84] sm:$0xf] }
 0x1bd   : > { %3362 = vmatpush.bf16.msrb.mxu0 %v5308_v25  ;;  %v5268_v50 = vor.u32 %v5868_v44, %v5265_v45 }
 0x1be   : > { %3375 = vmatpush.bf16.msrb.mxu1 %v5372_v13 }
 0x1bf   : > { %3392 = vmatpush.bf16.msrb.mxu2 %v5404_v60 }
 0x1c0   : > { %3353 = vmatpush.bf16.msrb.mxu3 %v5212_v57  ;;  %v5906_v57 = vld [vmem:[#allocation8] sm:$0xff] }
 0x1c1   : > { %3363 = vmatpush.bf16.msrb.mxu0 %v5300_v32  ;;  %v3137_v19 = vpop.f32.mrf.mxu2 }
 0x1c2   : > { %3376 = vmatpush.bf16.msrb.mxu1 %v5364_v23 }
 0x1c3   : > { %3393 = vmatpush.bf16.msrb.mxu2 %v5396_v5 }
 0x1c4   : > { %3354 = vmatpush.bf16.msrb.mxu3 %v5204_v0 }
 0x1c5   : > { %3364 = vmatpush.bf16.msrb.mxu0 %v5292_v15 }
 0x1c6   : > { %3377 = vmatpush.bf16.msrb.mxu1 %v5356_v18  ;;  %5414 = vmatmul.msk.bf16.vlgmr.msrb.gmra.mxu2 %vm2764_vm1, %v6693_v58 }
 0x1c7   : > { %3539 = vmatpush.bf16.msra.mxu2 %v5913_v14  ;;  %3355 = vmatmul.bf16.vlgmr.msrb.gmra.mxu3 %v6702_v3  ;;  %v5340_v3 = vor.u32 %v5886_v41, %v5337_v37  ;;  %v5921_v14 = vld [vmem:[#allocation8 + $0x78] sm:$0xff]  ;;  %v5914_v41 = vld [vmem:[#allocation8 + $0x40] sm:$0xff] }
 0x1c8   : > { %3552 = vmatpush.bf16.msra.mxu3 %v5921_v14  ;;  %v5931_v14 = vld [vmem:[#allocation13 + $0x8] sm:$0xff] }
 0x1c9   : > { %3365 = vmatpush.bf16.msrb.mxu0 %v5284_v31  ;;  %v5917_v31 = vld [vmem:[#allocation8 + $0x58] sm:$0xff] }
 0x1ca   : > { %3378 = vmatpush.bf16.msrb.mxu1 %v5348_v36  ;;  %v3148_v53 = vpop.f32.mrf.mxu3  ;;  %v5916_v36 = vld [vmem:[#allocation8 + $0x50] sm:$0xff] }
 0x1cb   : > { %3540 = vmatpush.bf16.msra.mxu2 %v5912_v17  ;;  %v3149_v58 = vadd.f32 %v3148_v53, %v3136_v51  ;;  %v5915_v51 = vld [vmem:[#allocation8 + $0x48] sm:$0xff]  ;;  %v5929_v53 = vld [vmem:[%s6821_s5 + $0x38] sm:$0xff] }
 0x1cc   : > { %3553 = vmatpush.bf16.msra.mxu3 %v5920_v9  ;;  %v6059_v9 = vld [vmem:[#allocation11] ss:$0 sm:$0xff] }
 0x1cd   : > { %3366 = vmatpush.bf16.msrb.mxu0 %v5276_v43 }
 0x1ce   : > { %3379 = vmatpush.bf16.msrb.mxu1 %v5340_v3 }
 0x1cf   : > { %3541 = vmatpush.bf16.msra.mxu2 %v5911_v42 }
 0x1d0   : > { %3554 = vmatpush.bf16.msra.mxu3 %v5919_v28 }
 0x1d1   : > { %3367 = vmatpush.bf16.msrb.mxu0 %v5268_v50  ;;  %v3161_v13 = vpop.f32.mrf.mxu0 }
 0x1d2   : > { %3380 = vmatpush.bf16.msrb.mxu1 %v5332_v52  ;;  %v3150_v25 = vpop.f32.mrf.mxu3  ;;  %v3174_v24 = vpop.f32.mrf.mxu1  ;;  %v3162_v59 = vadd.f32 %v3161_v13, %v3149_v58 }
 0x1d3   : > { %3542 = vmatpush.bf16.msra.mxu2 %v5910_v48 }
 0x1d4   : > { %3368 = vmatmul.bf16.vlgmr.msrb.gmra.mxu0 %v6706_v8  ;;  %v3175_v60 = vadd.f32 %v3174_v24, %v3162_v59  ;;  %v3405_v8 = vpack.c.bf16 %v3403_v33, %v3403_v33  ;;  %3555 = vmatpush.bf16.msra.mxu3 %v5918_v29  ;;  %v5927_v59 = vld [vmem:[%s6821_s5 + $0x28] sm:$0xff] }
 0x1d5   : > { %3381 = vmatmul.bf16.vlgmr.msrb.gmra.mxu1 %v6704_v4  ;;  %3637 = vmatpush.bf16.msra.mxu0 %v5929_v53 }
 0x1d7   : > { %3543 = vmatpush.bf16.msra.mxu2 %v5909_v40 }
 0x1d8   : > { %3556 = vmatpush.bf16.msra.mxu3 %v5917_v31  ;;  %v3707_v31 = vlaneseq }
 0x1d9   : > { %v3187_v61 = vpop.f32.mrf.mxu2  ;;  %v3163_v21 = vpop.f32.mrf.mxu0 }
 0x1da   : > { %v3188_v4 = vadd.f32 %v3187_v61, %v3175_v60  ;;  %v3176_v62 = vpop.f32.mrf.mxu1 }
 0x1db   : > { %3544 = vmatpush.bf16.msra.mxu2 %v5908_v54 }
 0x1dc   : > { %3557 = vmatpush.bf16.msra.mxu3 %v5916_v36  ;;  %v6060_v36 = vld [vmem:[#allocation14] ss:$0 sm:$0xff] }
 0x1df   : > { %3545 = vmatpush.bf16.msra.mxu2 %v5907_v55  ;;  %v5928_v55 = vld [vmem:[%s6821_s5 + $0x30] sm:$0xff] }
 0x1e0   : > { %3558 = vmatpush.bf16.msra.mxu3 %v5915_v51  ;;  %3638 = vmatpush.bf16.msra.mxu0 %v5928_v55 }
 0x1e1   : > { %v3189_v20 = vpop.f32.mrf.mxu2 }
 0x1e2   : > { %v5925_v20 = vld [vmem:[%s6821_s5 + $0x18] sm:$0xff] }
 0x1e3   : > { %3546 = vmatpush.bf16.msra.mxu2 %v5906_v57 }
 0x1e4   : > { %3559 = vmatpush.bf16.msra.mxu3 %v5914_v41  ;;  %3639 = vmatpush.bf16.msra.mxu0 %v5927_v59 }
 0x1e6   : > { %3547 = vmatmul.bf16.vlgmr.msra.gmra.mxu2 %v3405_v8  ;;  %v5926_v8 = vld [vmem:[%s6821_s5 + $0x20] sm:$0xff] }
 0x1e8   : > { %3640 = vmatpush.bf16.msra.mxu0 %v5926_v8 }
 0x1ea   : > { %v3200_v39 = vpop.f32.mrf.mxu3 }
 0x1eb   : > { %v3201_v27 = vadd.f32 %v3200_v39, %v3188_v4  ;;  %v5924_v39 = vld [vmem:[%s6821_s5 + $0x10] sm:$0xff] }
 0x1ec   : > { %3641 = vmatpush.bf16.msra.mxu0 %v5925_v20 }
 0x1f0   : > { %3642 = vmatpush.bf16.msra.mxu0 %v5924_v39 }
 0x1f1   : > { %v3213_v0 = vpop.f32.mrf.mxu0 }
 0x1f2   : > { %v3202_v32 = vpop.f32.mrf.mxu3  ;;  %v3214_v23 = vadd.f32 %v3213_v0, %v3201_v27  ;;  %v3226_v26 = vpop.f32.mrf.mxu1  ;;  %v5923_v0 = vld [vmem:[%s6821_s5 + $0x8] sm:$0xff] }
 0x1f4   : > { %v3227_v38 = vadd.f32 %v3226_v26, %v3214_v23  ;;  %3643 = vmatpush.bf16.msra.mxu0 %v5923_v0  ;;  %v5922_v23 = vld [vmem:[%s6821_s5] sm:$0xff]  ;;  %v5933_v26 = vld [vmem:[#allocation13 + $0x18] sm:$0xff] }
 0x1f5   : > { %3698 = vmatpush.bf16.msra.mxu1 %v5933_v26 }
 0x1f8   : > { %3644 = vmatpush.bf16.msra.mxu0 %v5922_v23 }
 0x1f9   : > { %v3239_v1 = vpop.f32.mrf.mxu2  ;;  %v3215_v2 = vpop.f32.mrf.mxu0 }
 0x1fa   : > { %v3228_v5 = vpop.f32.mrf.mxu1  ;;  %v3240_v12 = vadd.f32 %v3239_v1, %v3227_v38  ;;  %v5932_v38 = vld [vmem:[#allocation13 + $0x10] sm:$0xff]  ;;  %v6058_v1 = vld [vmem:[#allocation10] ss:$0 sm:$0xff] }
 0x1fb   : > { %3699 = vmatpush.bf16.msra.mxu1 %v5932_v38 }
 0x1ff   : > { %3700 = vmatpush.bf16.msra.mxu1 %v5931_v14 }
 0x201   : > { %v3241_v34 = vpop.f32.mrf.mxu2 }
 0x20a   : > { %v3252_v6 = vpop.f32.mrf.mxu3 }
 0x20b   : > { %v3253_v49 = vadd.f32 %v3252_v6, %v3240_v12 }
 0x211   : > { %v3265_v10 = vpop.f32.mrf.mxu0 }
 0x212   : > { %v3254_v7 = vpop.f32.mrf.mxu3  ;;  %v3278_v11 = vpop.f32.mrf.mxu1  ;;  %v3266_v3 = vadd.f32 %v3265_v10, %v3253_v49 }
 0x214   : > { %v3279_v44 = vadd.f32 %v3278_v11, %v3266_v3 }
 0x219   : > { %v3291_v15 = vpop.f32.mrf.mxu2  ;;  %v3267_v18 = vpop.f32.mrf.mxu0 }
 0x21a   : > { %v3280_v22 = vpop.f32.mrf.mxu1  ;;  %v3292_v46 = vadd.f32 %v3291_v15, %v3279_v44  ;;  %v5930_v15 = vld [vmem:[#allocation13] sm:$0xff] }
 0x21b   : > { %3701 = vmatpush.bf16.msra.mxu1 %v5930_v15 }
 0x221   : > { %v3293_v30 = vpop.f32.mrf.mxu2 }
 0x22a   : > { %v3304_v17 = vpop.f32.mrf.mxu3 }
 0x22b   : > { %v3305_v47 = vadd.f32 %v3304_v17, %v3292_v46 }
 0x231   : > { %v3317_v16 = vpop.f32.mrf.mxu0 }
 0x232   : > { %v3306_v35 = vpop.f32.mrf.mxu3  ;;  %v3330_v63 = vpop.f32.mrf.mxu1  ;;  %v3318_v48 = vadd.f32 %v3317_v16, %v3305_v47 }
 0x233   : > { %v3708_v35 = vand.u32 127, %v3707_v31 }
 0x234   : > { %v3331_v19 = vadd.f32 %v3330_v63, %v3318_v48 }
 0x235   : > { %vm3709_vm7 = vcmp.eq.s32.totalorder %v3708_v35, 0  ;;  %vm3713_vm8 = vcmp.eq.s32.totalorder %v3708_v35, 1  ;;  %vm3739_vm13 = vcmp.eq.s32.totalorder %v3708_v35, 3  ;;  %vm3738_vm14 = vcmp.eq.s32.totalorder %v3708_v35, 2 }
 0x236   : > { %vm3737_vm15 = vcmp.lt.s32.totalorder %v3708_v35, 2 }
 0x239   : > { %v3343_v37 = vpop.f32.mrf.mxu2  ;;  %v3319_v42 = vpop.f32.mrf.mxu0 }
 0x23a   : > { %v3332_v43 = vpop.f32.mrf.mxu1  ;;  %v3344_v40 = vadd.f32 %v3343_v37, %v3331_v19 }
 0x241   : > { %v3345_v45 = vpop.f32.mrf.mxu2 }
 0x249   : > { %v3395_v52 = vpop.f32.mrf.mxu2 }
 0x24a   : > { %v3356_v50 = vpop.f32.mrf.mxu3 }
 0x24b   : > { %v3357_v58 = vadd.f32 %v3356_v50, %v3344_v40 }
 0x251   : > { %v3369_v56 = vpop.f32.mrf.mxu0  ;;  %v3397_v24 = vpop.f32.mrf.mxu2 }
 0x252   : > { %v3358_v54 = vpop.f32.mrf.mxu3  ;;  %v3370_v25 = vadd.f32 %v3369_v56, %v3357_v58  ;;  %v3382_v57 = vpop.f32.mrf.mxu1 }
 0x254   : > { %v3383_v13 = vadd.f32 %v3382_v57, %v3370_v25 }
 0x256   : > { %v3396_v33 = vadd.f32 %v3395_v52, %v3383_v13 }
 0x258   : > { %vm3400_vm3 = vcmp.gt.f32.partialorder %v3396_v33, 0.0  ;;  %v3402_v60 = vmul.f32 0.01, %v3396_v33 }
 0x259   : > { %v3371_v61 = vpop.f32.mrf.mxu0 }
 0x25a   : > { %v3404_v4 = vsel %vm3400_vm3, %v3396_v33, %v3402_v60  ;;  %v3384_v21 = vpop.f32.mrf.mxu1 }
 0x25b   : > { %v3406_v62 = vpack.c.bf16 %v3404_v4, %v3404_v4 }
 0x25d   : > { %3560 = vmatmul.bf16.vlgmr.msra.gmra.mxu3 %v3406_v62 }
 0x269   : > { %v3548_v27 = vpop.f32.mrf.mxu2 }
 0x26a   : > { %v3549_v2 = vadd.f32 %v6058_v1, %v3548_v27 }
 0x271   : > { %v3550_v32 = vpop.f32.mrf.mxu2 }
 0x2e0   : > { %v3561_v5 = vpop.f32.mrf.mxu3 }
 0x2e1   : > { %v3562_v34 = vadd.f32 %v3561_v5, %v3549_v2 }
 0x2e3   : > { %vm3565_vm4 = vcmp.gt.f32.partialorder %v3562_v34, 0.0  ;;  %v3566_v6 = vmul.f32 0.01, %v3562_v34 }
 0x2e5   : > { %v3567_v7 = vsel %vm3565_vm4, %v3562_v34, %v3566_v6 }
 0x2e6   : > { %v3568_v10 = vpack.c.bf16 %v3567_v7, %v3567_v7 }
 0x2e8   : > { %v3563_v11 = vpop.f32.mrf.mxu3  ;;  %3645 = vmatmul.bf16.vlgmr.msra.gmra.mxu0 %v3568_v10 }
 0x365   : > { %v3646_v18 = vpop.f32.mrf.mxu0 }
 0x366   : > { %v3647_v22 = vadd.f32 %v6059_v9, %v3646_v18 }
 0x368   : > { %vm3650_vm5 = vcmp.gt.f32.partialorder %v3647_v22, 0.0  ;;  %v3651_v28 = vmul.f32 0.01, %v3647_v22 }
 0x36a   : > { %v3652_v30 = vsel %vm3650_vm5, %v3647_v22, %v3651_v28 }
 0x36b   : > { %v3653_v29 = vpack.c.bf16 %v3652_v30, %v3652_v30 }
 0x36d   : > { %v3648_v17 = vpop.f32.mrf.mxu0  ;;  %5527 = vmatmul.msk.bf16.vlgmr.msra.gmra.mxu1 %vm3690_vm6, %v3653_v29 }
 0x3ea   : > { %v3703_v16 = vpop.f32.mrf.mxu1 }
 0x3eb   : > { %v3704_v63 = vadd.f32 %v6060_v36, %v3703_v16 }
 0x3ed   : > { %v3710_v51 = vsel %vm3709_vm7, %v3704_v63, 0.0  ;;  %v3714_v41 = vsel %vm3713_vm8, %v3704_v63, 0.0 }
 0x3ee   : > { %3711 = vadd.xlane.f32.xlu0 %v3710_v51 }
 0x3f2   : > { %v3705_v12 = vpop.f32.mrf.mxu1 }
 0x3f6   : > { %3715 = vadd.xlane.f32.xlu0 %v3714_v41 }
 0x461   : > { %v3712_v37 = vpop.xlane.xlu0 %3711 }
 0x469   : > { %v3716_v49 = vpop.xlane.xlu0 %3715 }
 0x46a   : > { %v3717_v42 = vsub.f32 %v3716_v49, %v3712_v37 }
 0x46c   : > { %v3718_v43 = vmul.f32 1.442695, %v3717_v42 }
 0x46e   : > { %6061 = vpow2.f32 %v3718_v43 }
 0x474   : > { %v6062_v3 = vpop.eup %6061 }
 0x475   : > { %v3720_v44 = vadd.f32 1.0, %v6062_v3 }
 0x477   : > { %6063 = vrcp.f32 %v3720_v44  ;;  %v3732_v48 = vand.u32 2147483648, %v3720_v44  ;;  %v3730_v19 = vand.u32 2147483647, %v3720_v44  ;;  %vm3726_vm10 = vweird.f32 %v3720_v44 }
 0x479   : > { %v3733_v40 = vor.u32 1.1754944e-38, %v3732_v48  ;;  %vm3731_vm12 = vcmp.eq.f32.partialorder %v3730_v19, 8.507059e+37 }
 0x47d   : > { %v6064_v45 = vpop.eup %6063 }
 0x47e   : > { %v3722_v46 = vmul.f32 %v6064_v45, %v3720_v44  ;;  %vm3727_vm9 = vweird.f32 %v6064_v45 }
 0x47f   : > { %vm3728_vm11 = vmor %vm3726_vm10, %vm3727_vm9 }
 0x480   : > { %v3723_v47 = vsub.f32 1.0, %v3722_v46 }
 0x482   : > { %v3724_v50 = vmul.f32 %v6064_v45, %v3723_v47 }
 0x484   : > { %v3725_v52 = vadd.f32 %v6064_v45, %v3724_v50 }
 0x486   : > { %v3729_v53 = vsel %vm3728_vm11, %v6064_v45, %v3725_v52 }
 0x487   : > { %v3734_v58 = vsel %vm3731_vm12, %v3733_v40, %v3729_v53 }
 0x488   : > { %v3736_v54 = vsub.f32 1.0, %v3734_v58 }
 0x48a   : > { %v3740_v55 = vsel %vm3739_vm13, %v3736_v54, 0.0 }
 0x48b   : > { %v3741_v56 = vsel %vm3738_vm14, %v3734_v58, %v3740_v55 }
 0x48c   : > { %v3742_v25 = vsel %vm3737_vm15, %v3704_v63, %v3741_v56 }
 0x48d   : > { %3743 = vst [vmem:[%s458_s23] sm:$0xff] %v3742_v25 }
 0x48e   : > { %6334 = shalt.err (!%p6331_p9)
}
 0x48f   : > { %5967 = dma.vmem_to_hbm [thread:$0]  (%p6554_p0), %s3758_s21, 128, %s3760_s26, %s3745_s16  }
 0x490 PF: > { %s3771_s20 = sand.u32 1, %s6377_s30   ;;  %p6844_p10 = scmp.ge.s32.totalorder %s6389_s12, 2 }
 0x491   : > { %s3772_s4 = scalar_lea.sflag [#allocation4], %s3771_s20 }
 0x492   : > { %p5996_p11 = pnand %p6844_p10, %p6560_p6 }
 0x494   : > { %p5997_p12 = pneg %p5996_p11 }
 0x496   : > { %6372 = dma.done.wait (%p5997_p12), %s3772_s4, 128  }
 0x497   : > { %6374 = vsyncadd (%p5997_p12), %s3772_s4, 4294967168  ;;  %p26_p2 = scmp.ge.s32.totalorder %s6534_s13, 4   ;;  %s6845_s30 = smov %s6381_s10 }
 0x498   : > { %s6846_s10 = smov %s6385_s11  ;;  %s6847_s11 = smov %s6546_s28 }
 0x499   : > { %s6848_s12 = smov %s6534_s13  ;;  %28 = sbr.rel (!%p26_p2) target bundleno = 16 (0x10), region = 129 }
 0x49e   :  { %3778 = vsyncpa [#allocation3], 1 }
 0x49f   :  { %3780 = vsyncpa [#allocation3 + $0x1], 1 }
 0x4a0   :  { %3781 = vsyncpa [#allocation6], 1 }
 0x4a1   :  { %3782 = vsyncpa [#allocation9], 1 }
 0x4a2   :  { %3783 = vsyncpa [#allocation12], 1 }
 0x4a3   :  { %3784 = vsyncpa [#allocation15], 1 }
 0x4a4   :  { %3785 = vsyncpa [#allocation4], 1 }
 0x4a5   :  { %3787 = vsyncpa [#allocation4 + $0x1], 1 }

</bundles_post_ra>
